<compile_context>
chip_gen: v6e
topology: v6e:2x2x1
jax: 0.10.0
libtpu: 0.0.40
codegen_flags: <defaults>
</compile_context>

<pallas_src>
import functools

import jax
import jax.numpy as jnp
import numpy as np
from jax.experimental import pallas as pl
from jax.experimental.pallas import tpu as pltpu


# ----------------------------------------------------------------------------
# Pallas kernel: shifted-matmul conv -> InstanceNorm (masked stats) -> affine
#                -> ReLU, all on one (group, batch) instance.
# ----------------------------------------------------------------------------
def _single_conv_kernel(x_ref, w_ref, gb_ref, mask_ref, o_ref, *,
                        k, hp, wp, inv_p, eps):
    # x_ref   : (Cin_g, Lin)          bf16  zero-padded, flattened input slab
    # w_ref   : (k^3, Cout_g, Cin_g)  bf16  one (Cout_g, Cin_g) matrix per tap
    # gb_ref  : (Cout_g, 2)           f32   [:, 0] = gamma, [:, 1] = beta
    # mask_ref: (1, F)                f32   1.0 at real output positions else 0.0
    # o_ref   : (Cout_g, F)           f32   F = lane-dense flattened spatial dim
    f_out = o_ref.shape[-1]
    x = x_ref[...]                                   # one VMEM load, sliced k^3 times

    acc = jnp.zeros(o_ref.shape, dtype=jnp.float32)  # f32 accumulator
    t = 0
    for kd in range(k):
        for kh in range(k):
            for kw in range(k):
                ofs = kd * hp * wp + kh * wp + kw    # static shift on flat spatial axis
                xs = x[:, ofs:ofs + f_out]           # (Cin_g, F) bf16
                acc = acc + jnp.dot(w_ref[t], xs,
                                    preferred_element_type=jnp.float32)
                t += 1

    # InstanceNorm3d statistics over exactly the P = Do*Ho*Wo real output
    # positions (biased variance, eps = 1e-5), one traversal: sum & sum-of-squares.
    m = mask_ref[...]                                # (1, F)
    am = acc * m
    s1 = jnp.sum(am, axis=1, keepdims=True)          # (Cout_g, 1)
    s2 = jnp.sum(am * acc, axis=1, keepdims=True)    # (Cout_g, 1)
    mean = s1 * inv_p
    var = jnp.maximum(s2 * inv_p - mean * mean, 0.0)

    gamma = gb_ref[:, 0:1]                           # (Cout_g, 1)
    beta = gb_ref[:, 1:2]
    scale = gamma * jax.lax.rsqrt(var + eps)         # EUP rsqrt
    shift = beta - mean * scale
    y = acc * scale + shift                          # fused normalize + affine
    o_ref[...] = jnp.maximum(y, 0.0).astype(o_ref.dtype)


def _round_up(a, b):
    return (a + b - 1) // b * b


# ----------------------------------------------------------------------------
# Wrapper: layout-only preprocessing (pad / group split / flatten), pallas_call,
# and a cheap slice to drop the padded-grid positions.
# ----------------------------------------------------------------------------
@functools.partial(jax.jit, static_argnames=("stride", "padding", "groups"))
def single_conv_pallas(x, weight, bias, gamma, beta, *, stride, padding, groups):
    del bias  # a per-channel constant before InstanceNorm is a mathematical no-op
    N, Cin, D, H, W = x.shape
    Cout, Cin_g, k, _, _ = weight.shape
    G = groups
    Cout_g = Cout // G
    s, p = stride, padding

    Dp, Hp, Wp = D + 2 * p, H + 2 * p, W + 2 * p
    Do = (D + 2 * p - k) // s + 1
    Ho = (H + 2 * p - k) // s + 1
    Wo = (W + 2 * p - k) // s + 1
    P = Do * Ho * Wo

    # The kernel computes the stride-1 conv on the flattened padded grid; the
    # real outputs live at flat index d*Hp*Wp + h*Wp + w with d=do*s, h=ho*s, w=wo*s.
    D_keep = (Do - 1) * s + 1
    H_keep = (Ho - 1) * s + 1
    W_keep = (Wo - 1) * s + 1
    F_valid = D_keep * Hp * Wp
    LANE = 128
    F = _round_up(F_valid, LANE)                       # lane-dense output width
    max_ofs = (k - 1) * (Hp * Wp + Wp + 1)
    Lin = _round_up(max(F + max_ofs, Dp * Hp * Wp), LANE)

    # ---- layout-only preprocessing (no k^3 inflation, no big transposes) ----
    xp = jnp.pad(x, ((0, 0), (0, 0), (p, p), (p, p), (p, p)))
    xg = xp.reshape(N, G, Cin_g, Dp * Hp * Wp)
    xg = jnp.pad(xg, ((0, 0), (0, 0), (0, 0), (0, Lin - Dp * Hp * Wp)))
    xg = xg.astype(jnp.bfloat16)                       # (N, G, Cin_g, Lin)

    wg = weight.reshape(G, Cout_g, Cin_g, k * k * k)
    wg = jnp.transpose(wg, (0, 3, 1, 2)).astype(jnp.bfloat16)   # (G, k^3, Cout_g, Cin_g)

    gb = jnp.stack([gamma, beta], axis=-1).reshape(G, Cout_g, 2).astype(jnp.float32)

    # validity mask of real output positions on the flattened padded grid
    f = jnp.arange(F, dtype=jnp.int32)
    d = f // (Hp * Wp)
    r = f % (Hp * Wp)
    h = r // Wp
    w = r % Wp
    valid = ((d % s == 0) & (d // s < Do) &
             (h % s == 0) & (h // s < Ho) &
             (w % s == 0) & (w // s < Wo))
    mask = valid.astype(jnp.float32).reshape(1, F)

    kernel = functools.partial(_single_conv_kernel, k=k, hp=Hp, wp=Wp,
                               inv_p=1.0 / float(P), eps=1e-5)

    out = pl.pallas_call(
        kernel,
        out_shape=jax.ShapeDtypeStruct((N, G, Cout_g, F), jnp.float32),
        grid=(G, N),
        in_specs=[
            pl.BlockSpec((None, None, Cin_g, Lin), lambda g, n: (n, g, 0, 0)),
            pl.BlockSpec((None, k ** 3, Cout_g, Cin_g), lambda g, n: (g, 0, 0, 0)),
            pl.BlockSpec((None, Cout_g, 2), lambda g, n: (g, 0, 0)),
            pl.BlockSpec((1, F), lambda g, n: (0, 0)),
        ],
        out_specs=pl.BlockSpec((None, None, Cout_g, F), lambda g, n: (n, g, 0, 0)),
        compiler_params=pltpu.CompilerParams(
            dimension_semantics=("parallel", "parallel")),
    )(xg, wg, gb, mask)

    # group-major channel merge is a free reshape; then keep the real outputs.
    y = out.reshape(N, Cout, F)[:, :, :F_valid]
    y = y.reshape(N, Cout, D_keep, Hp, Wp)
    y = y[:, :, ::s, :H_keep:s, :W_keep:s]             # (N, Cout, Do, Ho, Wo)
    return y


# ----------------------------------------------------------------------------
# Pure-JAX reference (module semantics, for verification)
# ----------------------------------------------------------------------------
def single_conv_ref(x, weight, bias, gamma, beta, *, stride, padding, groups):
    y = jax.lax.conv_general_dilated(
        x, weight,
        window_strides=(stride,) * 3,
        padding=[(padding, padding)] * 3,
        dimension_numbers=("NCDHW", "OIDHW", "NCDHW"),
        feature_group_count=groups,
        precision=jax.lax.Precision.HIGHEST,
    )
    y = y + bias[None, :, None, None, None]
    mean = y.mean(axis=(2, 3, 4), keepdims=True)
    var = ((y - mean) ** 2).mean(axis=(2, 3, 4), keepdims=True)
    yh = (y - mean) * jax.lax.rsqrt(var + 1e-5)
    yh = yh * gamma[None, :, None, None, None] + beta[None, :, None, None, None]
    return jnp.maximum(yh, 0.0)


if __name__ == "__main__":
    # SingleConv(in_ch=4, out_ch=8, kernel_size=3, stride=1, padding=1, groups=2)
    N, Cin, Cout, D, H, W = 2, 4, 8, 8, 8, 8
    k, stride, padding, groups = 3, 1, 1, 2

    key = jax.random.PRNGKey(0)
    kx, kw, kb, kg, kbe = jax.random.split(key, 5)
    x = jax.random.normal(kx, (N, Cin, D, H, W), jnp.float32)
    weight = 0.1 * jax.random.normal(kw, (Cout, Cin // groups, k, k, k), jnp.float32)
    bias = 0.1 * jax.random.normal(kb, (Cout,), jnp.float32)
    gamma = 1.0 + 0.1 * jax.random.normal(kg, (Cout,), jnp.float32)
    beta = 0.1 * jax.random.normal(kbe, (Cout,), jnp.float32)

    out = single_conv_pallas(x, weight, bias, gamma, beta,
                             stride=stride, padding=padding, groups=groups)
    out = jax.block_until_ready(out)

    # Exact-math check: reference fed the same bf16-quantized conv inputs
    # (isolates kernel correctness from bf16 input quantization).
    ref_bf16 = single_conv_ref(
        x.astype(jnp.bfloat16).astype(jnp.float32),
        weight.astype(jnp.bfloat16).astype(jnp.float32),
        bias, gamma, beta, stride=stride, padding=padding, groups=groups)
    np.testing.assert_allclose(np.asarray(out), np.asarray(ref_bf16),
                               rtol=2e-3, atol=2e-3)

    # End-to-end check vs. full-f32 module semantics (bf16 MXU input tolerance).
    ref_f32 = single_conv_ref(x, weight, bias, gamma, beta,
                              stride=stride, padding=padding, groups=groups)
    np.testing.assert_allclose(np.asarray(out), np.asarray(ref_f32),
                               rtol=2e-2, atol=2e-2)

    print("KERNEL_OK")
</pallas_src>

<mosaic_0001>
module attributes {stable_mosaic.version = 11 : i64} {
  func.func @_single_conv_kernel(%arg0: i32, %arg1: i32, %arg2: memref<1x1x2x1152xbf16, #tpu.memory_space<vmem>>, %arg3: memref<1x27x4x2xbf16, #tpu.memory_space<vmem>>, %arg4: memref<1x4x2xf32, #tpu.memory_space<vmem>>, %arg5: memref<1x896xf32, #tpu.memory_space<vmem>>, %arg6: memref<1x1x4x896xf32, #tpu.memory_space<vmem>>) attributes {dimension_semantics = [#tpu.dimension_semantics<parallel>, #tpu.dimension_semantics<parallel>], iteration_bounds = array<i64: 2, 2>, scalar_prefetch = 0 : i64, scratch_operands = 0 : i64, tpu.core_type = #tpu.core_type<tc>, window_params = [{transform_indices = @transform_0, window_bounds = array<i64: 1, 1, 2, 1152>}, {transform_indices = @transform_1, window_bounds = array<i64: 1, 27, 4, 2>}, {transform_indices = @transform_2, window_bounds = array<i64: 1, 4, 2>}, {pipeline_mode = #tpu.pipeline_mode<synchronous>, transform_indices = @transform_3, window_bounds = array<i64: 1, 896>}, {transform_indices = @transform_4, window_bounds = array<i64: 1, 1, 4, 896>}]} {
    %c0 = arith.constant 0 : index
    %c0_0 = arith.constant 0 : index
    %c0_1 = arith.constant 0 : index
    %c0_2 = arith.constant 0 : index
    %0 = vector.load %arg2[%c0, %c0_0, %c0_1, %c0_2] : memref<1x1x2x1152xbf16, #tpu.memory_space<vmem>>, vector<1x1x2x1152xbf16>
    %1 = vector.shape_cast %0 : vector<1x1x2x1152xbf16> to vector<2x1152xbf16>
    %cst = arith.constant 0.000000e+00 : f32
    %2 = vector.broadcast %cst : f32 to vector<4x896xf32>
    %3 = vector.extract_strided_slice %1 {offsets = [0, 0], sizes = [2, 896], strides = [1, 1]} : vector<2x1152xbf16> to vector<2x896xbf16>
    %c0_3 = arith.constant 0 : index
    %c0_4 = arith.constant 0 : index
    %c0_5 = arith.constant 0 : index
    %c0_6 = arith.constant 0 : index
    %4 = vector.load %arg3[%c0_3, %c0_4, %c0_5, %c0_6] : memref<1x27x4x2xbf16, #tpu.memory_space<vmem>>, vector<1x1x4x2xbf16>
    %5 = vector.shape_cast %4 : vector<1x1x4x2xbf16> to vector<4x2xbf16>
    %cst_7 = arith.constant dense<0.000000e+00> : vector<4x896xf32>
    %6 = tpu.matmul %5, %3, %cst_7 {dimension_numbers = #tpu.dot_dimension_numbers<[1], [0], [0], [1], [0, 0, 1, 1], [], []>} : vector<4x2xbf16>, vector<2x896xbf16>, vector<4x896xf32> -> vector<4x896xf32>
    %7 = arith.addf %2, %6 : vector<4x896xf32>
    %8 = vector.extract_strided_slice %1 {offsets = [0, 1], sizes = [2, 896], strides = [1, 1]} : vector<2x1152xbf16> to vector<2x896xbf16>
    %c0_8 = arith.constant 0 : index
    %c1 = arith.constant 1 : index
    %c0_9 = arith.constant 0 : index
    %c0_10 = arith.constant 0 : index
    %9 = vector.load %arg3[%c0_8, %c1, %c0_9, %c0_10] : memref<1x27x4x2xbf16, #tpu.memory_space<vmem>>, vector<1x1x4x2xbf16>
    %10 = vector.shape_cast %9 : vector<1x1x4x2xbf16> to vector<4x2xbf16>
    %cst_11 = arith.constant dense<0.000000e+00> : vector<4x896xf32>
    %11 = tpu.matmul %10, %8, %cst_11 {dimension_numbers = #tpu.dot_dimension_numbers<[1], [0], [0], [1], [0, 0, 1, 1], [], []>} : vector<4x2xbf16>, vector<2x896xbf16>, vector<4x896xf32> -> vector<4x896xf32>
    %12 = arith.addf %7, %11 : vector<4x896xf32>
    %13 = vector.extract_strided_slice %1 {offsets = [0, 2], sizes = [2, 896], strides = [1, 1]} : vector<2x1152xbf16> to vector<2x896xbf16>
    %c0_12 = arith.constant 0 : index
    %c2 = arith.constant 2 : index
    %c0_13 = arith.constant 0 : index
    %c0_14 = arith.constant 0 : index
    %14 = vector.load %arg3[%c0_12, %c2, %c0_13, %c0_14] : memref<1x27x4x2xbf16, #tpu.memory_space<vmem>>, vector<1x1x4x2xbf16>
    %15 = vector.shape_cast %14 : vector<1x1x4x2xbf16> to vector<4x2xbf16>
    %cst_15 = arith.constant dense<0.000000e+00> : vector<4x896xf32>
    %16 = tpu.matmul %15, %13, %cst_15 {dimension_numbers = #tpu.dot_dimension_numbers<[1], [0], [0], [1], [0, 0, 1, 1], [], []>} : vector<4x2xbf16>, vector<2x896xbf16>, vector<4x896xf32> -> vector<4x896xf32>
    %17 = arith.addf %12, %16 : vector<4x896xf32>
    %18 = vector.extract_strided_slice %1 {offsets = [0, 10], sizes = [2, 896], strides = [1, 1]} : vector<2x1152xbf16> to vector<2x896xbf16>
    %c0_16 = arith.constant 0 : index
    %c3 = arith.constant 3 : index
    %c0_17 = arith.constant 0 : index
    %c0_18 = arith.constant 0 : index
    %19 = vector.load %arg3[%c0_16, %c3, %c0_17, %c0_18] : memref<1x27x4x2xbf16, #tpu.memory_space<vmem>>, vector<1x1x4x2xbf16>
    %20 = vector.shape_cast %19 : vector<1x1x4x2xbf16> to vector<4x2xbf16>
    %cst_19 = arith.constant dense<0.000000e+00> : vector<4x896xf32>
    %21 = tpu.matmul %20, %18, %cst_19 {dimension_numbers = #tpu.dot_dimension_numbers<[1], [0], [0], [1], [0, 0, 1, 1], [], []>} : vector<4x2xbf16>, vector<2x896xbf16>, vector<4x896xf32> -> vector<4x896xf32>
    %22 = arith.addf %17, %21 : vector<4x896xf32>
    %23 = vector.extract_strided_slice %1 {offsets = [0, 11], sizes = [2, 896], strides = [1, 1]} : vector<2x1152xbf16> to vector<2x896xbf16>
    %c0_20 = arith.constant 0 : index
    %c4 = arith.constant 4 : index
    %c0_21 = arith.constant 0 : index
    %c0_22 = arith.constant 0 : index
    %24 = vector.load %arg3[%c0_20, %c4, %c0_21, %c0_22] : memref<1x27x4x2xbf16, #tpu.memory_space<vmem>>, vector<1x1x4x2xbf16>
    %25 = vector.shape_cast %24 : vector<1x1x4x2xbf16> to vector<4x2xbf16>
    %cst_23 = arith.constant dense<0.000000e+00> : vector<4x896xf32>
    %26 = tpu.matmul %25, %23, %cst_23 {dimension_numbers = #tpu.dot_dimension_numbers<[1], [0], [0], [1], [0, 0, 1, 1], [], []>} : vector<4x2xbf16>, vector<2x896xbf16>, vector<4x896xf32> -> vector<4x896xf32>
    %27 = arith.addf %22, %26 : vector<4x896xf32>
    %28 = vector.extract_strided_slice %1 {offsets = [0, 12], sizes = [2, 896], strides = [1, 1]} : vector<2x1152xbf16> to vector<2x896xbf16>
    %c0_24 = arith.constant 0 : index
    %c5 = arith.constant 5 : index
    %c0_25 = arith.constant 0 : index
    %c0_26 = arith.constant 0 : index
    %29 = vector.load %arg3[%c0_24, %c5, %c0_25, %c0_26] : memref<1x27x4x2xbf16, #tpu.memory_space<vmem>>, vector<1x1x4x2xbf16>
    %30 = vector.shape_cast %29 : vector<1x1x4x2xbf16> to vector<4x2xbf16>
    %cst_27 = arith.constant dense<0.000000e+00> : vector<4x896xf32>
    %31 = tpu.matmul %30, %28, %cst_27 {dimension_numbers = #tpu.dot_dimension_numbers<[1], [0], [0], [1], [0, 0, 1, 1], [], []>} : vector<4x2xbf16>, vector<2x896xbf16>, vector<4x896xf32> -> vector<4x896xf32>
    %32 = arith.addf %27, %31 : vector<4x896xf32>
    %33 = vector.extract_strided_slice %1 {offsets = [0, 20], sizes = [2, 896], strides = [1, 1]} : vector<2x1152xbf16> to vector<2x896xbf16>
    %c0_28 = arith.constant 0 : index
    %c6 = arith.constant 6 : index
    %c0_29 = arith.constant 0 : index
    %c0_30 = arith.constant 0 : index
    %34 = vector.load %arg3[%c0_28, %c6, %c0_29, %c0_30] : memref<1x27x4x2xbf16, #tpu.memory_space<vmem>>, vector<1x1x4x2xbf16>
    %35 = vector.shape_cast %34 : vector<1x1x4x2xbf16> to vector<4x2xbf16>
    %cst_31 = arith.constant dense<0.000000e+00> : vector<4x896xf32>
    %36 = tpu.matmul %35, %33, %cst_31 {dimension_numbers = #tpu.dot_dimension_numbers<[1], [0], [0], [1], [0, 0, 1, 1], [], []>} : vector<4x2xbf16>, vector<2x896xbf16>, vector<4x896xf32> -> vector<4x896xf32>
    %37 = arith.addf %32, %36 : vector<4x896xf32>
    %38 = vector.extract_strided_slice %1 {offsets = [0, 21], sizes = [2, 896], strides = [1, 1]} : vector<2x1152xbf16> to vector<2x896xbf16>
    %c0_32 = arith.constant 0 : index
    %c7 = arith.constant 7 : index
    %c0_33 = arith.constant 0 : index
    %c0_34 = arith.constant 0 : index
    %39 = vector.load %arg3[%c0_32, %c7, %c0_33, %c0_34] : memref<1x27x4x2xbf16, #tpu.memory_space<vmem>>, vector<1x1x4x2xbf16>
    %40 = vector.shape_cast %39 : vector<1x1x4x2xbf16> to vector<4x2xbf16>
    %cst_35 = arith.constant dense<0.000000e+00> : vector<4x896xf32>
    %41 = tpu.matmul %40, %38, %cst_35 {dimension_numbers = #tpu.dot_dimension_numbers<[1], [0], [0], [1], [0, 0, 1, 1], [], []>} : vector<4x2xbf16>, vector<2x896xbf16>, vector<4x896xf32> -> vector<4x896xf32>
    %42 = arith.addf %37, %41 : vector<4x896xf32>
    %43 = vector.extract_strided_slice %1 {offsets = [0, 22], sizes = [2, 896], strides = [1, 1]} : vector<2x1152xbf16> to vector<2x896xbf16>
    %c0_36 = arith.constant 0 : index
    %c8 = arith.constant 8 : index
    %c0_37 = arith.constant 0 : index
    %c0_38 = arith.constant 0 : index
    %44 = vector.load %arg3[%c0_36, %c8, %c0_37, %c0_38] : memref<1x27x4x2xbf16, #tpu.memory_space<vmem>>, vector<1x1x4x2xbf16>
    %45 = vector.shape_cast %44 : vector<1x1x4x2xbf16> to vector<4x2xbf16>
    %cst_39 = arith.constant dense<0.000000e+00> : vector<4x896xf32>
    %46 = tpu.matmul %45, %43, %cst_39 {dimension_numbers = #tpu.dot_dimension_numbers<[1], [0], [0], [1], [0, 0, 1, 1], [], []>} : vector<4x2xbf16>, vector<2x896xbf16>, vector<4x896xf32> -> vector<4x896xf32>
    %47 = arith.addf %42, %46 : vector<4x896xf32>
    %48 = vector.extract_strided_slice %1 {offsets = [0, 100], sizes = [2, 896], strides = [1, 1]} : vector<2x1152xbf16> to vector<2x896xbf16>
    %c0_40 = arith.constant 0 : index
    %c9 = arith.constant 9 : index
    %c0_41 = arith.constant 0 : index
    %c0_42 = arith.constant 0 : index
    %49 = vector.load %arg3[%c0_40, %c9, %c0_41, %c0_42] : memref<1x27x4x2xbf16, #tpu.memory_space<vmem>>, vector<1x1x4x2xbf16>
    %50 = vector.shape_cast %49 : vector<1x1x4x2xbf16> to vector<4x2xbf16>
    %cst_43 = arith.constant dense<0.000000e+00> : vector<4x896xf32>
    %51 = tpu.matmul %50, %48, %cst_43 {dimension_numbers = #tpu.dot_dimension_numbers<[1], [0], [0], [1], [0, 0, 1, 1], [], []>} : vector<4x2xbf16>, vector<2x896xbf16>, vector<4x896xf32> -> vector<4x896xf32>
    %52 = arith.addf %47, %51 : vector<4x896xf32>
    %53 = vector.extract_strided_slice %1 {offsets = [0, 101], sizes = [2, 896], strides = [1, 1]} : vector<2x1152xbf16> to vector<2x896xbf16>
    %c0_44 = arith.constant 0 : index
    %c10 = arith.constant 10 : index
    %c0_45 = arith.constant 0 : index
    %c0_46 = arith.constant 0 : index
    %54 = vector.load %arg3[%c0_44, %c10, %c0_45, %c0_46] : memref<1x27x4x2xbf16, #tpu.memory_space<vmem>>, vector<1x1x4x2xbf16>
    %55 = vector.shape_cast %54 : vector<1x1x4x2xbf16> to vector<4x2xbf16>
    %cst_47 = arith.constant dense<0.000000e+00> : vector<4x896xf32>
    %56 = tpu.matmul %55, %53, %cst_47 {dimension_numbers = #tpu.dot_dimension_numbers<[1], [0], [0], [1], [0, 0, 1, 1], [], []>} : vector<4x2xbf16>, vector<2x896xbf16>, vector<4x896xf32> -> vector<4x896xf32>
    %57 = arith.addf %52, %56 : vector<4x896xf32>
    %58 = vector.extract_strided_slice %1 {offsets = [0, 102], sizes = [2, 896], strides = [1, 1]} : vector<2x1152xbf16> to vector<2x896xbf16>
    %c0_48 = arith.constant 0 : index
    %c11 = arith.constant 11 : index
    %c0_49 = arith.constant 0 : index
    %c0_50 = arith.constant 0 : index
    %59 = vector.load %arg3[%c0_48, %c11, %c0_49, %c0_50] : memref<1x27x4x2xbf16, #tpu.memory_space<vmem>>, vector<1x1x4x2xbf16>
    %60 = vector.shape_cast %59 : vector<1x1x4x2xbf16> to vector<4x2xbf16>
    %cst_51 = arith.constant dense<0.000000e+00> : vector<4x896xf32>
    %61 = tpu.matmul %60, %58, %cst_51 {dimension_numbers = #tpu.dot_dimension_numbers<[1], [0], [0], [1], [0, 0, 1, 1], [], []>} : vector<4x2xbf16>, vector<2x896xbf16>, vector<4x896xf32> -> vector<4x896xf32>
    %62 = arith.addf %57, %61 : vector<4x896xf32>
    %63 = vector.extract_strided_slice %1 {offsets = [0, 110], sizes = [2, 896], strides = [1, 1]} : vector<2x1152xbf16> to vector<2x896xbf16>
    %c0_52 = arith.constant 0 : index
    %c12 = arith.constant 12 : index
    %c0_53 = arith.constant 0 : index
    %c0_54 = arith.constant 0 : index
    %64 = vector.load %arg3[%c0_52, %c12, %c0_53, %c0_54] : memref<1x27x4x2xbf16, #tpu.memory_space<vmem>>, vector<1x1x4x2xbf16>
    %65 = vector.shape_cast %64 : vector<1x1x4x2xbf16> to vector<4x2xbf16>
    %cst_55 = arith.constant dense<0.000000e+00> : vector<4x896xf32>
    %66 = tpu.matmul %65, %63, %cst_55 {dimension_numbers = #tpu.dot_dimension_numbers<[1], [0], [0], [1], [0, 0, 1, 1], [], []>} : vector<4x2xbf16>, vector<2x896xbf16>, vector<4x896xf32> -> vector<4x896xf32>
    %67 = arith.addf %62, %66 : vector<4x896xf32>
    %68 = vector.extract_strided_slice %1 {offsets = [0, 111], sizes = [2, 896], strides = [1, 1]} : vector<2x1152xbf16> to vector<2x896xbf16>
    %c0_56 = arith.constant 0 : index
    %c13 = arith.constant 13 : index
    %c0_57 = arith.constant 0 : index
    %c0_58 = arith.constant 0 : index
    %69 = vector.load %arg3[%c0_56, %c13, %c0_57, %c0_58] : memref<1x27x4x2xbf16, #tpu.memory_space<vmem>>, vector<1x1x4x2xbf16>
    %70 = vector.shape_cast %69 : vector<1x1x4x2xbf16> to vector<4x2xbf16>
    %cst_59 = arith.constant dense<0.000000e+00> : vector<4x896xf32>
    %71 = tpu.matmul %70, %68, %cst_59 {dimension_numbers = #tpu.dot_dimension_numbers<[1], [0], [0], [1], [0, 0, 1, 1], [], []>} : vector<4x2xbf16>, vector<2x896xbf16>, vector<4x896xf32> -> vector<4x896xf32>
    %72 = arith.addf %67, %71 : vector<4x896xf32>
    %73 = vector.extract_strided_slice %1 {offsets = [0, 112], sizes = [2, 896], strides = [1, 1]} : vector<2x1152xbf16> to vector<2x896xbf16>
    %c0_60 = arith.constant 0 : index
    %c14 = arith.constant 14 : index
    %c0_61 = arith.constant 0 : index
    %c0_62 = arith.constant 0 : index
    %74 = vector.load %arg3[%c0_60, %c14, %c0_61, %c0_62] : memref<1x27x4x2xbf16, #tpu.memory_space<vmem>>, vector<1x1x4x2xbf16>
    %75 = vector.shape_cast %74 : vector<1x1x4x2xbf16> to vector<4x2xbf16>
    %cst_63 = arith.constant dense<0.000000e+00> : vector<4x896xf32>
    %76 = tpu.matmul %75, %73, %cst_63 {dimension_numbers = #tpu.dot_dimension_numbers<[1], [0], [0], [1], [0, 0, 1, 1], [], []>} : vector<4x2xbf16>, vector<2x896xbf16>, vector<4x896xf32> -> vector<4x896xf32>
    %77 = arith.addf %72, %76 : vector<4x896xf32>
    %78 = vector.extract_strided_slice %1 {offsets = [0, 120], sizes = [2, 896], strides = [1, 1]} : vector<2x1152xbf16> to vector<2x896xbf16>
    %c0_64 = arith.constant 0 : index
    %c15 = arith.constant 15 : index
    %c0_65 = arith.constant 0 : index
    %c0_66 = arith.constant 0 : index
    %79 = vector.load %arg3[%c0_64, %c15, %c0_65, %c0_66] : memref<1x27x4x2xbf16, #tpu.memory_space<vmem>>, vector<1x1x4x2xbf16>
    %80 = vector.shape_cast %79 : vector<1x1x4x2xbf16> to vector<4x2xbf16>
    %cst_67 = arith.constant dense<0.000000e+00> : vector<4x896xf32>
    %81 = tpu.matmul %80, %78, %cst_67 {dimension_numbers = #tpu.dot_dimension_numbers<[1], [0], [0], [1], [0, 0, 1, 1], [], []>} : vector<4x2xbf16>, vector<2x896xbf16>, vector<4x896xf32> -> vector<4x896xf32>
    %82 = arith.addf %77, %81 : vector<4x896xf32>
    %83 = vector.extract_strided_slice %1 {offsets = [0, 121], sizes = [2, 896], strides = [1, 1]} : vector<2x1152xbf16> to vector<2x896xbf16>
    %c0_68 = arith.constant 0 : index
    %c16 = arith.constant 16 : index
    %c0_69 = arith.constant 0 : index
    %c0_70 = arith.constant 0 : index
    %84 = vector.load %arg3[%c0_68, %c16, %c0_69, %c0_70] : memref<1x27x4x2xbf16, #tpu.memory_space<vmem>>, vector<1x1x4x2xbf16>
    %85 = vector.shape_cast %84 : vector<1x1x4x2xbf16> to vector<4x2xbf16>
    %cst_71 = arith.constant dense<0.000000e+00> : vector<4x896xf32>
    %86 = tpu.matmul %85, %83, %cst_71 {dimension_numbers = #tpu.dot_dimension_numbers<[1], [0], [0], [1], [0, 0, 1, 1], [], []>} : vector<4x2xbf16>, vector<2x896xbf16>, vector<4x896xf32> -> vector<4x896xf32>
    %87 = arith.addf %82, %86 : vector<4x896xf32>
    %88 = vector.extract_strided_slice %1 {offsets = [0, 122], sizes = [2, 896], strides = [1, 1]} : vector<2x1152xbf16> to vector<2x896xbf16>
    %c0_72 = arith.constant 0 : index
    %c17 = arith.constant 17 : index
    %c0_73 = arith.constant 0 : index
    %c0_74 = arith.constant 0 : index
    %89 = vector.load %arg3[%c0_72, %c17, %c0_73, %c0_74] : memref<1x27x4x2xbf16, #tpu.memory_space<vmem>>, vector<1x1x4x2xbf16>
    %90 = vector.shape_cast %89 : vector<1x1x4x2xbf16> to vector<4x2xbf16>
    %cst_75 = arith.constant dense<0.000000e+00> : vector<4x896xf32>
    %91 = tpu.matmul %90, %88, %cst_75 {dimension_numbers = #tpu.dot_dimension_numbers<[1], [0], [0], [1], [0, 0, 1, 1], [], []>} : vector<4x2xbf16>, vector<2x896xbf16>, vector<4x896xf32> -> vector<4x896xf32>
    %92 = arith.addf %87, %91 : vector<4x896xf32>
    %93 = vector.extract_strided_slice %1 {offsets = [0, 200], sizes = [2, 896], strides = [1, 1]} : vector<2x1152xbf16> to vector<2x896xbf16>
    %c0_76 = arith.constant 0 : index
    %c18 = arith.constant 18 : index
    %c0_77 = arith.constant 0 : index
    %c0_78 = arith.constant 0 : index
    %94 = vector.load %arg3[%c0_76, %c18, %c0_77, %c0_78] : memref<1x27x4x2xbf16, #tpu.memory_space<vmem>>, vector<1x1x4x2xbf16>
    %95 = vector.shape_cast %94 : vector<1x1x4x2xbf16> to vector<4x2xbf16>
    %cst_79 = arith.constant dense<0.000000e+00> : vector<4x896xf32>
    %96 = tpu.matmul %95, %93, %cst_79 {dimension_numbers = #tpu.dot_dimension_numbers<[1], [0], [0], [1], [0, 0, 1, 1], [], []>} : vector<4x2xbf16>, vector<2x896xbf16>, vector<4x896xf32> -> vector<4x896xf32>
    %97 = arith.addf %92, %96 : vector<4x896xf32>
    %98 = vector.extract_strided_slice %1 {offsets = [0, 201], sizes = [2, 896], strides = [1, 1]} : vector<2x1152xbf16> to vector<2x896xbf16>
    %c0_80 = arith.constant 0 : index
    %c19 = arith.constant 19 : index
    %c0_81 = arith.constant 0 : index
    %c0_82 = arith.constant 0 : index
    %99 = vector.load %arg3[%c0_80, %c19, %c0_81, %c0_82] : memref<1x27x4x2xbf16, #tpu.memory_space<vmem>>, vector<1x1x4x2xbf16>
    %100 = vector.shape_cast %99 : vector<1x1x4x2xbf16> to vector<4x2xbf16>
    %cst_83 = arith.constant dense<0.000000e+00> : vector<4x896xf32>
    %101 = tpu.matmul %100, %98, %cst_83 {dimension_numbers = #tpu.dot_dimension_numbers<[1], [0], [0], [1], [0, 0, 1, 1], [], []>} : vector<4x2xbf16>, vector<2x896xbf16>, vector<4x896xf32> -> vector<4x896xf32>
    %102 = arith.addf %97, %101 : vector<4x896xf32>
    %103 = vector.extract_strided_slice %1 {offsets = [0, 202], sizes = [2, 896], strides = [1, 1]} : vector<2x1152xbf16> to vector<2x896xbf16>
    %c0_84 = arith.constant 0 : index
    %c20 = arith.constant 20 : index
    %c0_85 = arith.constant 0 : index
    %c0_86 = arith.constant 0 : index
    %104 = vector.load %arg3[%c0_84, %c20, %c0_85, %c0_86] : memref<1x27x4x2xbf16, #tpu.memory_space<vmem>>, vector<1x1x4x2xbf16>
    %105 = vector.shape_cast %104 : vector<1x1x4x2xbf16> to vector<4x2xbf16>
    %cst_87 = arith.constant dense<0.000000e+00> : vector<4x896xf32>
    %106 = tpu.matmul %105, %103, %cst_87 {dimension_numbers = #tpu.dot_dimension_numbers<[1], [0], [0], [1], [0, 0, 1, 1], [], []>} : vector<4x2xbf16>, vector<2x896xbf16>, vector<4x896xf32> -> vector<4x896xf32>
    %107 = arith.addf %102, %106 : vector<4x896xf32>
    %108 = vector.extract_strided_slice %1 {offsets = [0, 210], sizes = [2, 896], strides = [1, 1]} : vector<2x1152xbf16> to vector<2x896xbf16>
    %c0_88 = arith.constant 0 : index
    %c21 = arith.constant 21 : index
    %c0_89 = arith.constant 0 : index
    %c0_90 = arith.constant 0 : index
    %109 = vector.load %arg3[%c0_88, %c21, %c0_89, %c0_90] : memref<1x27x4x2xbf16, #tpu.memory_space<vmem>>, vector<1x1x4x2xbf16>
    %110 = vector.shape_cast %109 : vector<1x1x4x2xbf16> to vector<4x2xbf16>
    %cst_91 = arith.constant dense<0.000000e+00> : vector<4x896xf32>
    %111 = tpu.matmul %110, %108, %cst_91 {dimension_numbers = #tpu.dot_dimension_numbers<[1], [0], [0], [1], [0, 0, 1, 1], [], []>} : vector<4x2xbf16>, vector<2x896xbf16>, vector<4x896xf32> -> vector<4x896xf32>
    %112 = arith.addf %107, %111 : vector<4x896xf32>
    %113 = vector.extract_strided_slice %1 {offsets = [0, 211], sizes = [2, 896], strides = [1, 1]} : vector<2x1152xbf16> to vector<2x896xbf16>
    %c0_92 = arith.constant 0 : index
    %c22 = arith.constant 22 : index
    %c0_93 = arith.constant 0 : index
    %c0_94 = arith.constant 0 : index
    %114 = vector.load %arg3[%c0_92, %c22, %c0_93, %c0_94] : memref<1x27x4x2xbf16, #tpu.memory_space<vmem>>, vector<1x1x4x2xbf16>
    %115 = vector.shape_cast %114 : vector<1x1x4x2xbf16> to vector<4x2xbf16>
    %cst_95 = arith.constant dense<0.000000e+00> : vector<4x896xf32>
    %116 = tpu.matmul %115, %113, %cst_95 {dimension_numbers = #tpu.dot_dimension_numbers<[1], [0], [0], [1], [0, 0, 1, 1], [], []>} : vector<4x2xbf16>, vector<2x896xbf16>, vector<4x896xf32> -> vector<4x896xf32>
    %117 = arith.addf %112, %116 : vector<4x896xf32>
    %118 = vector.extract_strided_slice %1 {offsets = [0, 212], sizes = [2, 896], strides = [1, 1]} : vector<2x1152xbf16> to vector<2x896xbf16>
    %c0_96 = arith.constant 0 : index
    %c23 = arith.constant 23 : index
    %c0_97 = arith.constant 0 : index
    %c0_98 = arith.constant 0 : index
    %119 = vector.load %arg3[%c0_96, %c23, %c0_97, %c0_98] : memref<1x27x4x2xbf16, #tpu.memory_space<vmem>>, vector<1x1x4x2xbf16>
    %120 = vector.shape_cast %119 : vector<1x1x4x2xbf16> to vector<4x2xbf16>
    %cst_99 = arith.constant dense<0.000000e+00> : vector<4x896xf32>
    %121 = tpu.matmul %120, %118, %cst_99 {dimension_numbers = #tpu.dot_dimension_numbers<[1], [0], [0], [1], [0, 0, 1, 1], [], []>} : vector<4x2xbf16>, vector<2x896xbf16>, vector<4x896xf32> -> vector<4x896xf32>
    %122 = arith.addf %117, %121 : vector<4x896xf32>
    %123 = vector.extract_strided_slice %1 {offsets = [0, 220], sizes = [2, 896], strides = [1, 1]} : vector<2x1152xbf16> to vector<2x896xbf16>
    %c0_100 = arith.constant 0 : index
    %c24 = arith.constant 24 : index
    %c0_101 = arith.constant 0 : index
    %c0_102 = arith.constant 0 : index
    %124 = vector.load %arg3[%c0_100, %c24, %c0_101, %c0_102] : memref<1x27x4x2xbf16, #tpu.memory_space<vmem>>, vector<1x1x4x2xbf16>
    %125 = vector.shape_cast %124 : vector<1x1x4x2xbf16> to vector<4x2xbf16>
    %cst_103 = arith.constant dense<0.000000e+00> : vector<4x896xf32>
    %126 = tpu.matmul %125, %123, %cst_103 {dimension_numbers = #tpu.dot_dimension_numbers<[1], [0], [0], [1], [0, 0, 1, 1], [], []>} : vector<4x2xbf16>, vector<2x896xbf16>, vector<4x896xf32> -> vector<4x896xf32>
    %127 = arith.addf %122, %126 : vector<4x896xf32>
    %128 = vector.extract_strided_slice %1 {offsets = [0, 221], sizes = [2, 896], strides = [1, 1]} : vector<2x1152xbf16> to vector<2x896xbf16>
    %c0_104 = arith.constant 0 : index
    %c25 = arith.constant 25 : index
    %c0_105 = arith.constant 0 : index
    %c0_106 = arith.constant 0 : index
    %129 = vector.load %arg3[%c0_104, %c25, %c0_105, %c0_106] : memref<1x27x4x2xbf16, #tpu.memory_space<vmem>>, vector<1x1x4x2xbf16>
    %130 = vector.shape_cast %129 : vector<1x1x4x2xbf16> to vector<4x2xbf16>
    %cst_107 = arith.constant dense<0.000000e+00> : vector<4x896xf32>
    %131 = tpu.matmul %130, %128, %cst_107 {dimension_numbers = #tpu.dot_dimension_numbers<[1], [0], [0], [1], [0, 0, 1, 1], [], []>} : vector<4x2xbf16>, vector<2x896xbf16>, vector<4x896xf32> -> vector<4x896xf32>
    %132 = arith.addf %127, %131 : vector<4x896xf32>
    %133 = vector.extract_strided_slice %1 {offsets = [0, 222], sizes = [2, 896], strides = [1, 1]} : vector<2x1152xbf16> to vector<2x896xbf16>
    %c0_108 = arith.constant 0 : index
    %c26 = arith.constant 26 : index
    %c0_109 = arith.constant 0 : index
    %c0_110 = arith.constant 0 : index
    %134 = vector.load %arg3[%c0_108, %c26, %c0_109, %c0_110] : memref<1x27x4x2xbf16, #tpu.memory_space<vmem>>, vector<1x1x4x2xbf16>
    %135 = vector.shape_cast %134 : vector<1x1x4x2xbf16> to vector<4x2xbf16>
    %cst_111 = arith.constant dense<0.000000e+00> : vector<4x896xf32>
    %136 = tpu.matmul %135, %133, %cst_111 {dimension_numbers = #tpu.dot_dimension_numbers<[1], [0], [0], [1], [0, 0, 1, 1], [], []>} : vector<4x2xbf16>, vector<2x896xbf16>, vector<4x896xf32> -> vector<4x896xf32>
    %137 = arith.addf %132, %136 : vector<4x896xf32>
    %c0_112 = arith.constant 0 : index
    %c0_113 = arith.constant 0 : index
    %138 = vector.load %arg5[%c0_112, %c0_113] : memref<1x896xf32, #tpu.memory_space<vmem>>, vector<1x896xf32>
    %139 = vector.broadcast %138 : vector<1x896xf32> to vector<4x896xf32>
    %140 = arith.mulf %137, %139 : vector<4x896xf32>
    %cst_114 = arith.constant dense<0.000000e+00> : vector<4xf32>
    %141 = vector.multi_reduction <add>, %140, %cst_114 [1] : vector<4x896xf32> to vector<4xf32>
    %142 = vector.shape_cast %141 : vector<4xf32> to vector<4x1xf32>
    %143 = arith.mulf %140, %137 : vector<4x896xf32>
    %cst_115 = arith.constant dense<0.000000e+00> : vector<4xf32>
    %144 = vector.multi_reduction <add>, %143, %cst_115 [1] : vector<4x896xf32> to vector<4xf32>
    %145 = vector.shape_cast %144 : vector<4xf32> to vector<4x1xf32>
    %cst_116 = arith.constant 0.001953125 : f32
    %146 = vector.broadcast %cst_116 : f32 to vector<4x1xf32>
    %147 = arith.mulf %142, %146 : vector<4x1xf32>
    %cst_117 = arith.constant 0.001953125 : f32
    %148 = vector.broadcast %cst_117 : f32 to vector<4x1xf32>
    %149 = arith.mulf %145, %148 : vector<4x1xf32>
    %150 = arith.mulf %147, %147 : vector<4x1xf32>
    %151 = arith.subf %149, %150 : vector<4x1xf32>
    %cst_118 = arith.constant 0.000000e+00 : f32
    %152 = vector.broadcast %cst_118 : f32 to vector<4x1xf32>
    %153 = arith.maximumf %151, %152 : vector<4x1xf32>
    %c0_119 = arith.constant 0 : index
    %c0_120 = arith.constant 0 : index
    %c0_121 = arith.constant 0 : index
    %154 = vector.load %arg4[%c0_119, %c0_120, %c0_121] : memref<1x4x2xf32, #tpu.memory_space<vmem>>, vector<1x4x1xf32>
    %155 = vector.shape_cast %154 : vector<1x4x1xf32> to vector<4x1xf32>
    %c0_122 = arith.constant 0 : index
    %c0_123 = arith.constant 0 : index
    %c1_124 = arith.constant 1 : index
    %156 = vector.load %arg4[%c0_122, %c0_123, %c1_124] : memref<1x4x2xf32, #tpu.memory_space<vmem>>, vector<1x4x1xf32>
    %157 = vector.shape_cast %156 : vector<1x4x1xf32> to vector<4x1xf32>
    %cst_125 = arith.constant 9.99999974E-6 : f32
    %158 = vector.broadcast %cst_125 : f32 to vector<4x1xf32>
    %159 = arith.addf %153, %158 : vector<4x1xf32>
    %160 = math.rsqrt %159 : vector<4x1xf32>
    %161 = arith.mulf %155, %160 : vector<4x1xf32>
    %162 = arith.mulf %147, %161 : vector<4x1xf32>
    %163 = arith.subf %157, %162 : vector<4x1xf32>
    %164 = vector.broadcast %161 : vector<4x1xf32> to vector<4x896xf32>
    %165 = arith.mulf %137, %164 : vector<4x896xf32>
    %166 = vector.broadcast %163 : vector<4x1xf32> to vector<4x896xf32>
    %167 = arith.addf %165, %166 : vector<4x896xf32>
    %cst_126 = arith.constant 0.000000e+00 : f32
    %168 = vector.broadcast %cst_126 : f32 to vector<4x896xf32>
    %169 = arith.maximumf %167, %168 : vector<4x896xf32>
    %c0_127 = arith.constant 0 : index
    %c0_128 = arith.constant 0 : index
    %c0_129 = arith.constant 0 : index
    %c0_130 = arith.constant 0 : index
    %170 = vector.load %arg6[%c0_127, %c0_128, %c0_129, %c0_130] : memref<1x1x4x896xf32, #tpu.memory_space<vmem>>, vector<1x1x4x896xf32>
    %171 = vector.shape_cast %170 : vector<1x1x4x896xf32> to vector<4x896xf32>
    %172 = vector.shape_cast %169 : vector<4x896xf32> to vector<1x1x4x896xf32>
    tpu.vector_store %arg6[%c0_127, %c0_128, %c0_129, %c0_130], %172 {strides = array<i32>} : memref<1x1x4x896xf32, #tpu.memory_space<vmem>>, vector<1x1x4x896xf32>,
    return
  }
  func.func @transform_0(%arg0: i32, %arg1: i32) -> (i32, i32, i32, i32) {
    %c0_i32 = arith.constant 0 : i32
    %c0_i32_0 = arith.constant 0 : i32
    %c0_i32_1 = arith.constant 0 : i32
    return %arg1, %arg0, %c0_i32, %c0_i32_0 : i32, i32, i32, i32
  }
  func.func @transform_1(%arg0: i32, %arg1: i32) -> (i32, i32, i32, i32) {
    %c0_i32 = arith.constant 0 : i32
    %c0_i32_0 = arith.constant 0 : i32
    %c0_i32_1 = arith.constant 0 : i32
    %c0_i32_2 = arith.constant 0 : i32
    return %arg0, %c0_i32, %c0_i32_0, %c0_i32_1 : i32, i32, i32, i32
  }
  func.func @transform_2(%arg0: i32, %arg1: i32) -> (i32, i32, i32) {
    %c0_i32 = arith.constant 0 : i32
    %c0_i32_0 = arith.constant 0 : i32
    %c0_i32_1 = arith.constant 0 : i32
    return %arg0, %c0_i32, %c0_i32_0 : i32, i32, i32
  }
  func.func @transform_3(%arg0: i32, %arg1: i32) -> (i32, i32) {
    %c0_i32 = arith.constant 0 : i32
    %c0_i32_0 = arith.constant 0 : i32
    %c0_i32_1 = arith.constant 0 : i32
    return %c0_i32, %c0_i32_0 : i32, i32
  }
  func.func @transform_4(%arg0: i32, %arg1: i32) -> (i32, i32, i32, i32) {
    %c0_i32 = arith.constant 0 : i32
    %c0_i32_0 = arith.constant 0 : i32
    %c0_i32_1 = arith.constant 0 : i32
    return %arg1, %arg0, %c0_i32, %c0_i32_0 : i32, i32, i32, i32
  }
}

</mosaic_0001>

<bundles_post_ra>
// kernel: single_conv_pallas.1
= control target key start
LH: loop header
LB: loop body
LE: loop exit
PB: predicated region body
PF: predicated region fallthrough
CT: control target
= control target key end

     0   :  { %s7120_s15 = smov 0   ;;  %s7122_s16 = smov 0   ;;  %s8549_s0 = inlined_call_operand.vmem [shape: bf16[2,2,2,1152], index: 0, kind: input, shape index: {}]   ;;  %s8550_s1 = inlined_call_operand.vmem [shape: bf16[2,27,4,2], index: 1, kind: input, shape index: {}]   ;;  %s8551_s2 = inlined_call_operand.vmem [shape: f32[2,4,2], index: 2, kind: input, shape index: {}]   ;;  %s8552_s3 = inlined_call_operand.vmem [shape: f32[1,896], index: 3, kind: input, shape index: {}]   ;;  %s8553_s4 = inlined_call_operand.vmem [shape: f32[2,2,4,896], index: 4, kind: output, shape index: {}]  }
   0x1   :  { %s7124_s17 = smov 0   ;;  %s7126_s18 = smov 0  }
   0x2   :  { %s7128_s19 = smov 0  }
   0x3 LB: > { %s23_s20 = sadd.s32 1, %s7053_s17  ;;  %s26_s21 = sadd.s32 1, %s7057_s18  ;;  %s7061_s19 = sphi %s7128_s19, %s14_s19   ;;  %s7057_s18 = sphi %s7126_s18, %s8557_s18   ;;  %s7053_s17 = sphi %s7124_s17, %s8556_s17   ;;  %s7049_s16 = sphi %s7122_s16, %s8555_s16   ;;  %s7045_s15 = sphi %s7120_s15, %s8554_s15  }
   0x4   : > { %p24_p0 = scmp.ge.s32.totalorder %s23_s20, 2  ;;  %p6503_p1 = scmp.ge.s32.totalorder %s7061_s19, 1 }
   0x5   : > { %p200_p2 = scmp.lt.s32.totalorder %s7061_s19, 5 }
   0x6   : > { %s8559_s20 = smov (%p24_p0, %s23_s20), 0  ;;  %s8561_s21 = smov (!%p24_p0, %s26_s21), %s7057_s18 }
   0x7   : > { %p201_p3 = pnand %p6503_p1, %p200_p2  ;;  %p28_p4 = scmp.ge.s32.totalorder %s8561_s21, 2 }
   0x8   : > { %p242_p5 = scmp.lt.s32.totalorder (!%p201_p3), %s7045_s15, 1  ;;  %p244_p6 = scmp.lt.s32.totalorder (!%p201_p3), %s7049_s16, 1 }
   0x9   : > { %s8563_s21 = smov (%p28_p4, %s8561_s21), 0  ;;  %204 = sbr.rel (%p201_p3) target bundleno = 1193 (0x4a9), region = 36 }
   0xa   : > { %s7065_s28 = smov (!%p201_p3), 127   ;;  %s7066_s29 = smov (!%p201_p3), 126  }
   0xb   : > { %s7067_s30 = smov (!%p201_p3), 118   ;;  %s7068_s5 = smov (!%p201_p3), 117  }
   0xc   : > { %s7069_s6 = smov (!%p201_p3), 116   ;;  %s7070_s7 = smov (!%p201_p3), 108  }
   0xd   : > { %s7071_s8 = smov (!%p201_p3), 107   ;;  %s7072_s9 = smov (!%p201_p3), 106  }
   0xe   : > { %v279_v0 = vlaneseq  ;;  %v7063_v1 = vmov 1966171168   ;;  %s8565_s15 = smov (!%p242_p5, %s7045_s15), 1  ;;  %s8567_s16 = smov (!%p244_p6, %s7049_s16), 1  ;;  %v7064_v7 = vmov 0   ;;  %vm340_vm0 = vcmask 1039360  }
   0xf   : > { %v277_v2 = vunpack.c.l.s4 %v7063_v1  ;;  %s6942_s22 = smul.u32 18, %s8565_s15  ;;  %406 = vmatprep.mubr.bf16.mxu0 %v7064_v7  ;;  %447 = vmatprep.mubr.bf16.mxu1 %v7064_v7  ;;  %vm352_vm1 = vcmask 1040384   ;;  %vm348_vm2 = vcmask 15360   ;;  %v7073_v36 = vmov 0.0   ;;  %s7075_s14 = smov 28  }
  0x10   : > { %v7152_v3 = vshrl.u32 %v279_v0, 7  ;;  %s6941_s23 = smul.u32 9, %s8567_s16  ;;  %7018 = vset.pattern.permute.xlu1 %v7064_v7  ;;  %vm7074_vm3 = vmmov 0   ;;  %vm742_vm4 = vcmask 1031168   ;;  %vm962_vm5 = vcmask 965632   ;;  %s7079_s25 = smov 17  }
  0x11   : > { %v278_v4 = vunpack.c.0.s8 %v277_v2  ;;  %s6943_s10 = smul.u32 54, %s8567_s16  ;;  %vm1182_vm6 = vcmask 957440   ;;  %vm1402_vm7 = vcmask 949248   ;;  %vm1622_vm8 = vcmask 883712   ;;  %s7080_s26 = smov 16  }
  0x12   : > { %s248_s24 = sadd.s32 %s6942_s22, %s6941_s23  ;;  %s7076_s22 = smov 27   ;;  %vm1842_vm9 = vcmask 875520   ;;  %vm2062_vm10 = vcmask 867328   ;;  %vm2282_vm11 = vcmask 228352   ;;  %vm2502_vm12 = vcmask 220160  }
  0x13   : > { %v7159_v5 = vsub.s32 %v278_v4, %v7152_v3  ;;  %s7164_s27 = scalar_lea.vmem %s8549_s0, %s248_s24  ;;  %s7266_s13 = scalar_lea.vmem %s8550_s1, %s6943_s10  ;;  %vm2722_vm13 = vcmask 211968   ;;  %vm2942_vm14 = vcmask 146432   ;;  %vm3162_vm15 = vcmask 138240  }
  0x14   : > { %v269_v6 = vld [vmem:[%s7164_s27] sm:$0xff]  ;;  %s7077_s23 = smov 26   ;;  %s7078_s24 = smov 18  }
  0x15   : > { %v282_v8 = vrot.slane %v269_v6, %v7159_v5  ;;  %v275_v9 = vcombine.high %v269_v6, %v269_v6  ;;  %v6507_v28 = vld [vmem:[%s7266_s13 + $0x2] sm:$0x3]  ;;  %v271_v48 = vld [vmem:[%s7266_s13] sm:$0x3]  ;;  %v6522_v4 = vld [vmem:[%s7266_s13 + $0x4] sm:$0x3] }
  0x16   : > { %s7090_s10 = smov 36   ;;  %s7091_s11 = smov 35  }
  0x17   : > { %v7172_v10 = vrot.slane %v282_v8, %v7159_v5  ;;  %v289_v11 = vrot.slane %v275_v9, %v7159_v5  ;;  %v290_v12 = vcombine.high %v282_v8, %v282_v8  ;;  %s7092_s12 = smov 34  }
  0x19   : > { %324 = vrot.lane.b32.xlu0 %v7172_v10, %s7065_s28  ;;  %v7177_v13 = vrot.slane %v290_v12, %v7159_v5  ;;  %v7181_v14 = vcombine.high %v7172_v10, %v7172_v10  ;;  %v291_v15 = vcombine.high %v289_v11, %v289_v11  ;;  %v7189_v17 = vrot.slane %v289_v11, %v7159_v5 }
  0x1a   : > { %v541_v42 = vsel %vm352_vm1, %v7172_v10, 0 }
  0x1b   : > { %328 = vrot.lane.b32.xlu1 %v7181_v14, %s7065_s28  ;;  %v7186_v16 = vcombine.high %v7177_v13, %v7177_v13  ;;  %v7193_v18 = vrot.slane %v291_v15, %v7159_v5  ;;  %v7199_v19 = vcombine.high %v7189_v17, %v7189_v17  ;;  %v547_v45 = vsel %vm352_vm1, %v7181_v14, 0 }
  0x1c   : > { %v553_v49 = vsel %vm352_vm1, %v7189_v17, 0 }
  0x1d   : > { %326 = vrot.lane.b32.xlu0 %v7177_v13, %s7065_s28  ;;  %v7204_v20 = vcombine.high %v7193_v18, %v7193_v18  ;;  %v559_v53 = vsel %vm352_vm1, %v7199_v19, 0 }
  0x1f   : > { %330 = vrot.lane.b32.xlu1 %v7186_v16, %s7065_s28 }
  0x21   : > { %332 = vrot.lane.b32.xlu0 %v7189_v17, %s7065_s28 }
  0x23   : > { %334 = vrot.lane.b32.xlu1 %v7193_v18, %s7065_s28 }
  0x25   : > { %336 = vrot.lane.b32.xlu0 %v7199_v19, %s7065_s28 }
  0x27   : > { %338 = vrot.lane.b32.xlu1 %v7204_v20, %s7065_s28  ;;  %s7081_s28 = smov 8  }
  0x29   : > { %726 = vrot.lane.b32.xlu0 %v7172_v10, %s7066_s29 }
  0x2b   : > { %728 = vrot.lane.b32.xlu1 %v7177_v13, %s7066_s29 }
  0x2d   : > { %730 = vrot.lane.b32.xlu0 %v7181_v14, %s7066_s29 }
  0x2f   : > { %732 = vrot.lane.b32.xlu1 %v7186_v16, %s7066_s29 }
  0x31   : > { %734 = vrot.lane.b32.xlu0 %v7189_v17, %s7066_s29 }
  0x33   : > { %736 = vrot.lane.b32.xlu1 %v7193_v18, %s7066_s29 }
  0x35   : > { %738 = vrot.lane.b32.xlu0 %v7199_v19, %s7066_s29 }
  0x37   : > { %740 = vrot.lane.b32.xlu1 %v7204_v20, %s7066_s29  ;;  %s7082_s29 = smov 7  }
  0x39   : > { %946 = vrot.lane.b32.xlu0 %v7172_v10, %s7067_s30 }
  0x3b   : > { %948 = vrot.lane.b32.xlu1 %v7177_v13, %s7067_s30 }
  0x3d   : > { %950 = vrot.lane.b32.xlu0 %v7181_v14, %s7067_s30 }
  0x3f   : > { %952 = vrot.lane.b32.xlu1 %v7186_v16, %s7067_s30 }
  0x41   : > { %954 = vrot.lane.b32.xlu0 %v7189_v17, %s7067_s30 }
  0x43   : > { %956 = vrot.lane.b32.xlu1 %v7193_v18, %s7067_s30 }
  0x45   : > { %958 = vrot.lane.b32.xlu0 %v7199_v19, %s7067_s30 }
  0x47   : > { %960 = vrot.lane.b32.xlu1 %v7204_v20, %s7067_s30  ;;  %s7083_s30 = smov 6  }
  0x49   : > { %1166 = vrot.lane.b32.xlu0 %v7172_v10, %s7068_s5 }
  0x4b   : > { %1168 = vrot.lane.b32.xlu1 %v7177_v13, %s7068_s5 }
  0x4d   : > { %1170 = vrot.lane.b32.xlu0 %v7181_v14, %s7068_s5 }
  0x4f   : > { %1172 = vrot.lane.b32.xlu1 %v7186_v16, %s7068_s5 }
  0x51   : > { %1174 = vrot.lane.b32.xlu0 %v7189_v17, %s7068_s5 }
  0x53   : > { %1176 = vrot.lane.b32.xlu1 %v7193_v18, %s7068_s5 }
  0x55   : > { %1178 = vrot.lane.b32.xlu0 %v7199_v19, %s7068_s5 }
  0x57   : > { %1180 = vrot.lane.b32.xlu1 %v7204_v20, %s7068_s5  ;;  %s7084_s5 = smov 56  }
  0x59   : > { %1386 = vrot.lane.b32.xlu0 %v7172_v10, %s7069_s6 }
  0x5b   : > { %1388 = vrot.lane.b32.xlu1 %v7177_v13, %s7069_s6 }
  0x5d   : > { %1390 = vrot.lane.b32.xlu0 %v7181_v14, %s7069_s6 }
  0x5f   : > { %1392 = vrot.lane.b32.xlu1 %v7186_v16, %s7069_s6 }
  0x61   : > { %1394 = vrot.lane.b32.xlu0 %v7189_v17, %s7069_s6 }
  0x63   : > { %1396 = vrot.lane.b32.xlu1 %v7193_v18, %s7069_s6 }
  0x65   : > { %1398 = vrot.lane.b32.xlu0 %v7199_v19, %s7069_s6 }
  0x67   : > { %1400 = vrot.lane.b32.xlu1 %v7204_v20, %s7069_s6  ;;  %s7086_s6 = smov 54  }
  0x69   : > { %1606 = vrot.lane.b32.xlu0 %v7172_v10, %s7070_s7 }
  0x6b   : > { %1608 = vrot.lane.b32.xlu1 %v7177_v13, %s7070_s7 }
  0x6d   : > { %1610 = vrot.lane.b32.xlu0 %v7181_v14, %s7070_s7 }
  0x6f   : > { %1612 = vrot.lane.b32.xlu1 %v7186_v16, %s7070_s7 }
  0x71   : > { %1614 = vrot.lane.b32.xlu0 %v7189_v17, %s7070_s7 }
  0x73   : > { %1616 = vrot.lane.b32.xlu1 %v7193_v18, %s7070_s7 }
  0x75   : > { %1618 = vrot.lane.b32.xlu0 %v7199_v19, %s7070_s7 }
  0x77   : > { %1620 = vrot.lane.b32.xlu1 %v7204_v20, %s7070_s7  ;;  %s7087_s7 = smov 46  }
  0x79   : > { %1826 = vrot.lane.b32.xlu0 %v7172_v10, %s7071_s8 }
  0x7b   : > { %1828 = vrot.lane.b32.xlu1 %v7177_v13, %s7071_s8 }
  0x7d   : > { %1830 = vrot.lane.b32.xlu0 %v7181_v14, %s7071_s8 }
  0x7f   : > { %1832 = vrot.lane.b32.xlu1 %v7186_v16, %s7071_s8 }
  0x81   : > { %1834 = vrot.lane.b32.xlu0 %v7189_v17, %s7071_s8 }
  0x83   : > { %1836 = vrot.lane.b32.xlu1 %v7193_v18, %s7071_s8 }
  0x85   : > { %1838 = vrot.lane.b32.xlu0 %v7199_v19, %s7071_s8 }
  0x87   : > { %1840 = vrot.lane.b32.xlu1 %v7204_v20, %s7071_s8  ;;  %s7088_s8 = smov 45  }
  0x89   : > { %2046 = vrot.lane.b32.xlu0 %v7172_v10, %s7072_s9 }
  0x8b   : > { %v325_v21 = vpop.permute.xlu0 %324  ;;  %2048 = vrot.lane.b32.xlu1 %v7177_v13, %s7072_s9 }
  0x8d   : > { %v329_v22 = vpop.permute.xlu1 %328  ;;  %2050 = vrot.lane.b32.xlu0 %v7181_v14, %s7072_s9 }
  0x8f   : > { %v327_v23 = vpop.permute.xlu0 %326  ;;  %2052 = vrot.lane.b32.xlu1 %v7186_v16, %s7072_s9 }
  0x90   : > { %v342_v24 = vsel %vm340_vm0, %v327_v23, %v329_v22  ;;  %v341_v25 = vsel %vm340_vm0, %v325_v21, %v327_v23 }
  0x91   : > { %6508 = vmatprep.subr.msk.bf16.mxu0 %vm352_vm1, %v342_v24  ;;  %v331_v26 = vpop.permute.xlu1 %330  ;;  %v354_v27 = vsel %vm352_vm1, %v341_v25, 0  ;;  %2054 = vrot.lane.b32.xlu0 %v7189_v17, %s7072_s9 }
  0x92   : > { %389 = vmatpush1.bf16.msra.mxu0 %v354_v27  ;;  %v343_v29 = vsel %vm340_vm0, %v329_v22, %v331_v26 }
  0x93   : > { %v333_v30 = vpop.permute.xlu0 %332  ;;  %2056 = vrot.lane.b32.xlu1 %v7193_v18, %s7072_s9  ;;  %v360_v33 = vsel %vm352_vm1, %v343_v29, 0 }
  0x94   : > { %v344_v31 = vsel %vm340_vm0, %v331_v26, %v333_v30 }
  0x95   : > { %6509 = vmatmul.mubr.msk.bf16.vlgmr.msra.gmra.mxu0 %vm348_vm2, %v6507_v28  ;;  %6510 = vmatprep.subr.msk.bf16.mxu1 %vm352_vm1, %v344_v31  ;;  %v335_v32 = vpop.permute.xlu1 %334 }
  0x96   : > { %v345_v34 = vsel %vm340_vm0, %v333_v30, %v335_v32  ;;  %430 = vmatpush1.bf16.msra.mxu1 %v360_v33  ;;  %488 = vmatprep.mubr.bf16.mxu0 %v7064_v7 }
  0x97   : > { %v337_v35 = vpop.permute.xlu0 %336  ;;  %6779 = vmatprep.subr.bf16.mxu1 %v7073_v36  ;;  %2058 = vrot.lane.b32.xlu0 %v7199_v19, %s7072_s9  ;;  %v366_v39 = vsel %vm352_vm1, %v345_v34, 0  ;;  %v6530_v34 = vld [vmem:[%s7266_s13 + $0x6] sm:$0x3] }
  0x98   : > { %v346_v37 = vsel %vm340_vm0, %v335_v32, %v337_v35  ;;  %2060 = vrot.lane.b32.xlu1 %v7204_v20, %s7072_s9  ;;  %s7089_s9 = smov 44  }
  0x99   : > { %6511 = vmatmul.mubr.msk.bf16.vlgmr.msra.gmra.mxu1 %vm348_vm2, %v6507_v28  ;;  %6512 = vmatprep.subr.msk.bf16.mxu0 %vm352_vm1, %v346_v37  ;;  %v339_v38 = vpop.permute.xlu1 %338 }
  0x9a   : > { %v347_v40 = vsel %vm340_vm0, %v337_v35, %v339_v38  ;;  %471 = vmatpush1.bf16.msra.mxu0 %v366_v39  ;;  %6781 = vmatprep.mubr.msk.bf16.mxu1 %vm7074_vm3, %v7073_v36  ;;  %vm3382_vm0 = vcmask 130048  }
  0x9b   : > { %v372_v41 = vsel %vm352_vm1, %v347_v40, 0  ;;  %6515 = vmatprep.subr.msk.bf16.mxu0 %vm352_vm1, %v7177_v13  ;;  %2266 = vrot.lane.b32.xlu0 %v7172_v10, %s7075_s14  ;;  %v727_v43 = vpop.permute.xlu0 %726 }
  0x9c   : > { %6780 = vmatpush3.bf16.msra.mxu1 %v372_v41  ;;  %2268 = vrot.lane.b32.xlu1 %v7177_v13, %s7075_s14 }
  0x9d   : > { %6513 = vmatmul.mubr.msk.bf16.vlgmr.msra.gmra.mxu0 %vm348_vm2, %v6507_v28  ;;  %6517 = vmatprep.subr.msk.bf16.mxu1 %vm352_vm1, %v7186_v16  ;;  %v729_v44 = vpop.permute.xlu1 %728 }
  0x9e   : > { %576 = vmatpush1.bf16.msra.mxu0 %v541_v42  ;;  %593 = vmatprep.mubr.bf16.mxu0 %v7064_v7  ;;  %v743_v55 = vsel %vm742_vm4, %v727_v43, %v729_v44 }
  0x9f   : > { %2270 = vrot.lane.b32.xlu0 %v7181_v14, %s7075_s14  ;;  %6519 = vmatprep.subr.msk.bf16.mxu0 %vm352_vm1, %v7193_v18  ;;  %v731_v46 = vpop.permute.xlu0 %730  ;;  %v754_v58 = vsel %vm352_vm1, %v743_v55, 0  ;;  %v6538_v55 = vld [vmem:[%s7266_s13 + $0x8] sm:$0x3] }
  0xa0   : > { %2272 = vrot.lane.b32.xlu1 %v7186_v16, %s7075_s14  ;;  %v744_v51 = vsel %vm742_vm4, %v729_v44, %v731_v46 }
  0xa1   : > { %6782 = vmatmul.mubr.msk.bf16.vlgmr.msra.gmra.mxu1 %vm348_vm2, %v6507_v28  ;;  %v733_v47 = vpop.permute.xlu1 %732 }
  0xa2   : > { %617 = vmatpush1.bf16.msra.mxu1 %v547_v45  ;;  %634 = vmatprep.mubr.bf16.mxu1 %v7064_v7  ;;  %v745_v60 = vsel %vm742_vm4, %v731_v46, %v733_v47 }
  0xa3   : > { %2274 = vrot.lane.b32.xlu0 %v7189_v17, %s7075_s14  ;;  %6785 = vmatprep.subr.bf16.mxu1 %v7073_v36  ;;  %v735_v50 = vpop.permute.xlu0 %734  ;;  %v760_v63 = vsel %vm352_vm1, %v745_v60, 0 }
  0xa4   : > { %2276 = vrot.lane.b32.xlu1 %v7193_v18, %s7075_s14  ;;  %v746_v56 = vsel %vm742_vm4, %v733_v47, %v735_v50 }
  0xa5   : > { %6516 = vmatmul.mubr.msk.bf16.vlgmr.msra.gmra.mxu0 %vm348_vm2, %v271_v48  ;;  %v737_v52 = vpop.permute.xlu1 %736 }
  0xa6   : > { %658 = vmatpush1.bf16.msra.mxu0 %v553_v49  ;;  %675 = vmatprep.mubr.bf16.mxu0 %v7064_v7  ;;  %v747_v1 = vsel %vm742_vm4, %v735_v50, %v737_v52 }
  0xa7   : > { %6523 = vmatprep.subr.msk.bf16.mxu0 %vm352_vm1, %v744_v51  ;;  %2278 = vrot.lane.b32.xlu0 %v7199_v19, %s7075_s14  ;;  %v739_v54 = vpop.permute.xlu0 %738  ;;  %v766_v6 = vsel %vm352_vm1, %v747_v1, 0 }
  0xa8   : > { %2280 = vrot.lane.b32.xlu1 %v7204_v20, %s7075_s14  ;;  %v748_v61 = vsel %vm742_vm4, %v737_v52, %v739_v54 }
  0xa9   : > { %6518 = vmatmul.mubr.msk.bf16.vlgmr.msra.gmra.mxu1 %vm348_vm2, %v271_v48  ;;  %v741_v57 = vpop.permute.xlu1 %740 }
  0xaa   : > { %6786 = vmatpush3.bf16.msra.mxu1 %v559_v53  ;;  %6787 = vmatprep.mubr.msk.bf16.mxu1 %vm7074_vm3, %v7073_v36  ;;  %v749_v9 = vsel %vm742_vm4, %v739_v54, %v741_v57  ;;  %vm3602_vm4 = vcmask 64512  }
  0xab   : > { %6525 = vmatprep.subr.msk.bf16.mxu1 %vm352_vm1, %v746_v56  ;;  %2486 = vrot.lane.b32.xlu0 %v7172_v10, %s7076_s22  ;;  %v947_v59 = vpop.permute.xlu0 %946  ;;  %v772_v15 = vsel %vm352_vm1, %v749_v9, 0 }
  0xac   : > { %2488 = vrot.lane.b32.xlu1 %v7177_v13, %s7076_s22 }
  0xad   : > { %6520 = vmatmul.mubr.msk.bf16.vlgmr.msra.gmra.mxu0 %vm348_vm2, %v271_v48  ;;  %v949_v62 = vpop.permute.xlu1 %948 }
  0xae   : > { %789 = vmatpush1.bf16.msra.mxu0 %v754_v58  ;;  %806 = vmatprep.mubr.bf16.mxu0 %v7064_v7  ;;  %v963_v22 = vsel %vm962_vm5, %v947_v59, %v949_v62 }
  0xaf   : > { %6527 = vmatprep.subr.msk.bf16.mxu0 %vm352_vm1, %v748_v61  ;;  %2490 = vrot.lane.b32.xlu0 %v7181_v14, %s7076_s22  ;;  %v951_v0 = vpop.permute.xlu0 %950  ;;  %v974_v25 = vsel %vm352_vm1, %v963_v22, 0  ;;  %v6546_v22 = vld [vmem:[%s7266_s13 + $0xa] sm:$0x3] }
  0xb0   : > { %2492 = vrot.lane.b32.xlu1 %v7186_v16, %s7076_s22  ;;  %v964_v11 = vsel %vm962_vm5, %v949_v62, %v951_v0 }
  0xb1   : > { %6788 = vmatmul.mubr.msk.bf16.vlgmr.msra.gmra.mxu1 %vm348_vm2, %v271_v48  ;;  %v953_v2 = vpop.permute.xlu1 %952 }
  0xb2   : > { %830 = vmatpush1.bf16.msra.mxu1 %v760_v63  ;;  %847 = vmatprep.mubr.bf16.mxu1 %v7064_v7  ;;  %v965_v27 = vsel %vm962_vm5, %v951_v0, %v953_v2 }
  0xb3   : > { %6791 = vmatprep.subr.bf16.mxu1 %v7073_v36  ;;  %2494 = vrot.lane.b32.xlu0 %v7189_v17, %s7076_s22  ;;  %v955_v8 = vpop.permute.xlu0 %954  ;;  %v980_v30 = vsel %vm352_vm1, %v965_v27, 0 }
  0xb4   : > { %2496 = vrot.lane.b32.xlu1 %v7193_v18, %s7076_s22  ;;  %v966_v23 = vsel %vm962_vm5, %v953_v2, %v955_v8 }
  0xb5   : > { %6524 = vmatmul.mubr.msk.bf16.vlgmr.msra.gmra.mxu0 %vm348_vm2, %v6522_v4  ;;  %v957_v12 = vpop.permute.xlu1 %956 }
  0xb6   : > { %871 = vmatpush1.bf16.msra.mxu0 %v766_v6  ;;  %888 = vmatprep.mubr.bf16.mxu0 %v7064_v7  ;;  %v967_v32 = vsel %vm962_vm5, %v955_v8, %v957_v12 }
  0xb7   : > { %6531 = vmatprep.subr.msk.bf16.mxu0 %vm352_vm1, %v964_v11  ;;  %2498 = vrot.lane.b32.xlu0 %v7199_v19, %s7076_s22  ;;  %v959_v21 = vpop.permute.xlu0 %958  ;;  %v986_v35 = vsel %vm352_vm1, %v967_v32, 0 }
  0xb8   : > { %2500 = vrot.lane.b32.xlu1 %v7204_v20, %s7076_s22  ;;  %v968_v28 = vsel %vm962_vm5, %v957_v12, %v959_v21  ;;  %s6505_s22 = sshll.u32 %s8567_s16, 2 }
  0xb9   : > { %6526 = vmatmul.mubr.msk.bf16.vlgmr.msra.gmra.mxu1 %vm348_vm2, %v6522_v4  ;;  %v961_v24 = vpop.permute.xlu1 %960 }
  0xba   : > { %6792 = vmatpush3.bf16.msra.mxu1 %v772_v15  ;;  %6793 = vmatprep.mubr.msk.bf16.mxu1 %vm7074_vm3, %v7073_v36  ;;  %v969_v38 = vsel %vm962_vm5, %v959_v21, %v961_v24  ;;  %vm3822_vm5 = vcmask 56320  }
  0xbb   : > { %6533 = vmatprep.subr.msk.bf16.mxu1 %vm352_vm1, %v966_v23  ;;  %2706 = vrot.lane.b32.xlu0 %v7172_v10, %s7077_s23  ;;  %v1167_v26 = vpop.permute.xlu0 %1166  ;;  %v992_v41 = vsel %vm352_vm1, %v969_v38, 0 }
  0xbc   : > { %2708 = vrot.lane.b32.xlu1 %v7177_v13, %s7077_s23 }
  0xbd   : > { %6528 = vmatmul.mubr.msk.bf16.vlgmr.msra.gmra.mxu0 %vm348_vm2, %v6522_v4  ;;  %v1169_v29 = vpop.permute.xlu1 %1168 }
  0xbe   : > { %1009 = vmatpush1.bf16.msra.mxu0 %v974_v25  ;;  %1026 = vmatprep.mubr.bf16.mxu0 %v7064_v7  ;;  %v1183_v43 = vsel %vm1182_vm6, %v1167_v26, %v1169_v29 }
  0xbf   : > { %6535 = vmatprep.subr.msk.bf16.mxu0 %vm352_vm1, %v968_v28  ;;  %2710 = vrot.lane.b32.xlu0 %v7181_v14, %s7077_s23  ;;  %v1171_v31 = vpop.permute.xlu0 %1170  ;;  %v1194_v46 = vsel %vm352_vm1, %v1183_v43, 0  ;;  %v6554_v43 = vld [vmem:[%s7266_s13 + $0xc] sm:$0x3] }
  0xc0   : > { %2712 = vrot.lane.b32.xlu1 %v7186_v16, %s7077_s23  ;;  %v1184_v39 = vsel %vm1182_vm6, %v1169_v29, %v1171_v31 }
  0xc1   : > { %6794 = vmatmul.mubr.msk.bf16.vlgmr.msra.gmra.mxu1 %vm348_vm2, %v6522_v4  ;;  %v1173_v33 = vpop.permute.xlu1 %1172 }
  0xc2   : > { %1050 = vmatpush1.bf16.msra.mxu1 %v980_v30  ;;  %1067 = vmatprep.mubr.bf16.mxu1 %v7064_v7  ;;  %v1185_v48 = vsel %vm1182_vm6, %v1171_v31, %v1173_v33 }
  0xc3   : > { %6797 = vmatprep.subr.bf16.mxu1 %v7073_v36  ;;  %2714 = vrot.lane.b32.xlu0 %v7189_v17, %s7077_s23  ;;  %v1175_v37 = vpop.permute.xlu0 %1174  ;;  %v1200_v51 = vsel %vm352_vm1, %v1185_v48, 0 }
  0xc4   : > { %2716 = vrot.lane.b32.xlu1 %v7193_v18, %s7077_s23  ;;  %v1186_v44 = vsel %vm1182_vm6, %v1173_v33, %v1175_v37 }
  0xc5   : > { %6532 = vmatmul.mubr.msk.bf16.vlgmr.msra.gmra.mxu0 %vm348_vm2, %v6530_v34  ;;  %v1177_v40 = vpop.permute.xlu1 %1176 }
  0xc6   : > { %1091 = vmatpush1.bf16.msra.mxu0 %v986_v35  ;;  %1108 = vmatprep.mubr.bf16.mxu0 %v7064_v7  ;;  %v1187_v53 = vsel %vm1182_vm6, %v1175_v37, %v1177_v40 }
  0xc7   : > { %6539 = vmatprep.subr.msk.bf16.mxu0 %vm352_vm1, %v1184_v39  ;;  %2718 = vrot.lane.b32.xlu0 %v7199_v19, %s7077_s23  ;;  %v1179_v42 = vpop.permute.xlu0 %1178  ;;  %v1206_v56 = vsel %vm352_vm1, %v1187_v53, 0 }
  0xc8   : > { %2720 = vrot.lane.b32.xlu1 %v7204_v20, %s7077_s23  ;;  %v1188_v49 = vsel %vm1182_vm6, %v1177_v40, %v1179_v42 }
  0xc9   : > { %6534 = vmatmul.mubr.msk.bf16.vlgmr.msra.gmra.mxu1 %vm348_vm2, %v6530_v34  ;;  %v1181_v45 = vpop.permute.xlu1 %1180 }
  0xca   : > { %6798 = vmatpush3.bf16.msra.mxu1 %v992_v41  ;;  %6799 = vmatprep.mubr.msk.bf16.mxu1 %vm7074_vm3, %v7073_v36  ;;  %v1189_v58 = vsel %vm1182_vm6, %v1179_v42, %v1181_v45  ;;  %vm4042_vm6 = vcmask 48128  }
  0xcb   : > { %6541 = vmatprep.subr.msk.bf16.mxu1 %vm352_vm1, %v1186_v44  ;;  %2926 = vrot.lane.b32.xlu0 %v7172_v10, %s7078_s24  ;;  %v1387_v47 = vpop.permute.xlu0 %1386  ;;  %v1212_v61 = vsel %vm352_vm1, %v1189_v58, 0 }
  0xcc   : > { %2928 = vrot.lane.b32.xlu1 %v7177_v13, %s7078_s24 }
  0xcd   : > { %6536 = vmatmul.mubr.msk.bf16.vlgmr.msra.gmra.mxu0 %vm348_vm2, %v6530_v34  ;;  %v1389_v50 = vpop.permute.xlu1 %1388 }
  0xce   : > { %1229 = vmatpush1.bf16.msra.mxu0 %v1194_v46  ;;  %1246 = vmatprep.mubr.bf16.mxu0 %v7064_v7  ;;  %v1403_v63 = vsel %vm1402_vm7, %v1387_v47, %v1389_v50 }
  0xcf   : > { %6543 = vmatprep.subr.msk.bf16.mxu0 %vm352_vm1, %v1188_v49  ;;  %2930 = vrot.lane.b32.xlu0 %v7181_v14, %s7078_s24  ;;  %v1391_v52 = vpop.permute.xlu0 %1390  ;;  %v1414_v2 = vsel %vm352_vm1, %v1403_v63, 0  ;;  %v6562_v63 = vld [vmem:[%s7266_s13 + $0xe] sm:$0x3] }
  0xd0   : > { %2932 = vrot.lane.b32.xlu1 %v7186_v16, %s7078_s24  ;;  %v1404_v59 = vsel %vm1402_vm7, %v1389_v50, %v1391_v52 }
  0xd1   : > { %6800 = vmatmul.mubr.msk.bf16.vlgmr.msra.gmra.mxu1 %vm348_vm2, %v6530_v34  ;;  %v1393_v54 = vpop.permute.xlu1 %1392 }
  0xd2   : > { %1270 = vmatpush1.bf16.msra.mxu1 %v1200_v51  ;;  %1287 = vmatprep.mubr.bf16.mxu1 %v7064_v7  ;;  %v1405_v6 = vsel %vm1402_vm7, %v1391_v52, %v1393_v54 }
  0xd3   : > { %6803 = vmatprep.subr.bf16.mxu1 %v7073_v36  ;;  %2934 = vrot.lane.b32.xlu0 %v7189_v17, %s7078_s24  ;;  %v1395_v57 = vpop.permute.xlu0 %1394  ;;  %v1420_v11 = vsel %vm352_vm1, %v1405_v6, 0 }
  0xd4   : > { %2936 = vrot.lane.b32.xlu1 %v7193_v18, %s7078_s24  ;;  %v1406_v0 = vsel %vm1402_vm7, %v1393_v54, %v1395_v57 }
  0xd5   : > { %6540 = vmatmul.mubr.msk.bf16.vlgmr.msra.gmra.mxu0 %vm348_vm2, %v6538_v55  ;;  %v1397_v60 = vpop.permute.xlu1 %1396 }
  0xd6   : > { %1311 = vmatpush1.bf16.msra.mxu0 %v1206_v56  ;;  %1328 = vmatprep.mubr.bf16.mxu0 %v7064_v7  ;;  %v1407_v15 = vsel %vm1402_vm7, %v1395_v57, %v1397_v60 }
  0xd7   : > { %6547 = vmatprep.subr.msk.bf16.mxu0 %vm352_vm1, %v1404_v59  ;;  %2938 = vrot.lane.b32.xlu0 %v7199_v19, %s7078_s24  ;;  %v1399_v62 = vpop.permute.xlu0 %1398  ;;  %v1426_v23 = vsel %vm352_vm1, %v1407_v15, 0 }
  0xd8   : > { %2940 = vrot.lane.b32.xlu1 %v7204_v20, %s7078_s24  ;;  %v1408_v8 = vsel %vm1402_vm7, %v1397_v60, %v1399_v62 }
  0xd9   : > { %6542 = vmatmul.mubr.msk.bf16.vlgmr.msra.gmra.mxu1 %vm348_vm2, %v6538_v55  ;;  %v1401_v1 = vpop.permute.xlu1 %1400 }
  0xda   : > { %6804 = vmatpush3.bf16.msra.mxu1 %v1212_v61  ;;  %6805 = vmatprep.mubr.msk.bf16.mxu1 %vm7074_vm3, %v7073_v36  ;;  %v1409_v25 = vsel %vm1402_vm7, %v1399_v62, %v1401_v1  ;;  %vm4277_vm7 = vcmask 457728  }
  0xdb   : > { %6549 = vmatprep.subr.msk.bf16.mxu1 %vm352_vm1, %v1406_v0  ;;  %3146 = vrot.lane.b32.xlu0 %v7172_v10, %s7079_s25  ;;  %v1607_v4 = vpop.permute.xlu0 %1606  ;;  %v1432_v28 = vsel %vm352_vm1, %v1409_v25, 0 }
  0xdc   : > { %3148 = vrot.lane.b32.xlu1 %v7177_v13, %s7079_s25 }
  0xdd   : > { %6544 = vmatmul.mubr.msk.bf16.vlgmr.msra.gmra.mxu0 %vm348_vm2, %v6538_v55  ;;  %v1609_v9 = vpop.permute.xlu1 %1608 }
  0xde   : > { %1449 = vmatpush1.bf16.msra.mxu0 %v1414_v2  ;;  %1466 = vmatprep.mubr.bf16.mxu0 %v7064_v7  ;;  %v1623_v30 = vsel %vm1622_vm8, %v1607_v4, %v1609_v9 }
  0xdf   : > { %6551 = vmatprep.subr.msk.bf16.mxu0 %vm352_vm1, %v1408_v8  ;;  %3150 = vrot.lane.b32.xlu0 %v7181_v14, %s7079_s25  ;;  %v1611_v12 = vpop.permute.xlu0 %1610  ;;  %v1634_v33 = vsel %vm352_vm1, %v1623_v30, 0 }
  0xe0   : > { %3152 = vrot.lane.b32.xlu1 %v7186_v16, %s7079_s25  ;;  %v1624_v26 = vsel %vm1622_vm8, %v1609_v9, %v1611_v12 }
  0xe1   : > { %6806 = vmatmul.mubr.msk.bf16.vlgmr.msra.gmra.mxu1 %vm348_vm2, %v6538_v55  ;;  %v1613_v21 = vpop.permute.xlu1 %1612 }
  0xe2   : > { %1490 = vmatpush1.bf16.msra.mxu1 %v1420_v11  ;;  %1507 = vmatprep.mubr.bf16.mxu1 %v7064_v7  ;;  %v1625_v35 = vsel %vm1622_vm8, %v1611_v12, %v1613_v21 }
  0xe3   : > { %6809 = vmatprep.subr.bf16.mxu1 %v7073_v36  ;;  %3154 = vrot.lane.b32.xlu0 %v7189_v17, %s7079_s25  ;;  %v1615_v24 = vpop.permute.xlu0 %1614  ;;  %v1640_v39 = vsel %vm352_vm1, %v1625_v35, 0 }
  0xe4   : > { %3156 = vrot.lane.b32.xlu1 %v7193_v18, %s7079_s25  ;;  %v1626_v31 = vsel %vm1622_vm8, %v1613_v21, %v1615_v24 }
  0xe5   : > { %6548 = vmatmul.mubr.msk.bf16.vlgmr.msra.gmra.mxu0 %vm348_vm2, %v6546_v22  ;;  %v1617_v27 = vpop.permute.xlu1 %1616 }
  0xe6   : > { %1531 = vmatpush1.bf16.msra.mxu0 %v1426_v23  ;;  %1548 = vmatprep.mubr.bf16.mxu0 %v7064_v7  ;;  %v1627_v41 = vsel %vm1622_vm8, %v1615_v24, %v1617_v27 }
  0xe7   : > { %6555 = vmatprep.subr.msk.bf16.mxu0 %vm352_vm1, %v1624_v26  ;;  %3158 = vrot.lane.b32.xlu0 %v7199_v19, %s7079_s25  ;;  %v1619_v29 = vpop.permute.xlu0 %1618  ;;  %v1646_v44 = vsel %vm352_vm1, %v1627_v41, 0 }
  0xe8   : > { %3160 = vrot.lane.b32.xlu1 %v7204_v20, %s7079_s25  ;;  %v1628_v37 = vsel %vm1622_vm8, %v1617_v27, %v1619_v29  ;;  %s258_s25 = scalar_lea.vmem %s8551_s2, %s6505_s22 }
  0xe9   : > { %6550 = vmatmul.mubr.msk.bf16.vlgmr.msra.gmra.mxu1 %vm348_vm2, %v6546_v22  ;;  %v1621_v32 = vpop.permute.xlu1 %1620 }
  0xea   : > { %6810 = vmatpush3.bf16.msra.mxu1 %v1432_v28  ;;  %6811 = vmatprep.mubr.msk.bf16.mxu1 %vm7074_vm3, %v7073_v36  ;;  %v1629_v46 = vsel %vm1622_vm8, %v1619_v29, %v1621_v32  ;;  %v6570_v29 = vld [vmem:[%s7266_s13 + $0x10] sm:$0x3]  ;;  %vm4497_vm8 = vcmask 449536  }
  0xeb   : > { %6557 = vmatprep.subr.msk.bf16.mxu1 %vm352_vm1, %v1626_v31  ;;  %3366 = vrot.lane.b32.xlu0 %v7172_v10, %s7080_s26  ;;  %v1827_v34 = vpop.permute.xlu0 %1826  ;;  %v1652_v49 = vsel %vm352_vm1, %v1629_v46, 0 }
  0xec   : > { %3368 = vrot.lane.b32.xlu1 %v7177_v13, %s7080_s26 }
  0xed   : > { %6552 = vmatmul.mubr.msk.bf16.vlgmr.msra.gmra.mxu0 %vm348_vm2, %v6546_v22  ;;  %v1829_v38 = vpop.permute.xlu1 %1828 }
  0xee   : > { %1669 = vmatpush1.bf16.msra.mxu0 %v1634_v33  ;;  %1686 = vmatprep.mubr.bf16.mxu0 %v7064_v7  ;;  %v1843_v51 = vsel %vm1842_vm9, %v1827_v34, %v1829_v38 }
  0xef   : > { %6559 = vmatprep.subr.msk.bf16.mxu0 %vm352_vm1, %v1628_v37  ;;  %3370 = vrot.lane.b32.xlu0 %v7181_v14, %s7080_s26  ;;  %v1831_v40 = vpop.permute.xlu0 %1830  ;;  %v1854_v54 = vsel %vm352_vm1, %v1843_v51, 0 }
  0xf0   : > { %3372 = vrot.lane.b32.xlu1 %v7186_v16, %s7080_s26  ;;  %v1844_v47 = vsel %vm1842_vm9, %v1829_v38, %v1831_v40 }
  0xf1   : > { %6812 = vmatmul.mubr.msk.bf16.vlgmr.msra.gmra.mxu1 %vm348_vm2, %v6546_v22  ;;  %v1833_v42 = vpop.permute.xlu1 %1832 }
  0xf2   : > { %1710 = vmatpush1.bf16.msra.mxu1 %v1640_v39  ;;  %1727 = vmatprep.mubr.bf16.mxu1 %v7064_v7  ;;  %v1845_v56 = vsel %vm1842_vm9, %v1831_v40, %v1833_v42 }
  0xf3   : > { %6815 = vmatprep.subr.bf16.mxu1 %v7073_v36  ;;  %3374 = vrot.lane.b32.xlu0 %v7189_v17, %s7080_s26  ;;  %v1835_v45 = vpop.permute.xlu0 %1834  ;;  %v1860_v59 = vsel %vm352_vm1, %v1845_v56, 0 }
  0xf4   : > { %3376 = vrot.lane.b32.xlu1 %v7193_v18, %s7080_s26  ;;  %v1846_v52 = vsel %vm1842_vm9, %v1833_v42, %v1835_v45 }
  0xf5   : > { %6556 = vmatmul.mubr.msk.bf16.vlgmr.msra.gmra.mxu0 %vm348_vm2, %v6554_v43  ;;  %v1837_v48 = vpop.permute.xlu1 %1836 }
  0xf6   : > { %1751 = vmatpush1.bf16.msra.mxu0 %v1646_v44  ;;  %1768 = vmatprep.mubr.bf16.mxu0 %v7064_v7  ;;  %v1847_v61 = vsel %vm1842_vm9, %v1835_v45, %v1837_v48 }
  0xf7   : > { %6563 = vmatprep.subr.msk.bf16.mxu0 %vm352_vm1, %v1844_v47  ;;  %3378 = vrot.lane.b32.xlu0 %v7199_v19, %s7080_s26  ;;  %v1839_v50 = vpop.permute.xlu0 %1838  ;;  %v1866_v0 = vsel %vm352_vm1, %v1847_v61, 0 }
  0xf8   : > { %3380 = vrot.lane.b32.xlu1 %v7204_v20, %s7080_s26  ;;  %v1848_v57 = vsel %vm1842_vm9, %v1837_v48, %v1839_v50  ;;  %s7094_s26 = smov 1  }
  0xf9   : > { %6558 = vmatmul.mubr.msk.bf16.vlgmr.msra.gmra.mxu1 %vm348_vm2, %v6554_v43  ;;  %v1841_v53 = vpop.permute.xlu1 %1840 }
  0xfa   : > { %6816 = vmatpush3.bf16.msra.mxu1 %v1652_v49  ;;  %6817 = vmatprep.mubr.msk.bf16.mxu1 %vm7074_vm3, %v7073_v36  ;;  %v1849_v2 = vsel %vm1842_vm9, %v1839_v50, %v1841_v53  ;;  %v6578_v49 = vld [vmem:[%s7266_s13 + $0x12] sm:$0x3]  ;;  %vm4717_vm9 = vcmask 441344  }
  0xfb   : > { %6565 = vmatprep.subr.msk.bf16.mxu1 %vm352_vm1, %v1846_v52  ;;  %3586 = vrot.lane.b32.xlu0 %v7172_v10, %s7081_s28  ;;  %v2047_v55 = vpop.permute.xlu0 %2046  ;;  %v1872_v8 = vsel %vm352_vm1, %v1849_v2, 0 }
  0xfc   : > { %3588 = vrot.lane.b32.xlu1 %v7177_v13, %s7081_s28 }
  0xfd   : > { %6560 = vmatmul.mubr.msk.bf16.vlgmr.msra.gmra.mxu0 %vm348_vm2, %v6554_v43  ;;  %v2049_v58 = vpop.permute.xlu1 %2048 }
  0xfe   : > { %1889 = vmatpush1.bf16.msra.mxu0 %v1854_v54  ;;  %1906 = vmatprep.mubr.bf16.mxu0 %v7064_v7  ;;  %v2063_v9 = vsel %vm2062_vm10, %v2047_v55, %v2049_v58 }
  0xff   : > { %6567 = vmatprep.subr.msk.bf16.mxu0 %vm352_vm1, %v1848_v57  ;;  %3590 = vrot.lane.b32.xlu0 %v7181_v14, %s7081_s28  ;;  %v2051_v60 = vpop.permute.xlu0 %2050  ;;  %v2074_v21 = vsel %vm352_vm1, %v2063_v9, 0  ;;  %v6586_v9 = vld [vmem:[%s7266_s13 + $0x14] sm:$0x3] }
 0x100   : > { %3592 = vrot.lane.b32.xlu1 %v7186_v16, %s7081_s28  ;;  %v2064_v4 = vsel %vm2062_vm10, %v2049_v58, %v2051_v60 }
 0x101   : > { %6818 = vmatmul.mubr.msk.bf16.vlgmr.msra.gmra.mxu1 %vm348_vm2, %v6554_v43  ;;  %v2053_v62 = vpop.permute.xlu1 %2052 }
 0x102   : > { %1930 = vmatpush1.bf16.msra.mxu1 %v1860_v59  ;;  %1947 = vmatprep.mubr.bf16.mxu1 %v7064_v7  ;;  %v2065_v22 = vsel %vm2062_vm10, %v2051_v60, %v2053_v62 }
 0x103   : > { %6821 = vmatprep.subr.bf16.mxu1 %v7073_v36  ;;  %3594 = vrot.lane.b32.xlu0 %v7189_v17, %s7081_s28  ;;  %v2055_v1 = vpop.permute.xlu0 %2054  ;;  %v2080_v26 = vsel %vm352_vm1, %v2065_v22, 0 }
 0x104   : > { %3596 = vrot.lane.b32.xlu1 %v7193_v18, %s7081_s28  ;;  %v2066_v11 = vsel %vm2062_vm10, %v2053_v62, %v2055_v1 }
 0x105   : > { %6564 = vmatmul.mubr.msk.bf16.vlgmr.msra.gmra.mxu0 %vm348_vm2, %v6562_v63  ;;  %v2057_v6 = vpop.permute.xlu1 %2056 }
 0x106   : > { %1971 = vmatpush1.bf16.msra.mxu0 %v1866_v0  ;;  %1988 = vmatprep.mubr.bf16.mxu0 %v7064_v7  ;;  %v2067_v27 = vsel %vm2062_vm10, %v2055_v1, %v2057_v6 }
 0x107   : > { %6571 = vmatprep.subr.msk.bf16.mxu0 %vm352_vm1, %v2064_v4  ;;  %3598 = vrot.lane.b32.xlu0 %v7199_v19, %s7081_s28  ;;  %v2086_v31 = vsel %vm352_vm1, %v2067_v27, 0 }
 0x108   : > { %3600 = vrot.lane.b32.xlu1 %v7204_v20, %s7081_s28  ;;  %s6944_s28 = smul.u32 7, %s8567_s16 }
 0x109   : > { %6566 = vmatmul.mubr.msk.bf16.vlgmr.msra.gmra.mxu1 %vm348_vm2, %v6562_v63  ;;  %v2059_v12 = vpop.permute.xlu0 %2058 }
 0x10a   : > { %6822 = vmatpush3.bf16.msra.mxu1 %v1872_v8  ;;  %6823 = vmatprep.mubr.msk.bf16.mxu1 %vm7074_vm3, %v7073_v36  ;;  %v2061_v15 = vpop.permute.xlu1 %2060  ;;  %v2068_v23 = vsel %vm2062_vm10, %v2057_v6, %v2059_v12  ;;  %v6651_v8 = vld.sshfl [vmem:[%s7164_s27 + $0x8] sm:$0x1 pattern:$0x75316420]  ;;  %s7085_s27 = smov 55  }
 0x10b   : > { %6573 = vmatprep.subr.msk.bf16.mxu1 %vm352_vm1, %v2066_v11  ;;  %3806 = vrot.lane.b32.xlu0 %v7172_v10, %s7082_s29  ;;  %v2069_v32 = vsel %vm2062_vm10, %v2059_v12, %v2061_v15  ;;  %v7702_v22 = vrot.slane %v6651_v8, %v7159_v5  ;;  %vm4937_vm10 = vcmask 375808  }
 0x10c   : > { %3808 = vrot.lane.b32.xlu1 %v7177_v13, %s7082_s29  ;;  %v2092_v37 = vsel %vm352_vm1, %v2069_v32, 0 }
 0x10d   : > { %6568 = vmatmul.mubr.msk.bf16.vlgmr.msra.gmra.mxu0 %vm348_vm2, %v6562_v63  ;;  %v2267_v24 = vpop.permute.xlu0 %2266 }
 0x10e   : > { %2109 = vmatpush1.bf16.msra.mxu0 %v2074_v21  ;;  %2126 = vmatprep.mubr.bf16.mxu0 %v7064_v7  ;;  %v2269_v25 = vpop.permute.xlu1 %2268 }
 0x10f   : > { %6575 = vmatprep.subr.msk.bf16.mxu0 %vm352_vm1, %v2068_v23  ;;  %3810 = vrot.lane.b32.xlu0 %v7181_v14, %s7082_s29  ;;  %v2283_v38 = vsel %vm2282_vm11, %v2267_v24, %v2269_v25 }
 0x110   : > { %3812 = vrot.lane.b32.xlu1 %v7186_v16, %s7082_s29  ;;  %v2294_v42 = vsel %vm352_vm1, %v2283_v38, 0  ;;  %v6594_v38 = vld [vmem:[%s7266_s13 + $0x16] sm:$0x3] }
 0x111   : > { %6824 = vmatmul.mubr.msk.bf16.vlgmr.msra.gmra.mxu1 %vm348_vm2, %v6562_v63  ;;  %v2271_v28 = vpop.permute.xlu0 %2270 }
 0x112   : > { %2150 = vmatpush1.bf16.msra.mxu1 %v2080_v26  ;;  %2167 = vmatprep.mubr.bf16.mxu1 %v7064_v7  ;;  %v2273_v30 = vpop.permute.xlu1 %2272  ;;  %v2284_v33 = vsel %vm2282_vm11, %v2269_v25, %v2271_v28 }
 0x113   : > { %6827 = vmatprep.subr.bf16.mxu1 %v7073_v36  ;;  %3814 = vrot.lane.b32.xlu0 %v7189_v17, %s7082_s29  ;;  %v2285_v43 = vsel %vm2282_vm11, %v2271_v28, %v2273_v30 }
 0x114   : > { %3816 = vrot.lane.b32.xlu1 %v7193_v18, %s7082_s29  ;;  %v2300_v47 = vsel %vm352_vm1, %v2285_v43, 0 }
 0x115   : > { %6572 = vmatmul.mubr.msk.bf16.vlgmr.msra.gmra.mxu0 %vm348_vm2, %v6570_v29  ;;  %v2275_v34 = vpop.permute.xlu0 %2274 }
 0x116   : > { %2191 = vmatpush1.bf16.msra.mxu0 %v2086_v31  ;;  %2208 = vmatprep.mubr.bf16.mxu0 %v7064_v7  ;;  %v2277_v35 = vpop.permute.xlu1 %2276  ;;  %v2286_v39 = vsel %vm2282_vm11, %v2273_v30, %v2275_v34 }
 0x117   : > { %6579 = vmatprep.subr.msk.bf16.mxu0 %vm352_vm1, %v2284_v33  ;;  %3818 = vrot.lane.b32.xlu0 %v7199_v19, %s7082_s29 }
 0x118   : > { %3820 = vrot.lane.b32.xlu1 %v7204_v20, %s7082_s29  ;;  %s6945_s29 = smul.u32 14, %s8565_s15 }
 0x119   : > { %6574 = vmatmul.mubr.msk.bf16.vlgmr.msra.gmra.mxu1 %vm348_vm2, %v6570_v29  ;;  %v2279_v40 = vpop.permute.xlu0 %2278 }
 0x11a   : > { %6828 = vmatpush3.bf16.msra.mxu1 %v2092_v37  ;;  %6829 = vmatprep.mubr.msk.bf16.mxu1 %vm7074_vm3, %v7073_v36  ;;  %v2281_v41 = vpop.permute.xlu1 %2280  ;;  %v2288_v44 = vsel %vm2282_vm11, %v2277_v35, %v2279_v40 }
 0x11b   : > { %6581 = vmatprep.subr.msk.bf16.mxu1 %vm352_vm1, %v2286_v39  ;;  %4026 = vrot.lane.b32.xlu0 %v7172_v10, %s7083_s30  ;;  %v2287_v10 = vsel %vm2282_vm11, %v2275_v34, %v2277_v35  ;;  %v2289_v52 = vsel %vm2282_vm11, %v2279_v40, %v2281_v41  ;;  %vm5157_vm11 = vcmask 367616  }
 0x11c   : > { %4028 = vrot.lane.b32.xlu1 %v7177_v13, %s7083_s30  ;;  %v2306_v51 = vsel %vm352_vm1, %v2287_v10, 0  ;;  %v2312_v56 = vsel %vm352_vm1, %v2289_v52, 0 }
 0x11d   : > { %6576 = vmatmul.mubr.msk.bf16.vlgmr.msra.gmra.mxu0 %vm348_vm2, %v6570_v29  ;;  %v2487_v45 = vpop.permute.xlu0 %2486 }
 0x11e   : > { %2329 = vmatpush1.bf16.msra.mxu0 %v2294_v42  ;;  %2346 = vmatprep.mubr.bf16.mxu0 %v7064_v7  ;;  %v2489_v46 = vpop.permute.xlu1 %2488 }
 0x11f   : > { %6583 = vmatprep.subr.msk.bf16.mxu0 %vm352_vm1, %v2288_v44  ;;  %4030 = vrot.lane.b32.xlu0 %v7181_v14, %s7083_s30  ;;  %v2503_v57 = vsel %vm2502_vm12, %v2487_v45, %v2489_v46 }
 0x120   : > { %4032 = vrot.lane.b32.xlu1 %v7186_v16, %s7083_s30  ;;  %v2514_v61 = vsel %vm352_vm1, %v2503_v57, 0  ;;  %v6602_v57 = vld [vmem:[%s7266_s13 + $0x18] sm:$0x3] }
 0x121   : > { %6830 = vmatmul.mubr.msk.bf16.vlgmr.msra.gmra.mxu1 %vm348_vm2, %v6570_v29  ;;  %v2491_v48 = vpop.permute.xlu0 %2490 }
 0x122   : > { %2370 = vmatpush1.bf16.msra.mxu1 %v2300_v47  ;;  %2387 = vmatprep.mubr.bf16.mxu1 %v7064_v7  ;;  %v2493_v50 = vpop.permute.xlu1 %2492  ;;  %v2504_v53 = vsel %vm2502_vm12, %v2489_v46, %v2491_v48 }
 0x123   : > { %6833 = vmatprep.subr.bf16.mxu1 %v7073_v36  ;;  %4034 = vrot.lane.b32.xlu0 %v7189_v17, %s7083_s30  ;;  %v2505_v62 = vsel %vm2502_vm12, %v2491_v48, %v2493_v50 }
 0x124   : > { %4036 = vrot.lane.b32.xlu1 %v7193_v18, %s7083_s30  ;;  %v2520_v2 = vsel %vm352_vm1, %v2505_v62, 0 }
 0x125   : > { %6580 = vmatmul.mubr.msk.bf16.vlgmr.msra.gmra.mxu0 %vm348_vm2, %v6578_v49  ;;  %v2495_v54 = vpop.permute.xlu0 %2494 }
 0x126   : > { %2411 = vmatpush1.bf16.msra.mxu0 %v2306_v51  ;;  %2428 = vmatprep.mubr.bf16.mxu0 %v7064_v7  ;;  %v2497_v55 = vpop.permute.xlu1 %2496  ;;  %v2506_v58 = vsel %vm2502_vm12, %v2493_v50, %v2495_v54 }
 0x127   : > { %6587 = vmatprep.subr.msk.bf16.mxu0 %vm352_vm1, %v2504_v53  ;;  %4038 = vrot.lane.b32.xlu0 %v7199_v19, %s7083_s30  ;;  %v2507_v4 = vsel %vm2502_vm12, %v2495_v54, %v2497_v55 }
 0x128   : > { %4040 = vrot.lane.b32.xlu1 %v7204_v20, %s7083_s30  ;;  %v2526_v12 = vsel %vm352_vm1, %v2507_v4, 0  ;;  %s265_s30 = sadd.s32 %s6945_s29, %s6944_s28 }
 0x129   : > { %6582 = vmatmul.mubr.msk.bf16.vlgmr.msra.gmra.mxu1 %vm348_vm2, %v6578_v49  ;;  %v2499_v59 = vpop.permute.xlu0 %2498 }
 0x12a   : > { %6834 = vmatpush3.bf16.msra.mxu1 %v2312_v56  ;;  %6835 = vmatprep.mubr.msk.bf16.mxu1 %vm7074_vm3, %v7073_v36  ;;  %v2501_v60 = vpop.permute.xlu1 %2500  ;;  %v2508_v63 = vsel %vm2502_vm12, %v2497_v55, %v2499_v59 }
 0x12b   : > { %6589 = vmatprep.subr.msk.bf16.mxu1 %vm352_vm1, %v2506_v58  ;;  %4261 = vrot.lane.b32.xlu0 %v7177_v13, %s7084_s5  ;;  %v2509_v15 = vsel %vm2502_vm12, %v2499_v59, %v2501_v60  ;;  %vm5377_vm12 = vcmask 359424  }
 0x12c   : > { %4263 = vrot.lane.b32.xlu1 %v7181_v14, %s7084_s5  ;;  %v2532_v25 = vsel %vm352_vm1, %v2509_v15, 0 }
 0x12d   : > { %6584 = vmatmul.mubr.msk.bf16.vlgmr.msra.gmra.mxu0 %vm348_vm2, %v6578_v49  ;;  %v2707_v0 = vpop.permute.xlu0 %2706 }
 0x12e   : > { %2549 = vmatpush1.bf16.msra.mxu0 %v2514_v61  ;;  %2566 = vmatprep.mubr.bf16.mxu0 %v7064_v7  ;;  %v2709_v1 = vpop.permute.xlu1 %2708 }
 0x12f   : > { %6591 = vmatprep.subr.msk.bf16.mxu0 %vm352_vm1, %v2508_v63  ;;  %4265 = vrot.lane.b32.xlu0 %v7186_v16, %s7084_s5  ;;  %v2723_v26 = vsel %vm2722_vm13, %v2707_v0, %v2709_v1 }
 0x130   : > { %4267 = vrot.lane.b32.xlu1 %v7189_v17, %s7084_s5  ;;  %v2734_v29 = vsel %vm352_vm1, %v2723_v26, 0 }
 0x131   : > { %6836 = vmatmul.mubr.msk.bf16.vlgmr.msra.gmra.mxu1 %vm348_vm2, %v6578_v49  ;;  %v2711_v6 = vpop.permute.xlu0 %2710 }
 0x132   : > { %2590 = vmatpush1.bf16.msra.mxu1 %v2520_v2  ;;  %2607 = vmatprep.mubr.bf16.mxu1 %v7064_v7  ;;  %v2713_v11 = vpop.permute.xlu1 %2712  ;;  %v2724_v21 = vsel %vm2722_vm13, %v2709_v1, %v2711_v6 }
 0x133   : > { %6839 = vmatprep.subr.bf16.mxu1 %v7073_v36  ;;  %4269 = vrot.lane.b32.xlu0 %v7193_v18, %s7084_s5  ;;  %v2725_v30 = vsel %vm2722_vm13, %v2711_v6, %v2713_v11 }
 0x134   : > { %4271 = vrot.lane.b32.xlu1 %v7199_v19, %s7084_s5  ;;  %v2740_v34 = vsel %vm352_vm1, %v2725_v30, 0 }
 0x135   : > { %6588 = vmatmul.mubr.msk.bf16.vlgmr.msra.gmra.mxu0 %vm348_vm2, %v6586_v9  ;;  %v2715_v23 = vpop.permute.xlu0 %2714 }
 0x136   : > { %2631 = vmatpush1.bf16.msra.mxu0 %v2526_v12  ;;  %2648 = vmatprep.mubr.bf16.mxu0 %v7064_v7  ;;  %v2717_v24 = vpop.permute.xlu1 %2716  ;;  %v2726_v27 = vsel %vm2722_vm13, %v2713_v11, %v2715_v23 }
 0x137   : > { %6595 = vmatprep.subr.msk.bf16.mxu0 %vm352_vm1, %v2724_v21  ;;  %4273 = vrot.lane.b32.xlu0 %v7204_v20, %s7084_s5  ;;  %v2727_v35 = vsel %vm2722_vm13, %v2715_v23, %v2717_v24 }
 0x138   : > { %4275 = vrot.lane.b32.xlu1 %v7702_v22, %s7084_s5  ;;  %v2746_v40 = vsel %vm352_vm1, %v2727_v35, 0  ;;  %v7832_v35 = vld [vmem:[%s7266_s13 + $0x1a] sm:$0x3]  ;;  %s6506_s5 = sshll.u32 %s265_s30, 2 }
 0x139   : > { %6590 = vmatmul.mubr.msk.bf16.vlgmr.msra.gmra.mxu1 %vm348_vm2, %v6586_v9  ;;  %v2719_v5 = vpop.permute.xlu0 %2718 }
 0x13a   : > { %6840 = vmatpush3.bf16.msra.mxu1 %v2532_v25  ;;  %6841 = vmatprep.mubr.msk.bf16.mxu1 %vm7074_vm3, %v7073_v36  ;;  %v2721_v28 = vpop.permute.xlu1 %2720  ;;  %v2728_v31 = vsel %vm2722_vm13, %v2717_v24, %v2719_v5 }
 0x13b   : > { %6597 = vmatprep.subr.msk.bf16.mxu1 %vm352_vm1, %v2726_v27  ;;  %4481 = vrot.lane.b32.xlu0 %v7177_v13, %s7085_s27  ;;  %v2729_v41 = vsel %vm2722_vm13, %v2719_v5, %v2721_v28  ;;  %vm5597_vm13 = vcmask 293888  }
 0x13c   : > { %4483 = vrot.lane.b32.xlu1 %v7181_v14, %s7085_s27  ;;  %v2752_v45 = vsel %vm352_vm1, %v2729_v41, 0 }
 0x13d   : > { %6592 = vmatmul.mubr.msk.bf16.vlgmr.msra.gmra.mxu0 %vm348_vm2, %v6586_v9  ;;  %v2927_v32 = vpop.permute.xlu0 %2926 }
 0x13e   : > { %2769 = vmatpush1.bf16.msra.mxu0 %v2734_v29  ;;  %2786 = vmatprep.mubr.bf16.mxu0 %v7064_v7  ;;  %v2929_v33 = vpop.permute.xlu1 %2928 }
 0x13f   : > { %6599 = vmatprep.subr.msk.bf16.mxu0 %vm352_vm1, %v2728_v31  ;;  %4485 = vrot.lane.b32.xlu0 %v7186_v16, %s7085_s27  ;;  %v2943_v46 = vsel %vm2942_vm14, %v2927_v32, %v2929_v33 }
 0x140   : > { %4487 = vrot.lane.b32.xlu1 %v7189_v17, %s7085_s27  ;;  %v2954_v49 = vsel %vm352_vm1, %v2943_v46, 0 }
 0x141   : > { %6842 = vmatmul.mubr.msk.bf16.vlgmr.msra.gmra.mxu1 %vm348_vm2, %v6586_v9  ;;  %v2931_v37 = vpop.permute.xlu0 %2930 }
 0x142   : > { %2810 = vmatpush1.bf16.msra.mxu1 %v2740_v34  ;;  %2827 = vmatprep.mubr.bf16.mxu1 %v7064_v7  ;;  %v2933_v39 = vpop.permute.xlu1 %2932  ;;  %v2944_v42 = vsel %vm2942_vm14, %v2929_v33, %v2931_v37 }
 0x143   : > { %6845 = vmatprep.subr.bf16.mxu1 %v7073_v36  ;;  %4489 = vrot.lane.b32.xlu0 %v7193_v18, %s7085_s27  ;;  %v2945_v50 = vsel %vm2942_vm14, %v2931_v37, %v2933_v39 }
 0x144   : > { %4491 = vrot.lane.b32.xlu1 %v7199_v19, %s7085_s27  ;;  %v2960_v54 = vsel %vm352_vm1, %v2945_v50, 0 }
 0x145   : > { %6596 = vmatmul.mubr.msk.bf16.vlgmr.msra.gmra.mxu0 %vm348_vm2, %v6594_v38  ;;  %v2935_v43 = vpop.permute.xlu0 %2934 }
 0x146   : > { %2851 = vmatpush1.bf16.msra.mxu0 %v2746_v40  ;;  %2868 = vmatprep.mubr.bf16.mxu0 %v7064_v7  ;;  %v2937_v44 = vpop.permute.xlu1 %2936  ;;  %v2946_v47 = vsel %vm2942_vm14, %v2933_v39, %v2935_v43 }
 0x147   : > { %6603 = vmatprep.subr.msk.bf16.mxu0 %vm352_vm1, %v2944_v42  ;;  %4493 = vrot.lane.b32.xlu0 %v7204_v20, %s7085_s27  ;;  %v2947_v55 = vsel %vm2942_vm14, %v2935_v43, %v2937_v44 }
 0x148   : > { %4495 = vrot.lane.b32.xlu1 %v7702_v22, %s7085_s27  ;;  %v2966_v59 = vsel %vm352_vm1, %v2947_v55, 0  ;;  %s267_s27 = scalar_lea.vmem %s8553_s4, %s6506_s5 }
 0x149   : > { %6598 = vmatmul.mubr.msk.bf16.vlgmr.msra.gmra.mxu1 %vm348_vm2, %v6594_v38  ;;  %v2939_v10 = vpop.permute.xlu0 %2938 }
 0x14a   : > { %6846 = vmatpush3.bf16.msra.mxu1 %v2752_v45  ;;  %6847 = vmatprep.mubr.msk.bf16.mxu1 %vm7074_vm3, %v7073_v36  ;;  %v2941_v48 = vpop.permute.xlu1 %2940  ;;  %v2948_v51 = vsel %vm2942_vm14, %v2937_v44, %v2939_v10 }
 0x14b   : > { %6605 = vmatprep.subr.msk.bf16.mxu1 %vm352_vm1, %v2946_v47  ;;  %4701 = vrot.lane.b32.xlu0 %v7177_v13, %s7086_s6  ;;  %v2949_v60 = vsel %vm2942_vm14, %v2939_v10, %v2941_v48  ;;  %vm5817_vm14 = vcmask 285696  }
 0x14c   : > { %4703 = vrot.lane.b32.xlu1 %v7181_v14, %s7086_s6  ;;  %v2972_v2 = vsel %vm352_vm1, %v2949_v60, 0 }
 0x14d   : > { %6600 = vmatmul.mubr.msk.bf16.vlgmr.msra.gmra.mxu0 %vm348_vm2, %v6594_v38  ;;  %v3147_v52 = vpop.permute.xlu0 %3146 }
 0x14e   : > { %2989 = vmatpush1.bf16.msra.mxu0 %v2954_v49  ;;  %3006 = vmatprep.mubr.bf16.mxu0 %v7064_v7  ;;  %v3149_v53 = vpop.permute.xlu1 %3148 }
 0x14f   : > { %6607 = vmatprep.subr.msk.bf16.mxu0 %vm352_vm1, %v2948_v51  ;;  %4705 = vrot.lane.b32.xlu0 %v7186_v16, %s7086_s6  ;;  %v3163_v4 = vsel %vm3162_vm15, %v3147_v52, %v3149_v53 }
 0x150   : > { %4707 = vrot.lane.b32.xlu1 %v7189_v17, %s7086_s6  ;;  %v3174_v23 = vsel %vm352_vm1, %v3163_v4, 0 }
 0x151   : > { %6848 = vmatmul.mubr.msk.bf16.vlgmr.msra.gmra.mxu1 %vm348_vm2, %v6594_v38  ;;  %v3151_v56 = vpop.permute.xlu0 %3150 }
 0x152   : > { %3030 = vmatpush1.bf16.msra.mxu1 %v2960_v54  ;;  %3047 = vmatprep.mubr.bf16.mxu1 %v7064_v7  ;;  %v3153_v58 = vpop.permute.xlu1 %3152  ;;  %v3164_v61 = vsel %vm3162_vm15, %v3149_v53, %v3151_v56 }
 0x153   : > { %6851 = vmatprep.subr.bf16.mxu1 %v7073_v36  ;;  %4709 = vrot.lane.b32.xlu0 %v7193_v18, %s7086_s6  ;;  %v3165_v24 = vsel %vm3162_vm15, %v3151_v56, %v3153_v58 }
 0x154   : > { %4711 = vrot.lane.b32.xlu1 %v7199_v19, %s7086_s6  ;;  %v3180_v31 = vsel %vm352_vm1, %v3165_v24, 0 }
 0x155   : > { %v7786_v62 = vpop.f32.mrf.mxu0  ;;  %6604 = vmatmul.mubr.msk.bf16.vlgmr.msra.gmra.mxu0 %vm348_vm2, %v6602_v57  ;;  %v3155_v63 = vpop.permute.xlu0 %3154 }
 0x156   : > { %3071 = vmatpush1.bf16.msra.mxu0 %v2966_v59  ;;  %3088 = vmatprep.mubr.bf16.mxu0 %v7064_v7  ;;  %v3157_v0 = vpop.permute.xlu1 %3156  ;;  %v3166_v6 = vsel %vm3162_vm15, %v3153_v58, %v3155_v63 }
 0x157   : > { %v7790_v1 = vpop.f32.mrf.mxu0  ;;  %6611 = vmatprep.subr.msk.bf16.mxu0 %vm352_vm1, %v3164_v61  ;;  %4713 = vrot.lane.b32.xlu0 %v7204_v20, %s7086_s6  ;;  %v3167_v32 = vsel %vm3162_vm15, %v3155_v63, %v3157_v0 }
 0x158   : > { %4715 = vrot.lane.b32.xlu1 %v7702_v22, %s7086_s6  ;;  %v3186_v41 = vsel %vm352_vm1, %v3167_v32, 0 }
 0x159   : > { %v412_v8 = vpop.f32.mrf.mxu0  ;;  %v7800_v9 = vpop.f32.mrf.mxu1  ;;  %6606 = vmatmul.mubr.msk.bf16.vlgmr.msra.gmra.mxu1 %vm348_vm2, %v6602_v57 }
 0x15a   : > { %6852 = vmatpush3.bf16.msra.mxu1 %v2972_v2  ;;  %6853 = vmatprep.mubr.msk.bf16.mxu1 %vm7074_vm3, %v7073_v36  ;;  %v3159_v11 = vpop.permute.xlu0 %3158  ;;  %v3161_v12 = vpop.permute.xlu1 %3160 }
 0x15b   : > { %v413_v15 = vpop.f32.mrf.mxu0  ;;  %v7805_v21 = vpop.f32.mrf.mxu1  ;;  %6613 = vmatprep.subr.msk.bf16.mxu1 %vm352_vm1, %v3166_v6  ;;  %4921 = vrot.lane.b32.xlu0 %v7177_v13, %s7087_s7  ;;  %v3168_v25 = vsel %vm3162_vm15, %v3157_v0, %v3159_v11  ;;  %v3169_v42 = vsel %vm3162_vm15, %v3159_v11, %v3161_v12  ;;  %vm6037_vm15 = vcmask 277504  }
 0x15c   : > { %4923 = vrot.lane.b32.xlu1 %v7181_v14, %s7087_s7  ;;  %v3192_v50 = vsel %vm352_vm1, %v3169_v42, 0 }
 0x15d   : > { %v453_v26 = vpop.f32.mrf.mxu1  ;;  %v7815_v27 = vpop.f32.mrf.mxu0  ;;  %6608 = vmatmul.mubr.msk.bf16.vlgmr.msra.gmra.mxu0 %vm348_vm2, %v6602_v57 }
 0x15e   : > { %3209 = vmatpush1.bf16.msra.mxu0 %v3174_v23  ;;  %3226 = vmatprep.mubr.bf16.mxu0 %v7064_v7  ;;  %v3367_v5 = vpop.permute.xlu0 %3366  ;;  %v3369_v28 = vpop.permute.xlu1 %3368  ;;  %v7900_v26 = vld [vmem:[%s7266_s13 + $0x1c] sm:$0x3] }
 0x15f   : > { %v454_v29 = vpop.f32.mrf.mxu1  ;;  %v7819_v30 = vpop.f32.mrf.mxu0  ;;  %6615 = vmatprep.subr.msk.bf16.mxu0 %vm352_vm1, %v3168_v25  ;;  %4925 = vrot.lane.b32.xlu0 %v7186_v16, %s7087_s7  ;;  %v3383_v52 = vsel %vm3382_vm0, %v3367_v5, %v3369_v28 }
 0x160   : > { %4927 = vrot.lane.b32.xlu1 %v7189_v17, %s7087_s7  ;;  %v3394_v61 = vsel %vm352_vm1, %v3383_v52, 0 }
 0x161   : > { %v494_v33 = vpop.f32.mrf.mxu0  ;;  %v7828_v34 = vpop.f32.mrf.mxu1  ;;  %6854 = vmatmul.mubr.msk.bf16.vlgmr.msra.gmra.mxu1 %vm348_vm2, %v6602_v57 }
 0x162   : > { %3250 = vmatpush1.bf16.msra.mxu1 %v3180_v31  ;;  %3267 = vmatprep.mubr.bf16.mxu1 %v7064_v7  ;;  %v3371_v37 = vpop.permute.xlu0 %3370  ;;  %v3373_v38 = vpop.permute.xlu1 %3372 }
 0x163   : > { %v495_v39 = vpop.f32.mrf.mxu0  ;;  %v6783_v40 = vpop.f32.mrf.mxu1  ;;  %6857 = vmatprep.subr.bf16.mxu1 %v7073_v36  ;;  %4929 = vrot.lane.b32.xlu0 %v7193_v18, %s7087_s7  ;;  %v3384_v43 = vsel %vm3382_vm0, %v3369_v28, %v3371_v37  ;;  %v3385_v63 = vsel %vm3382_vm0, %v3371_v37, %v3373_v38 }
 0x164   : > { %4931 = vrot.lane.b32.xlu1 %v7199_v19, %s7087_s7  ;;  %v3400_v12 = vsel %vm352_vm1, %v3385_v63, 0 }
 0x165   : > { %v595_v44 = vpop.f32.mrf.mxu0  ;;  %v534_v45 = vpop.f32.mrf.mxu1  ;;  %6612 = vmatmul.mubr.msk.bf16.vlgmr.msra.gmra.mxu0 %vm348_vm2, %v7832_v35 }
 0x166   : > { %v7846_v46 = vadd.f32 %v595_v44, %v7786_v62  ;;  %3291 = vmatpush1.bf16.msra.mxu0 %v3186_v41  ;;  %3308 = vmatprep.mubr.bf16.mxu0 %v7064_v7  ;;  %v3375_v47 = vpop.permute.xlu0 %3374  ;;  %v3377_v10 = vpop.permute.xlu1 %3376 }
 0x167   : > { %v6784_v48 = vpop.f32.mrf.mxu1  ;;  %v597_v49 = vpop.f32.mrf.mxu0  ;;  %6619 = vmatprep.subr.msk.bf16.mxu0 %vm352_vm1, %v3384_v43  ;;  %4933 = vrot.lane.b32.xlu0 %v7204_v20, %s7087_s7  ;;  %v3386_v53 = vsel %vm3382_vm0, %v3373_v38, %v3375_v47 }
 0x168   : > { %v7854_v51 = vadd.f32 %v597_v49, %v7790_v1  ;;  %4935 = vrot.lane.b32.xlu1 %v7702_v22, %s7087_s7 }
 0x169   : > { %v599_v54 = vpop.f32.mrf.mxu0  ;;  %v636_v55 = vpop.f32.mrf.mxu1  ;;  %6614 = vmatmul.mubr.msk.bf16.vlgmr.msra.gmra.mxu1 %vm348_vm2, %v7832_v35 }
 0x16a   : > { %v7863_v56 = vadd.f32 %v636_v55, %v7800_v9  ;;  %6858 = vmatpush3.bf16.msra.mxu1 %v3192_v50  ;;  %6859 = vmatprep.mubr.msk.bf16.mxu1 %vm7074_vm3, %v7073_v36  ;;  %v3379_v57 = vpop.permute.xlu0 %3378  ;;  %v3381_v58 = vpop.permute.xlu1 %3380 }
 0x16b   : > { %v600_v59 = vpop.f32.mrf.mxu0  ;;  %v638_v60 = vpop.f32.mrf.mxu1  ;;  %6621 = vmatprep.subr.msk.bf16.mxu1 %vm352_vm1, %v3386_v53  ;;  %5141 = vrot.lane.b32.xlu0 %v7177_v13, %s7088_s8  ;;  %v3388_v0 = vsel %vm3382_vm0, %v3377_v10, %v3379_v57  ;;  %v3389_v31 = vsel %vm3382_vm0, %v3379_v57, %v3381_v58 }
 0x16c   : > { %v7872_v62 = vadd.f32 %v638_v60, %v7805_v21  ;;  %5143 = vrot.lane.b32.xlu1 %v7181_v14, %s7088_s8  ;;  %v3387_v21 = vsel %vm3382_vm0, %v3375_v47, %v3377_v10  ;;  %v3412_v41 = vsel %vm352_vm1, %v3389_v31, 0 }
 0x16d   : > { %v677_v1 = vpop.f32.mrf.mxu0  ;;  %v640_v2 = vpop.f32.mrf.mxu1  ;;  %6616 = vmatmul.mubr.msk.bf16.vlgmr.msra.gmra.mxu0 %vm348_vm2, %v7832_v35 }
 0x16e   : > { %v7881_v4 = vadd.f32 %v677_v1, %v7815_v27  ;;  %3429 = vmatpush1.bf16.msra.mxu0 %v3394_v61  ;;  %3446 = vmatprep.mubr.bf16.mxu0 %v7064_v7  ;;  %v3587_v6 = vpop.permute.xlu0 %3586  ;;  %v3589_v8 = vpop.permute.xlu1 %3588 }
 0x16f   : > { %v641_v9 = vpop.f32.mrf.mxu1  ;;  %v679_v11 = vpop.f32.mrf.mxu0  ;;  %6623 = vmatprep.subr.msk.bf16.mxu0 %vm352_vm1, %v3388_v0  ;;  %5145 = vrot.lane.b32.xlu0 %v7186_v16, %s7088_s8  ;;  %v3603_v43 = vsel %vm3602_vm4, %v3587_v6, %v3589_v8  ;;  %v7968_v6 = vld [vmem:[%s7266_s13 + $0x1e] sm:$0x3] }
 0x170   : > { %v7889_v15 = vadd.f32 %v679_v11, %v7819_v30  ;;  %5147 = vrot.lane.b32.xlu1 %v7189_v17, %s7088_s8  ;;  %v3406_v30 = vsel %vm352_vm1, %v3387_v21, 0 }
 0x171   : > { %v681_v23 = vpop.f32.mrf.mxu0  ;;  %v718_v24 = vpop.f32.mrf.mxu1  ;;  %6860 = vmatmul.mubr.msk.bf16.vlgmr.msra.gmra.mxu1 %vm348_vm2, %v7832_v35 }
 0x172   : > { %v7897_v25 = vadd.f32 %v718_v24, %v7828_v34  ;;  %3470 = vmatpush1.bf16.msra.mxu1 %v3400_v12  ;;  %3487 = vmatprep.mubr.bf16.mxu1 %v7064_v7  ;;  %v3591_v27 = vpop.permute.xlu0 %3590  ;;  %v3593_v5 = vpop.permute.xlu1 %3592 }
 0x173   : > { %v682_v28 = vpop.f32.mrf.mxu0  ;;  %v6789_v29 = vpop.f32.mrf.mxu1  ;;  %6863 = vmatprep.subr.bf16.mxu1 %v7073_v36  ;;  %5149 = vrot.lane.b32.xlu0 %v7193_v18, %s7088_s8  ;;  %v3604_v32 = vsel %vm3602_vm4, %v3589_v8, %v3591_v27  ;;  %v3605_v53 = vsel %vm3602_vm4, %v3591_v27, %v3593_v5 }
 0x174   : > { %5151 = vrot.lane.b32.xlu1 %v7199_v19, %s7088_s8 }
 0x175   : > { %v721_v33 = vpop.f32.mrf.mxu1  ;;  %v808_v34 = vpop.f32.mrf.mxu0  ;;  %6620 = vmatmul.mubr.msk.bf16.vlgmr.msra.gmra.mxu0 %vm348_vm2, %v7900_v26 }
 0x176   : > { %v7914_v35 = vadd.f32 %v808_v34, %v7846_v46  ;;  %3511 = vmatpush1.bf16.msra.mxu0 %v3406_v30  ;;  %3528 = vmatprep.mubr.bf16.mxu0 %v7064_v7  ;;  %v3595_v37 = vpop.permute.xlu0 %3594  ;;  %v3597_v38 = vpop.permute.xlu1 %3596 }
 0x177   : > { %v6790_v39 = vpop.f32.mrf.mxu1  ;;  %v810_v40 = vpop.f32.mrf.mxu0  ;;  %6627 = vmatprep.subr.msk.bf16.mxu0 %vm352_vm1, %v3604_v32  ;;  %5153 = vrot.lane.b32.xlu0 %v7204_v20, %s7088_s8  ;;  %v3606_v44 = vsel %vm3602_vm4, %v3593_v5, %v3595_v37  ;;  %v3607_v0 = vsel %vm3602_vm4, %v3595_v37, %v3597_v38 }
 0x178   : > { %v7922_v42 = vadd.f32 %v810_v40, %v7854_v51  ;;  %5155 = vrot.lane.b32.xlu1 %v7702_v22, %s7088_s8  ;;  %v3614_v51 = vsel %vm352_vm1, %v3603_v43, 0 }
 0x179   : > { %v812_v45 = vpop.f32.mrf.mxu0  ;;  %v849_v46 = vpop.f32.mrf.mxu1  ;;  %6622 = vmatmul.mubr.msk.bf16.vlgmr.msra.gmra.mxu1 %vm348_vm2, %v7900_v26 }
 0x17a   : > { %v7931_v47 = vadd.f32 %v849_v46, %v7863_v56  ;;  %6864 = vmatpush3.bf16.msra.mxu1 %v3412_v41  ;;  %6865 = vmatprep.mubr.msk.bf16.mxu1 %vm7074_vm3, %v7073_v36  ;;  %v3599_v10 = vpop.permute.xlu0 %3598  ;;  %v3601_v48 = vpop.permute.xlu1 %3600 }
 0x17b   : > { %v813_v49 = vpop.f32.mrf.mxu0  ;;  %v851_v50 = vpop.f32.mrf.mxu1  ;;  %6629 = vmatprep.subr.msk.bf16.mxu1 %vm352_vm1, %v3606_v44  ;;  %5361 = vrot.lane.b32.xlu0 %v7177_v13, %s7089_s9  ;;  %v3608_v54 = vsel %vm3602_vm4, %v3597_v38, %v3599_v10  ;;  %v3609_v21 = vsel %vm3602_vm4, %v3599_v10, %v3601_v48 }
 0x17c   : > { %v7940_v52 = vadd.f32 %v851_v50, %v7872_v62  ;;  %5363 = vrot.lane.b32.xlu1 %v7181_v14, %s7089_s9  ;;  %v3620_v62 = vsel %vm352_vm1, %v3605_v53, 0  ;;  %v3632_v30 = vsel %vm352_vm1, %v3609_v21, 0 }
 0x17d   : > { %v853_v55 = vpop.f32.mrf.mxu1  ;;  %v890_v56 = vpop.f32.mrf.mxu0  ;;  %6624 = vmatmul.mubr.msk.bf16.vlgmr.msra.gmra.mxu0 %vm348_vm2, %v7900_v26 }
 0x17e   : > { %v7949_v57 = vadd.f32 %v890_v56, %v7881_v4  ;;  %3649 = vmatpush1.bf16.msra.mxu0 %v3614_v51  ;;  %3666 = vmatprep.mubr.bf16.mxu0 %v7064_v7  ;;  %v3807_v58 = vpop.permute.xlu0 %3806  ;;  %v3809_v59 = vpop.permute.xlu1 %3808 }
 0x17f   : > { %v854_v60 = vpop.f32.mrf.mxu1  ;;  %v892_v61 = vpop.f32.mrf.mxu0  ;;  %6631 = vmatprep.subr.msk.bf16.mxu0 %vm352_vm1, %v3608_v54  ;;  %5365 = vrot.lane.b32.xlu0 %v7186_v16, %s7089_s9  ;;  %v3823_v32 = vsel %vm3822_vm5, %v3807_v58, %v3809_v59  ;;  %v8036_v58 = vld [vmem:[%s7266_s13 + $0x20] sm:$0x3] }
 0x180   : > { %v7957_v63 = vadd.f32 %v892_v61, %v7889_v15  ;;  %5367 = vrot.lane.b32.xlu1 %v7189_v17, %s7089_s9  ;;  %v3626_v15 = vsel %vm352_vm1, %v3607_v0, 0 }
 0x181   : > { %v894_v1 = vpop.f32.mrf.mxu0  ;;  %v931_v2 = vpop.f32.mrf.mxu1  ;;  %6866 = vmatmul.mubr.msk.bf16.vlgmr.msra.gmra.mxu1 %vm348_vm2, %v7900_v26 }
 0x182   : > { %v7965_v4 = vadd.f32 %v931_v2, %v7897_v25  ;;  %3690 = vmatpush1.bf16.msra.mxu1 %v3620_v62  ;;  %3707 = vmatprep.mubr.bf16.mxu1 %v7064_v7  ;;  %v3811_v8 = vpop.permute.xlu0 %3810  ;;  %v3813_v9 = vpop.permute.xlu1 %3812 }
 0x183   : > { %v895_v11 = vpop.f32.mrf.mxu0  ;;  %v6795_v12 = vpop.f32.mrf.mxu1  ;;  %6869 = vmatprep.subr.bf16.mxu1 %v7073_v36  ;;  %5369 = vrot.lane.b32.xlu0 %v7193_v18, %s7089_s9  ;;  %v3824_v23 = vsel %vm3822_vm5, %v3809_v59, %v3811_v8  ;;  %v3825_v44 = vsel %vm3822_vm5, %v3811_v8, %v3813_v9 }
 0x184   : > { %5371 = vrot.lane.b32.xlu1 %v7199_v19, %s7089_s9 }
 0x185   : > { %v934_v24 = vpop.f32.mrf.mxu1  ;;  %v1028_v25 = vpop.f32.mrf.mxu0  ;;  %6628 = vmatmul.mubr.msk.bf16.vlgmr.msra.gmra.mxu0 %vm348_vm2, %v7968_v6 }
 0x186   : > { %v7982_v26 = vadd.f32 %v1028_v25, %v7914_v35  ;;  %3731 = vmatpush1.bf16.msra.mxu0 %v3626_v15  ;;  %3748 = vmatprep.mubr.bf16.mxu0 %v7064_v7  ;;  %v3815_v27 = vpop.permute.xlu0 %3814  ;;  %v3817_v5 = vpop.permute.xlu1 %3816 }
 0x187   : > { %v6796_v28 = vpop.f32.mrf.mxu1  ;;  %v1030_v29 = vpop.f32.mrf.mxu0  ;;  %6635 = vmatprep.subr.msk.bf16.mxu0 %vm352_vm1, %v3824_v23  ;;  %5373 = vrot.lane.b32.xlu0 %v7204_v20, %s7089_s9  ;;  %v3826_v33 = vsel %vm3822_vm5, %v3813_v9, %v3815_v27  ;;  %v3827_v54 = vsel %vm3822_vm5, %v3815_v27, %v3817_v5 }
 0x188   : > { %v7990_v31 = vadd.f32 %v1030_v29, %v7922_v42  ;;  %5375 = vrot.lane.b32.xlu1 %v7702_v22, %s7089_s9  ;;  %v3834_v42 = vsel %vm352_vm1, %v3823_v32, 0 }
 0x189   : > { %v1032_v34 = vpop.f32.mrf.mxu0  ;;  %v1069_v35 = vpop.f32.mrf.mxu1  ;;  %6630 = vmatmul.mubr.msk.bf16.vlgmr.msra.gmra.mxu1 %vm348_vm2, %v7968_v6 }
 0x18a   : > { %v7999_v37 = vadd.f32 %v1069_v35, %v7931_v47  ;;  %6870 = vmatpush3.bf16.msra.mxu1 %v3632_v30  ;;  %6871 = vmatprep.mubr.msk.bf16.mxu1 %vm7074_vm3, %v7073_v36  ;;  %v3819_v38 = vpop.permute.xlu0 %3818  ;;  %v3821_v39 = vpop.permute.xlu1 %3820 }
 0x18b   : > { %v1033_v40 = vpop.f32.mrf.mxu0  ;;  %v1071_v41 = vpop.f32.mrf.mxu1  ;;  %6637 = vmatprep.subr.msk.bf16.mxu1 %vm352_vm1, %v3826_v33  ;;  %5581 = vrot.lane.b32.xlu0 %v7177_v13, %s7090_s10  ;;  %v3828_v45 = vsel %vm3822_vm5, %v3817_v5, %v3819_v38  ;;  %v3829_v0 = vsel %vm3822_vm5, %v3819_v38, %v3821_v39 }
 0x18c   : > { %v8008_v43 = vadd.f32 %v1071_v41, %v7940_v52  ;;  %5583 = vrot.lane.b32.xlu1 %v7181_v14, %s7090_s10  ;;  %v3840_v52 = vsel %vm352_vm1, %v3825_v44, 0  ;;  %v3852_v15 = vsel %vm352_vm1, %v3829_v0, 0 }
 0x18d   : > { %v1073_v46 = vpop.f32.mrf.mxu1  ;;  %v1110_v47 = vpop.f32.mrf.mxu0  ;;  %6632 = vmatmul.mubr.msk.bf16.vlgmr.msra.gmra.mxu0 %vm348_vm2, %v7968_v6 }
 0x18e   : > { %v8017_v10 = vadd.f32 %v1110_v47, %v7949_v57  ;;  %3869 = vmatpush1.bf16.msra.mxu0 %v3834_v42  ;;  %3886 = vmatprep.mubr.bf16.mxu0 %v7064_v7  ;;  %v4027_v48 = vpop.permute.xlu0 %4026  ;;  %v4029_v49 = vpop.permute.xlu1 %4028 }
 0x18f   : > { %v1074_v50 = vpop.f32.mrf.mxu1  ;;  %v1112_v51 = vpop.f32.mrf.mxu0  ;;  %6639 = vmatprep.subr.msk.bf16.mxu0 %vm352_vm1, %v3828_v45  ;;  %5585 = vrot.lane.b32.xlu0 %v7186_v16, %s7090_s10  ;;  %v4043_v23 = vsel %vm4042_vm6, %v4027_v48, %v4029_v49  ;;  %v8104_v48 = vld [vmem:[%s7266_s13 + $0x22] sm:$0x3] }
 0x190   : > { %v8025_v53 = vadd.f32 %v1112_v51, %v7957_v63  ;;  %5587 = vrot.lane.b32.xlu1 %v7189_v17, %s7090_s10  ;;  %v3846_v63 = vsel %vm352_vm1, %v3827_v54, 0 }
 0x191   : > { %v1114_v55 = vpop.f32.mrf.mxu0  ;;  %v1151_v56 = vpop.f32.mrf.mxu1  ;;  %6872 = vmatmul.mubr.msk.bf16.vlgmr.msra.gmra.mxu1 %vm348_vm2, %v7968_v6 }
 0x192   : > { %v8033_v57 = vadd.f32 %v1151_v56, %v7965_v4  ;;  %3910 = vmatpush1.bf16.msra.mxu1 %v3840_v52  ;;  %3927 = vmatprep.mubr.bf16.mxu1 %v7064_v7  ;;  %v4031_v59 = vpop.permute.xlu0 %4030  ;;  %v4033_v60 = vpop.permute.xlu1 %4032 }
 0x193   : > { %v1115_v61 = vpop.f32.mrf.mxu0  ;;  %v6801_v62 = vpop.f32.mrf.mxu1  ;;  %6875 = vmatprep.subr.bf16.mxu1 %v7073_v36  ;;  %5589 = vrot.lane.b32.xlu0 %v7193_v18, %s7090_s10  ;;  %v4044_v1 = vsel %vm4042_vm6, %v4029_v49, %v4031_v59  ;;  %v4045_v33 = vsel %vm4042_vm6, %v4031_v59, %v4033_v60 }
 0x194   : > { %5591 = vrot.lane.b32.xlu1 %v7199_v19, %s7090_s10 }
 0x195   : > { %v1154_v2 = vpop.f32.mrf.mxu1  ;;  %v1248_v4 = vpop.f32.mrf.mxu0  ;;  %6636 = vmatmul.mubr.msk.bf16.vlgmr.msra.gmra.mxu0 %vm348_vm2, %v8036_v58 }
 0x196   : > { %v8050_v6 = vadd.f32 %v1248_v4, %v7982_v26  ;;  %3951 = vmatpush1.bf16.msra.mxu0 %v3846_v63  ;;  %3968 = vmatprep.mubr.bf16.mxu0 %v7064_v7  ;;  %v4035_v8 = vpop.permute.xlu0 %4034  ;;  %v4037_v9 = vpop.permute.xlu1 %4036 }
 0x197   : > { %v6802_v11 = vpop.f32.mrf.mxu1  ;;  %v1250_v12 = vpop.f32.mrf.mxu0  ;;  %6643 = vmatprep.subr.msk.bf16.mxu0 %vm352_vm1, %v4044_v1  ;;  %5593 = vrot.lane.b32.xlu0 %v7204_v20, %s7090_s10  ;;  %v4046_v24 = vsel %vm4042_vm6, %v4033_v60, %v4035_v8  ;;  %v4047_v45 = vsel %vm4042_vm6, %v4035_v8, %v4037_v9 }
 0x198   : > { %v8058_v21 = vadd.f32 %v1250_v12, %v7990_v31  ;;  %5595 = vrot.lane.b32.xlu1 %v7702_v22, %s7090_s10  ;;  %v4054_v31 = vsel %vm352_vm1, %v4043_v23, 0 }
 0x199   : > { %v1252_v25 = vpop.f32.mrf.mxu0  ;;  %v1289_v26 = vpop.f32.mrf.mxu1  ;;  %6638 = vmatmul.mubr.msk.bf16.vlgmr.msra.gmra.mxu1 %vm348_vm2, %v8036_v58 }
 0x19a   : > { %v8067_v27 = vadd.f32 %v1289_v26, %v7999_v37  ;;  %6876 = vmatpush3.bf16.msra.mxu1 %v3852_v15  ;;  %6877 = vmatprep.mubr.msk.bf16.mxu1 %vm7074_vm3, %v7073_v36  ;;  %v4039_v5 = vpop.permute.xlu0 %4038  ;;  %v4041_v28 = vpop.permute.xlu1 %4040 }
 0x19b   : > { %v1253_v29 = vpop.f32.mrf.mxu0  ;;  %v1291_v30 = vpop.f32.mrf.mxu1  ;;  %6645 = vmatprep.subr.msk.bf16.mxu1 %vm352_vm1, %v4046_v24  ;;  %5801 = vrot.lane.b32.xlu0 %v7177_v13, %s7091_s11  ;;  %v4048_v34 = vsel %vm4042_vm6, %v4037_v9, %v4039_v5  ;;  %v4049_v54 = vsel %vm4042_vm6, %v4039_v5, %v4041_v28 }
 0x19c   : > { %v8076_v32 = vadd.f32 %v1291_v30, %v8008_v43  ;;  %5803 = vrot.lane.b32.xlu1 %v7181_v14, %s7091_s11  ;;  %v4060_v43 = vsel %vm352_vm1, %v4045_v33, 0  ;;  %v4072_v63 = vsel %vm352_vm1, %v4049_v54, 0 }
 0x19d   : > { %v1293_v35 = vpop.f32.mrf.mxu1  ;;  %v1330_v37 = vpop.f32.mrf.mxu0  ;;  %6640 = vmatmul.mubr.msk.bf16.vlgmr.msra.gmra.mxu0 %vm348_vm2, %v8036_v58 }
 0x19e   : > { %v8085_v38 = vadd.f32 %v1330_v37, %v8017_v10  ;;  %4089 = vmatpush1.bf16.msra.mxu0 %v4054_v31  ;;  %4106 = vmatprep.mubr.bf16.mxu0 %v7064_v7  ;;  %v4262_v39 = vpop.permute.xlu0 %4261  ;;  %v4264_v40 = vpop.permute.xlu1 %4263  ;;  %v6650_v37 = vld [vmem:[%s7266_s13 + $0x24] sm:$0x3] }
 0x19f   : > { %v1294_v41 = vpop.f32.mrf.mxu1  ;;  %v1332_v42 = vpop.f32.mrf.mxu0  ;;  %6647 = vmatprep.subr.msk.bf16.mxu0 %vm352_vm1, %v4048_v34  ;;  %5805 = vrot.lane.b32.xlu0 %v7186_v16, %s7091_s11  ;;  %v4278_v1 = vsel %vm4277_vm7, %v4262_v39, %v4264_v40 }
 0x1a0   : > { %v8093_v44 = vadd.f32 %v1332_v42, %v8025_v53  ;;  %5807 = vrot.lane.b32.xlu1 %v7189_v17, %s7091_s11  ;;  %v4066_v53 = vsel %vm352_vm1, %v4047_v45, 0 }
 0x1a1   : > { %v1334_v46 = vpop.f32.mrf.mxu0  ;;  %v1371_v47 = vpop.f32.mrf.mxu1  ;;  %6878 = vmatmul.mubr.msk.bf16.vlgmr.msra.gmra.mxu1 %vm348_vm2, %v8036_v58 }
 0x1a2   : > { %v8101_v10 = vadd.f32 %v1371_v47, %v8033_v57  ;;  %4130 = vmatpush1.bf16.msra.mxu1 %v4060_v43  ;;  %4147 = vmatprep.mubr.bf16.mxu1 %v7064_v7  ;;  %v4266_v49 = vpop.permute.xlu0 %4265  ;;  %v4268_v50 = vpop.permute.xlu1 %4267 }
 0x1a3   : > { %v1335_v51 = vpop.f32.mrf.mxu0  ;;  %v6807_v52 = vpop.f32.mrf.mxu1  ;;  %6881 = vmatprep.subr.bf16.mxu1 %v7073_v36  ;;  %5809 = vrot.lane.b32.xlu0 %v7193_v18, %s7091_s11  ;;  %v4279_v55 = vsel %vm4277_vm7, %v4264_v40, %v4266_v49  ;;  %v4280_v24 = vsel %vm4277_vm7, %v4266_v49, %v4268_v50 }
 0x1a4   : > { %5811 = vrot.lane.b32.xlu1 %v7199_v19, %s7091_s11  ;;  %v4295_v31 = vsel %vm352_vm1, %v4280_v24, 0 }
 0x1a5   : > { %v1374_v56 = vpop.f32.mrf.mxu1  ;;  %v1468_v57 = vpop.f32.mrf.mxu0  ;;  %6644 = vmatmul.mubr.msk.bf16.vlgmr.msra.gmra.mxu0 %vm348_vm2, %v8104_v48 }
 0x1a6   : > { %v8118_v58 = vadd.f32 %v1468_v57, %v8050_v6  ;;  %4171 = vmatpush1.bf16.msra.mxu0 %v4066_v53  ;;  %4188 = vmatprep.mubr.bf16.mxu0 %v7064_v7  ;;  %v4270_v59 = vpop.permute.xlu0 %4269  ;;  %v4272_v60 = vpop.permute.xlu1 %4271 }
 0x1a7   : > { %v6808_v61 = vpop.f32.mrf.mxu1  ;;  %v1470_v62 = vpop.f32.mrf.mxu0  ;;  %6652 = vmatprep.subr.msk.bf16.mxu0 %vm352_vm1, %v4279_v55  ;;  %5813 = vrot.lane.b32.xlu0 %v7204_v20, %s7091_s11  ;;  %v4281_v2 = vsel %vm4277_vm7, %v4268_v50, %v4270_v59 }
 0x1a8   : > { %v8126_v0 = vadd.f32 %v1470_v62, %v8058_v21  ;;  %5815 = vrot.lane.b32.xlu1 %v7702_v22, %s7091_s11  ;;  %v4289_v21 = vsel %vm352_vm1, %v4278_v1, 0 }
 0x1a9   : > { %v1472_v4 = vpop.f32.mrf.mxu0  ;;  %v1509_v6 = vpop.f32.mrf.mxu1  ;;  %6646 = vmatmul.mubr.msk.bf16.vlgmr.msra.gmra.mxu1 %vm348_vm2, %v8104_v48 }
 0x1aa   : > { %v8135_v8 = vadd.f32 %v1509_v6, %v8067_v27  ;;  %6882 = vmatpush3.bf16.msra.mxu1 %v4072_v63  ;;  %6883 = vmatprep.mubr.msk.bf16.mxu1 %vm7074_vm3, %v7073_v36  ;;  %v4274_v9 = vpop.permute.xlu0 %4273  ;;  %v4276_v11 = vpop.permute.xlu1 %4275 }
 0x1ab   : > { %v1473_v12 = vpop.f32.mrf.mxu0  ;;  %v1511_v15 = vpop.f32.mrf.mxu1  ;;  %6654 = vmatprep.subr.msk.bf16.mxu1 %vm352_vm1, %v4281_v2  ;;  %6021 = vrot.lane.b32.xlu0 %v7177_v13, %s7092_s12  ;;  %v4283_v25 = vsel %vm4277_vm7, %v4272_v60, %v4274_v9 }
 0x1ac   : > { %v8144_v23 = vadd.f32 %v1511_v15, %v8076_v32  ;;  %6023 = vrot.lane.b32.xlu1 %v7181_v14, %s7092_s12  ;;  %v4282_v32 = vsel %vm4277_vm7, %v4270_v59, %v4272_v60  ;;  %v6659_v15 = vld [vmem:[%s7266_s13 + $0x26] sm:$0x3] }
 0x1ad   : > { %v1513_v26 = vpop.f32.mrf.mxu1  ;;  %v1550_v27 = vpop.f32.mrf.mxu0  ;;  %6648 = vmatmul.mubr.msk.bf16.vlgmr.msra.gmra.mxu0 %vm348_vm2, %v8104_v48  ;;  %v4301_v41 = vsel %vm352_vm1, %v4282_v32, 0 }
 0x1ae   : > { %v8153_v5 = vadd.f32 %v1550_v27, %v8085_v38  ;;  %4324 = vmatpush1.bf16.msra.mxu0 %v4289_v21  ;;  %4341 = vmatprep.mubr.bf16.mxu0 %v7064_v7  ;;  %v4482_v13 = vpop.permute.xlu0 %4481  ;;  %v4484_v28 = vpop.permute.xlu1 %4483 }
 0x1af   : > { %v1514_v29 = vpop.f32.mrf.mxu1  ;;  %v1552_v30 = vpop.f32.mrf.mxu0  ;;  %6656 = vmatprep.subr.msk.bf16.mxu0 %vm352_vm1, %v4283_v25  ;;  %6025 = vrot.lane.b32.xlu0 %v7186_v16, %s7092_s12  ;;  %v4498_v49 = vsel %vm4497_vm8, %v4482_v13, %v4484_v28 }
 0x1b0   : > { %v8161_v14 = vadd.f32 %v1552_v30, %v8093_v44  ;;  %6027 = vrot.lane.b32.xlu1 %v7189_v17, %s7092_s12  ;;  %v4284_v17 = vsel %vm4277_vm7, %v4274_v9, %v4276_v11  ;;  %v4509_v57 = vsel %vm352_vm1, %v4498_v49, 0 }
 0x1b1   : > { %v1554_v33 = vpop.f32.mrf.mxu0  ;;  %v1591_v34 = vpop.f32.mrf.mxu1  ;;  %6884 = vmatmul.mubr.msk.bf16.vlgmr.msra.gmra.mxu1 %vm348_vm2, %v8104_v48  ;;  %v4307_v48 = vsel %vm352_vm1, %v4284_v17, 0 }
 0x1b2   : > { %v8169_v35 = vadd.f32 %v1591_v34, %v8101_v10  ;;  %4365 = vmatpush1.bf16.msra.mxu1 %v4295_v31  ;;  %4382 = vmatprep.mubr.bf16.mxu1 %v7064_v7  ;;  %v4486_v16 = vpop.permute.xlu0 %4485  ;;  %v4488_v38 = vpop.permute.xlu1 %4487 }
 0x1b3   : > { %v1555_v39 = vpop.f32.mrf.mxu0  ;;  %v6813_v40 = vpop.f32.mrf.mxu1  ;;  %6887 = vmatprep.subr.bf16.mxu1 %v7073_v36  ;;  %6029 = vrot.lane.b32.xlu0 %v7193_v18, %s7092_s12  ;;  %v4499_v42 = vsel %vm4497_vm8, %v4484_v28, %v4486_v16 }
 0x1b4   : > { %6031 = vrot.lane.b32.xlu1 %v7199_v19, %s7092_s12 }
 0x1b5   : > { %v1594_v43 = vpop.f32.mrf.mxu1  ;;  %v1688_v44 = vpop.f32.mrf.mxu0  ;;  %6653 = vmatmul.mubr.msk.bf16.vlgmr.msra.gmra.mxu0 %vm348_vm2, %v6650_v37 }
 0x1b6   : > { %v1817_v45 = vadd.f32 %v1688_v44, %v8118_v58  ;;  %4406 = vmatpush1.bf16.msra.mxu0 %v4301_v41  ;;  %4423 = vmatprep.mubr.bf16.mxu0 %v7064_v7  ;;  %v4490_v46 = vpop.permute.xlu0 %4489  ;;  %v4492_v47 = vpop.permute.xlu1 %4491  ;;  %v4500_v58 = vsel %vm4497_vm8, %v4486_v16, %v4488_v38 }
 0x1b7   : > { %v6814_v10 = vpop.f32.mrf.mxu1  ;;  %v1690_v18 = vpop.f32.mrf.mxu0  ;;  %6660 = vmatprep.subr.msk.bf16.mxu0 %vm352_vm1, %v4499_v42  ;;  %6033 = vrot.lane.b32.xlu0 %v7204_v20, %s7092_s12  ;;  %v4501_v50 = vsel %vm4497_vm8, %v4488_v38, %v4490_v46  ;;  %v4515_v4 = vsel %vm352_vm1, %v4500_v58, 0 }
 0x1b8   : > { %v1818_v19 = vadd.f32 %v1690_v18, %v8126_v0  ;;  %6035 = vrot.lane.b32.xlu1 %v7702_v22, %s7092_s12 }
 0x1b9   : > { %v1692_v51 = vpop.f32.mrf.mxu0  ;;  %v1729_v52 = vpop.f32.mrf.mxu1  ;;  %6655 = vmatmul.mubr.msk.bf16.vlgmr.msra.gmra.mxu1 %vm348_vm2, %v6650_v37 }
 0x1ba   : > { %v1819_v53 = vadd.f32 %v1729_v52, %v8135_v8  ;;  %6888 = vmatpush3.bf16.msra.mxu1 %v4307_v48  ;;  %6889 = vmatprep.mubr.msk.bf16.mxu1 %vm7074_vm3, %v7073_v36  ;;  %v4494_v20 = vpop.permute.xlu0 %4493  ;;  %v4496_v54 = vpop.permute.xlu1 %4495  ;;  %v4502_v8 = vsel %vm4497_vm8, %v4490_v46, %v4492_v47 }
 0x1bb   : > { %v1693_v55 = vpop.f32.mrf.mxu0  ;;  %v1731_v56 = vpop.f32.mrf.mxu1  ;;  %6662 = vmatprep.subr.msk.bf16.mxu1 %vm352_vm1, %v4501_v50  ;;  %v4503_v59 = vsel %vm4497_vm8, %v4492_v47, %v4494_v20  ;;  %v4521_v26 = vsel %vm352_vm1, %v4502_v8, 0  ;;  %v4504_v27 = vsel %vm4497_vm8, %v4494_v20, %v4496_v54 }
 0x1bc   : > { %v1820_v22 = vadd.f32 %v1731_v56, %v8144_v23  ;;  %v4527_v33 = vsel %vm352_vm1, %v4504_v27, 0  ;;  %v6667_v56 = vld [vmem:[%s7266_s13 + $0x28] sm:$0x3] }
 0x1bd   : > { %v1733_v60 = vpop.f32.mrf.mxu1  ;;  %v1770_v61 = vpop.f32.mrf.mxu0  ;;  %6657 = vmatmul.mubr.msk.bf16.vlgmr.msra.gmra.mxu0 %vm348_vm2, %v6650_v37 }
 0x1be   : > { %v1821_v62 = vadd.f32 %v1770_v61, %v8153_v5  ;;  %4544 = vmatpush1.bf16.msra.mxu0 %v4509_v57  ;;  %4561 = vmatprep.mubr.bf16.mxu0 %v7064_v7  ;;  %v4702_v63 = vpop.permute.xlu0 %4701  ;;  %v4704_v0 = vpop.permute.xlu1 %4703 }
 0x1bf   : > { %v1734_v1 = vpop.f32.mrf.mxu1  ;;  %v1772_v2 = vpop.f32.mrf.mxu0  ;;  %6664 = vmatprep.subr.msk.bf16.mxu0 %vm352_vm1, %v4503_v59 }
 0x1c0   : > { %v1822_v6 = vadd.f32 %v1772_v2, %v8161_v14 }
 0x1c1   : > { %v1774_v9 = vpop.f32.mrf.mxu0  ;;  %v1811_v11 = vpop.f32.mrf.mxu1  ;;  %6890 = vmatmul.mubr.msk.bf16.vlgmr.msra.gmra.mxu1 %vm348_vm2, %v6650_v37 }
 0x1c2   : > { %v1823_v12 = vadd.f32 %v1811_v11, %v8169_v35  ;;  %4585 = vmatpush1.bf16.msra.mxu1 %v4515_v4  ;;  %4602 = vmatprep.mubr.bf16.mxu1 %v7064_v7  ;;  %v4706_v21 = vpop.permute.xlu0 %4705  ;;  %v4708_v23 = vpop.permute.xlu1 %4707  ;;  %v4718_v35 = vsel %vm4717_vm9, %v4702_v63, %v4704_v0 }
 0x1c3   : > { %v1775_v24 = vpop.f32.mrf.mxu0  ;;  %v6819_v25 = vpop.f32.mrf.mxu1  ;;  %6893 = vmatprep.subr.bf16.mxu1 %v7073_v36  ;;  %v4719_v5 = vsel %vm4717_vm9, %v4704_v0, %v4706_v21  ;;  %v4729_v43 = vsel %vm352_vm1, %v4718_v35, 0 }
 0x1c5   : > { %v1814_v13 = vpop.f32.mrf.mxu1  ;;  %v1908_v28 = vpop.f32.mrf.mxu0  ;;  %6661 = vmatmul.mubr.msk.bf16.vlgmr.msra.gmra.mxu0 %vm348_vm2, %v6659_v15 }
 0x1c6   : > { %v2037_v29 = vadd.f32 %v1908_v28, %v1817_v45  ;;  %4626 = vmatpush1.bf16.msra.mxu0 %v4521_v26  ;;  %4643 = vmatprep.mubr.bf16.mxu0 %v7064_v7  ;;  %v4710_v30 = vpop.permute.xlu0 %4709  ;;  %v4712_v31 = vpop.permute.xlu1 %4711  ;;  %v4720_v45 = vsel %vm4717_vm9, %v4706_v21, %v4708_v23 }
 0x1c7   : > { %v6820_v14 = vpop.f32.mrf.mxu1  ;;  %v1910_v32 = vpop.f32.mrf.mxu0  ;;  %6668 = vmatprep.subr.msk.bf16.mxu0 %vm352_vm1, %v4719_v5  ;;  %v4721_v37 = vsel %vm4717_vm9, %v4708_v23, %v4710_v30  ;;  %v4735_v51 = vsel %vm352_vm1, %v4720_v45, 0 }
 0x1c8   : > { %v2038_v34 = vadd.f32 %v1910_v32, %v1818_v19 }
 0x1c9   : > { %v1912_v16 = vpop.f32.mrf.mxu0  ;;  %v1949_v38 = vpop.f32.mrf.mxu1  ;;  %6663 = vmatmul.mubr.msk.bf16.vlgmr.msra.gmra.mxu1 %vm348_vm2, %v6659_v15 }
 0x1ca   : > { %v2039_v39 = vadd.f32 %v1949_v38, %v1819_v53  ;;  %6894 = vmatpush3.bf16.msra.mxu1 %v4527_v33  ;;  %6895 = vmatprep.mubr.msk.bf16.mxu1 %vm7074_vm3, %v7073_v36  ;;  %v4714_v40 = vpop.permute.xlu0 %4713  ;;  %v4716_v41 = vpop.permute.xlu1 %4715  ;;  %v4722_v53 = vsel %vm4717_vm9, %v4710_v30, %v4712_v31 }
 0x1cb   : > { %v1913_v17 = vpop.f32.mrf.mxu0  ;;  %v1951_v42 = vpop.f32.mrf.mxu1  ;;  %6670 = vmatprep.subr.msk.bf16.mxu1 %vm352_vm1, %v4721_v37  ;;  %v4723_v46 = vsel %vm4717_vm9, %v4712_v31, %v4714_v40  ;;  %v4741_v60 = vsel %vm352_vm1, %v4722_v53, 0  ;;  %v4724_v61 = vsel %vm4717_vm9, %v4714_v40, %v4716_v41 }
 0x1cc   : > { %v2040_v44 = vadd.f32 %v1951_v42, %v1820_v22  ;;  %v4747_v9 = vsel %vm352_vm1, %v4724_v61, 0  ;;  %v6675_v42 = vld [vmem:[%s7266_s13 + $0x2a] sm:$0x3] }
 0x1cd   : > { %v1953_v47 = vpop.f32.mrf.mxu1  ;;  %v1990_v10 = vpop.f32.mrf.mxu0  ;;  %6665 = vmatmul.mubr.msk.bf16.vlgmr.msra.gmra.mxu0 %vm348_vm2, %v6659_v15 }
 0x1ce   : > { %v2041_v18 = vadd.f32 %v1990_v10, %v1821_v62  ;;  %4764 = vmatpush1.bf16.msra.mxu0 %v4729_v43  ;;  %4781 = vmatprep.mubr.bf16.mxu0 %v7064_v7  ;;  %v4922_v48 = vpop.permute.xlu0 %4921  ;;  %v4924_v19 = vpop.permute.xlu1 %4923 }
 0x1cf   : > { %v1954_v49 = vpop.f32.mrf.mxu1  ;;  %v1992_v50 = vpop.f32.mrf.mxu0  ;;  %6672 = vmatprep.subr.msk.bf16.mxu0 %vm352_vm1, %v4723_v46 }
 0x1d0   : > { %v2042_v52 = vadd.f32 %v1992_v50, %v1822_v6 }
 0x1d1   : > { %v1994_v20 = vpop.f32.mrf.mxu0  ;;  %v2031_v54 = vpop.f32.mrf.mxu1  ;;  %6896 = vmatmul.mubr.msk.bf16.vlgmr.msra.gmra.mxu1 %vm348_vm2, %v6659_v15 }
 0x1d2   : > { %v2043_v55 = vadd.f32 %v2031_v54, %v1823_v12  ;;  %4805 = vmatpush1.bf16.msra.mxu1 %v4735_v51  ;;  %4822 = vmatprep.mubr.bf16.mxu1 %v7064_v7  ;;  %v4926_v57 = vpop.permute.xlu0 %4925  ;;  %v4928_v22 = vpop.permute.xlu1 %4927  ;;  %v4938_v12 = vsel %vm4937_vm10, %v4922_v48, %v4924_v19 }
 0x1d3   : > { %v1995_v58 = vpop.f32.mrf.mxu0  ;;  %v6825_v59 = vpop.f32.mrf.mxu1  ;;  %6899 = vmatprep.subr.bf16.mxu1 %v7073_v36  ;;  %v4939_v62 = vsel %vm4937_vm10, %v4924_v19, %v4926_v57  ;;  %v4949_v13 = vsel %vm352_vm1, %v4938_v12, 0 }
 0x1d5   : > { %v2034_v63 = vpop.f32.mrf.mxu1  ;;  %v2128_v0 = vpop.f32.mrf.mxu0  ;;  %6669 = vmatmul.mubr.msk.bf16.vlgmr.msra.gmra.mxu0 %vm348_vm2, %v6667_v56 }
 0x1d6   : > { %v2257_v1 = vadd.f32 %v2128_v0, %v2037_v29  ;;  %4846 = vmatpush1.bf16.msra.mxu0 %v4741_v60  ;;  %4863 = vmatprep.mubr.bf16.mxu0 %v7064_v7  ;;  %v4930_v2 = vpop.permute.xlu0 %4929  ;;  %v4932_v4 = vpop.permute.xlu1 %4931  ;;  %v4940_v29 = vsel %vm4937_vm10, %v4926_v57, %v4928_v22 }
 0x1d7   : > { %v6826_v6 = vpop.f32.mrf.mxu1  ;;  %v2130_v8 = vpop.f32.mrf.mxu0  ;;  %6676 = vmatprep.subr.msk.bf16.mxu0 %vm352_vm1, %v4939_v62  ;;  %v4941_v15 = vsel %vm4937_vm10, %v4928_v22, %v4930_v2  ;;  %v4955_v16 = vsel %vm352_vm1, %v4940_v29, 0 }
 0x1d8   : > { %v2258_v11 = vadd.f32 %v2130_v8, %v2038_v34 }
 0x1d9   : > { %v2132_v21 = vpop.f32.mrf.mxu0  ;;  %v2169_v23 = vpop.f32.mrf.mxu1  ;;  %6671 = vmatmul.mubr.msk.bf16.vlgmr.msra.gmra.mxu1 %vm348_vm2, %v6667_v56 }
 0x1da   : > { %v2259_v24 = vadd.f32 %v2169_v23, %v2039_v39  ;;  %6900 = vmatpush3.bf16.msra.mxu1 %v4747_v9  ;;  %6901 = vmatprep.mubr.msk.bf16.mxu1 %vm7074_vm3, %v7073_v36  ;;  %v4934_v25 = vpop.permute.xlu0 %4933  ;;  %v4936_v26 = vpop.permute.xlu1 %4935  ;;  %v4942_v39 = vsel %vm4937_vm10, %v4930_v2, %v4932_v4 }
 0x1db   : > { %v2133_v27 = vpop.f32.mrf.mxu0  ;;  %v2171_v5 = vpop.f32.mrf.mxu1  ;;  %6678 = vmatprep.subr.msk.bf16.mxu1 %vm352_vm1, %v4941_v15  ;;  %v4943_v30 = vsel %vm4937_vm10, %v4932_v4, %v4934_v25  ;;  %v4961_v47 = vsel %vm352_vm1, %v4942_v39, 0  ;;  %v4944_v10 = vsel %vm4937_vm10, %v4934_v25, %v4936_v26 }
 0x1dc   : > { %v2260_v28 = vadd.f32 %v2171_v5, %v2040_v44  ;;  %v4967_v20 = vsel %vm352_vm1, %v4944_v10, 0  ;;  %v6683_v5 = vld [vmem:[%s7266_s13 + $0x2c] sm:$0x3] }
 0x1dd   : > { %v2173_v31 = vpop.f32.mrf.mxu1  ;;  %v2210_v14 = vpop.f32.mrf.mxu0  ;;  %6673 = vmatmul.mubr.msk.bf16.vlgmr.msra.gmra.mxu0 %vm348_vm2, %v6667_v56 }
 0x1de   : > { %v2261_v32 = vadd.f32 %v2210_v14, %v2041_v18  ;;  %4984 = vmatpush1.bf16.msra.mxu0 %v4949_v13  ;;  %5001 = vmatprep.mubr.bf16.mxu0 %v7064_v7  ;;  %v5142_v33 = vpop.permute.xlu0 %5141  ;;  %v5144_v34 = vpop.permute.xlu1 %5143 }
 0x1df   : > { %v2174_v35 = vpop.f32.mrf.mxu1  ;;  %v2212_v37 = vpop.f32.mrf.mxu0  ;;  %6680 = vmatprep.subr.msk.bf16.mxu0 %vm352_vm1, %v4943_v30 }
 0x1e0   : > { %v2262_v38 = vadd.f32 %v2212_v37, %v2042_v52 }
 0x1e1   : > { %v2214_v40 = vpop.f32.mrf.mxu0  ;;  %v2251_v41 = vpop.f32.mrf.mxu1  ;;  %6902 = vmatmul.mubr.msk.bf16.vlgmr.msra.gmra.mxu1 %vm348_vm2, %v6667_v56 }
 0x1e2   : > { %v2263_v17 = vadd.f32 %v2251_v41, %v2043_v55  ;;  %5025 = vmatpush1.bf16.msra.mxu1 %v4955_v16  ;;  %5042 = vmatprep.mubr.bf16.mxu1 %v7064_v7  ;;  %v5146_v43 = vpop.permute.xlu0 %5145  ;;  %v5148_v44 = vpop.permute.xlu1 %5147  ;;  %v5158_v55 = vsel %vm5157_vm11, %v5142_v33, %v5144_v34 }
 0x1e3   : > { %v2215_v45 = vpop.f32.mrf.mxu0  ;;  %v6831_v46 = vpop.f32.mrf.mxu1  ;;  %6905 = vmatprep.subr.bf16.mxu1 %v7073_v36  ;;  %v5159_v18 = vsel %vm5157_vm11, %v5144_v34, %v5146_v43  ;;  %v5169_v63 = vsel %vm352_vm1, %v5158_v55, 0 }
 0x1e5   : > { %v2254_v48 = vpop.f32.mrf.mxu1  ;;  %v2348_v19 = vpop.f32.mrf.mxu0  ;;  %6677 = vmatmul.mubr.msk.bf16.vlgmr.msra.gmra.mxu0 %vm348_vm2, %v6675_v42 }
 0x1e6   : > { %v2477_v49 = vadd.f32 %v2348_v19, %v2257_v1  ;;  %5066 = vmatpush1.bf16.msra.mxu0 %v4961_v47  ;;  %5083 = vmatprep.mubr.bf16.mxu0 %v7064_v7  ;;  %v5150_v50 = vpop.permute.xlu0 %5149  ;;  %v5152_v51 = vpop.permute.xlu1 %5151  ;;  %v5160_v1 = vsel %vm5157_vm11, %v5146_v43, %v5148_v44 }
 0x1e7   : > { %v6832_v52 = vpop.f32.mrf.mxu1  ;;  %v2350_v53 = vpop.f32.mrf.mxu0  ;;  %6684 = vmatprep.subr.msk.bf16.mxu0 %vm352_vm1, %v5159_v18  ;;  %v5161_v56 = vsel %vm5157_vm11, %v5148_v44, %v5150_v50  ;;  %v5175_v21 = vsel %vm352_vm1, %v5160_v1, 0 }
 0x1e8   : > { %v2478_v54 = vadd.f32 %v2350_v53, %v2258_v11 }
 0x1e9   : > { %v2352_v57 = vpop.f32.mrf.mxu0  ;;  %v2389_v22 = vpop.f32.mrf.mxu1  ;;  %6679 = vmatmul.mubr.msk.bf16.vlgmr.msra.gmra.mxu1 %vm348_vm2, %v6675_v42 }
 0x1ea   : > { %v2479_v58 = vadd.f32 %v2389_v22, %v2259_v24  ;;  %6906 = vmatpush3.bf16.msra.mxu1 %v4967_v20  ;;  %6907 = vmatprep.mubr.msk.bf16.mxu1 %vm7074_vm3, %v7073_v36  ;;  %v5154_v59 = vpop.permute.xlu0 %5153  ;;  %v5156_v60 = vpop.permute.xlu1 %5155  ;;  %v5162_v24 = vsel %vm5157_vm11, %v5150_v50, %v5152_v51 }
 0x1eb   : > { %v2353_v61 = vpop.f32.mrf.mxu0  ;;  %v2391_v62 = vpop.f32.mrf.mxu1  ;;  %6686 = vmatprep.subr.msk.bf16.mxu1 %vm352_vm1, %v5161_v56  ;;  %v5163_v2 = vsel %vm5157_vm11, %v5152_v51, %v5154_v59  ;;  %v5181_v31 = vsel %vm352_vm1, %v5162_v24, 0  ;;  %v5164_v14 = vsel %vm5157_vm11, %v5154_v59, %v5156_v60 }
 0x1ec   : > { %v2480_v0 = vadd.f32 %v2391_v62, %v2260_v28  ;;  %v5187_v40 = vsel %vm352_vm1, %v5164_v14, 0  ;;  %v6691_v62 = vld [vmem:[%s7266_s13 + $0x2e] sm:$0x3] }
 0x1ed   : > { %v2393_v4 = vpop.f32.mrf.mxu1  ;;  %v2430_v6 = vpop.f32.mrf.mxu0  ;;  %6681 = vmatmul.mubr.msk.bf16.vlgmr.msra.gmra.mxu0 %vm348_vm2, %v6675_v42 }
 0x1ee   : > { %v2481_v8 = vadd.f32 %v2430_v6, %v2261_v32  ;;  %5204 = vmatpush1.bf16.msra.mxu0 %v5169_v63  ;;  %5221 = vmatprep.mubr.bf16.mxu0 %v7064_v7  ;;  %v5362_v9 = vpop.permute.xlu0 %5361  ;;  %v5364_v11 = vpop.permute.xlu1 %5363 }
 0x1ef   : > { %v2394_v12 = vpop.f32.mrf.mxu1  ;;  %v2432_v15 = vpop.f32.mrf.mxu0  ;;  %6688 = vmatprep.subr.msk.bf16.mxu0 %vm352_vm1, %v5163_v2 }
 0x1f0   : > { %v2482_v23 = vadd.f32 %v2432_v15, %v2262_v38 }
 0x1f1   : > { %v2434_v25 = vpop.f32.mrf.mxu0  ;;  %v2471_v26 = vpop.f32.mrf.mxu1  ;;  %6908 = vmatmul.mubr.msk.bf16.vlgmr.msra.gmra.mxu1 %vm348_vm2, %v6675_v42 }
 0x1f2   : > { %v2483_v27 = vadd.f32 %v2471_v26, %v2263_v17  ;;  %5245 = vmatpush1.bf16.msra.mxu1 %v5175_v21  ;;  %5262 = vmatprep.mubr.bf16.mxu1 %v7064_v7  ;;  %v5366_v13 = vpop.permute.xlu0 %5365  ;;  %v5368_v28 = vpop.permute.xlu1 %5367  ;;  %v5378_v17 = vsel %vm5377_vm12, %v5362_v9, %v5364_v11 }
 0x1f3   : > { %v2435_v29 = vpop.f32.mrf.mxu0  ;;  %v6837_v30 = vpop.f32.mrf.mxu1  ;;  %6911 = vmatprep.subr.bf16.mxu1 %v7073_v36  ;;  %v5379_v32 = vsel %vm5377_vm12, %v5364_v11, %v5366_v13  ;;  %v5389_v48 = vsel %vm352_vm1, %v5378_v17, 0 }
 0x1f5   : > { %v2474_v33 = vpop.f32.mrf.mxu1  ;;  %v2568_v34 = vpop.f32.mrf.mxu0  ;;  %6685 = vmatmul.mubr.msk.bf16.vlgmr.msra.gmra.mxu0 %vm348_vm2, %v6683_v5 }
 0x1f6   : > { %v2697_v35 = vadd.f32 %v2568_v34, %v2477_v49  ;;  %5286 = vmatpush1.bf16.msra.mxu0 %v5181_v31  ;;  %5303 = vmatprep.mubr.bf16.mxu0 %v7064_v7  ;;  %v5370_v37 = vpop.permute.xlu0 %5369  ;;  %v5372_v16 = vpop.permute.xlu1 %5371  ;;  %v5380_v49 = vsel %vm5377_vm12, %v5366_v13, %v5368_v28 }
 0x1f7   : > { %v6838_v38 = vpop.f32.mrf.mxu1  ;;  %v2570_v39 = vpop.f32.mrf.mxu0  ;;  %6692 = vmatprep.subr.msk.bf16.mxu0 %vm352_vm1, %v5379_v32  ;;  %v5381_v42 = vsel %vm5377_vm12, %v5368_v28, %v5370_v37  ;;  %v5395_v57 = vsel %vm352_vm1, %v5380_v49, 0 }
 0x1f8   : > { %v2698_v41 = vadd.f32 %v2570_v39, %v2478_v54 }
 0x1f9   : > { %v2572_v43 = vpop.f32.mrf.mxu0  ;;  %v2609_v44 = vpop.f32.mrf.mxu1  ;;  %6687 = vmatmul.mubr.msk.bf16.vlgmr.msra.gmra.mxu1 %vm348_vm2, %v6683_v5 }
 0x1fa   : > { %v2699_v45 = vadd.f32 %v2609_v44, %v2479_v58  ;;  %6912 = vmatpush3.bf16.msra.mxu1 %v5187_v40  ;;  %6913 = vmatprep.mubr.msk.bf16.mxu1 %vm7074_vm3, %v7073_v36  ;;  %v5374_v46 = vpop.permute.xlu0 %5373  ;;  %v5376_v47 = vpop.permute.xlu1 %5375  ;;  %v5382_v58 = vsel %vm5377_vm12, %v5370_v37, %v5372_v16 }
 0x1fb   : > { %v2573_v10 = vpop.f32.mrf.mxu0  ;;  %v2611_v18 = vpop.f32.mrf.mxu1  ;;  %6694 = vmatprep.subr.msk.bf16.mxu1 %vm352_vm1, %v5381_v42  ;;  %v5383_v50 = vsel %vm5377_vm12, %v5372_v16, %v5374_v46  ;;  %v5401_v4 = vsel %vm352_vm1, %v5382_v58, 0  ;;  %v5384_v6 = vsel %vm5377_vm12, %v5374_v46, %v5376_v47 }
 0x1fc   : > { %v2700_v19 = vadd.f32 %v2611_v18, %v2480_v0  ;;  %v5407_v25 = vsel %vm352_vm1, %v5384_v6, 0  ;;  %v6699_v18 = vld [vmem:[%s7266_s13 + $0x30] sm:$0x3] }
 0x1fd   : > { %v2613_v51 = vpop.f32.mrf.mxu1  ;;  %v2650_v52 = vpop.f32.mrf.mxu0  ;;  %6689 = vmatmul.mubr.msk.bf16.vlgmr.msra.gmra.mxu0 %vm348_vm2, %v6683_v5 }
 0x1fe   : > { %v2701_v53 = vadd.f32 %v2650_v52, %v2481_v8  ;;  %5424 = vmatpush1.bf16.msra.mxu0 %v5389_v48  ;;  %5441 = vmatprep.mubr.bf16.mxu0 %v7064_v7  ;;  %v5582_v20 = vpop.permute.xlu0 %5581  ;;  %v5584_v54 = vpop.permute.xlu1 %5583 }
 0x1ff   : > { %v2614_v55 = vpop.f32.mrf.mxu1  ;;  %v2652_v56 = vpop.f32.mrf.mxu0  ;;  %6696 = vmatprep.subr.msk.bf16.mxu0 %vm352_vm1, %v5383_v50 }
 0x200   : > { %v2702_v22 = vadd.f32 %v2652_v56, %v2482_v23 }
 0x201   : > { %v2654_v59 = vpop.f32.mrf.mxu0  ;;  %v2691_v60 = vpop.f32.mrf.mxu1  ;;  %6914 = vmatmul.mubr.msk.bf16.vlgmr.msra.gmra.mxu1 %vm348_vm2, %v6683_v5 }
 0x202   : > { %v2703_v61 = vadd.f32 %v2691_v60, %v2483_v27  ;;  %5465 = vmatpush1.bf16.msra.mxu1 %v5395_v57  ;;  %5482 = vmatprep.mubr.bf16.mxu1 %v7064_v7  ;;  %v5586_v63 = vpop.permute.xlu0 %5585  ;;  %v5588_v0 = vpop.permute.xlu1 %5587  ;;  %v5598_v27 = vsel %vm5597_vm13, %v5582_v20, %v5584_v54 }
 0x203   : > { %v2655_v1 = vpop.f32.mrf.mxu0  ;;  %v6843_v2 = vpop.f32.mrf.mxu1  ;;  %6917 = vmatprep.subr.bf16.mxu1 %v7073_v36  ;;  %v5599_v8 = vsel %vm5597_vm13, %v5584_v54, %v5586_v63  ;;  %v5609_v33 = vsel %vm352_vm1, %v5598_v27, 0 }
 0x205   : > { %v2694_v9 = vpop.f32.mrf.mxu1  ;;  %v2788_v11 = vpop.f32.mrf.mxu0  ;;  %6693 = vmatmul.mubr.msk.bf16.vlgmr.msra.gmra.mxu0 %vm348_vm2, %v6691_v62 }
 0x206   : > { %v2917_v12 = vadd.f32 %v2788_v11, %v2697_v35  ;;  %5506 = vmatpush1.bf16.msra.mxu0 %v5401_v4  ;;  %5523 = vmatprep.mubr.bf16.mxu0 %v7064_v7  ;;  %v5590_v15 = vpop.permute.xlu0 %5589  ;;  %v5592_v21 = vpop.permute.xlu1 %5591  ;;  %v5600_v35 = vsel %vm5597_vm13, %v5586_v63, %v5588_v0 }
 0x207   : > { %v6844_v23 = vpop.f32.mrf.mxu1  ;;  %v2790_v24 = vpop.f32.mrf.mxu0  ;;  %6700 = vmatprep.subr.msk.bf16.mxu0 %vm352_vm1, %v5599_v8  ;;  %v5601_v5 = vsel %vm5597_vm13, %v5588_v0, %v5590_v15  ;;  %v5615_v43 = vsel %vm352_vm1, %v5600_v35, 0 }
 0x208   : > { %v2918_v26 = vadd.f32 %v2790_v24, %v2698_v41 }
 0x209   : > { %v2792_v13 = vpop.f32.mrf.mxu0  ;;  %v2829_v28 = vpop.f32.mrf.mxu1  ;;  %6695 = vmatmul.mubr.msk.bf16.vlgmr.msra.gmra.mxu1 %vm348_vm2, %v6691_v62 }
 0x20a   : > { %v2919_v29 = vadd.f32 %v2829_v28, %v2699_v45  ;;  %6918 = vmatpush3.bf16.msra.mxu1 %v5407_v25  ;;  %6919 = vmatprep.mubr.msk.bf16.mxu1 %vm7074_vm3, %v7073_v36  ;;  %v5594_v30 = vpop.permute.xlu0 %5593  ;;  %v5596_v31 = vpop.permute.xlu1 %5595  ;;  %v5602_v45 = vsel %vm5597_vm13, %v5590_v15, %v5592_v21 }
 0x20b   : > { %v2793_v14 = vpop.f32.mrf.mxu0  ;;  %v2831_v32 = vpop.f32.mrf.mxu1  ;;  %6702 = vmatprep.subr.msk.bf16.mxu1 %vm352_vm1, %v5601_v5  ;;  %v5603_v37 = vsel %vm5597_vm13, %v5592_v21, %v5594_v30  ;;  %v5621_v51 = vsel %vm352_vm1, %v5602_v45, 0  ;;  %v5604_v52 = vsel %vm5597_vm13, %v5594_v30, %v5596_v31 }
 0x20c   : > { %v2920_v34 = vadd.f32 %v2831_v32, %v2700_v19  ;;  %v5627_v59 = vsel %vm352_vm1, %v5604_v52, 0  ;;  %v6707_v32 = vld [vmem:[%s7266_s13 + $0x32] sm:$0x3] }
 0x20d   : > { %v2833_v16 = vpop.f32.mrf.mxu1  ;;  %v2870_v38 = vpop.f32.mrf.mxu0  ;;  %6697 = vmatmul.mubr.msk.bf16.vlgmr.msra.gmra.mxu0 %vm348_vm2, %v6691_v62 }
 0x20e   : > { %v2921_v39 = vadd.f32 %v2870_v38, %v2701_v53  ;;  %5644 = vmatpush1.bf16.msra.mxu0 %v5609_v33  ;;  %5661 = vmatprep.mubr.bf16.mxu0 %v7064_v7  ;;  %v5802_v40 = vpop.permute.xlu0 %5801  ;;  %v5804_v41 = vpop.permute.xlu1 %5803 }
 0x20f   : > { %v2834_v17 = vpop.f32.mrf.mxu1  ;;  %v2872_v42 = vpop.f32.mrf.mxu0  ;;  %6704 = vmatprep.subr.msk.bf16.mxu0 %vm352_vm1, %v5603_v37 }
 0x210   : > { %v2922_v44 = vadd.f32 %v2872_v42, %v2702_v22 }
 0x211   : > { %v2874_v46 = vpop.f32.mrf.mxu0  ;;  %v2911_v47 = vpop.f32.mrf.mxu1  ;;  %6920 = vmatmul.mubr.msk.bf16.vlgmr.msra.gmra.mxu1 %vm348_vm2, %v6691_v62 }
 0x212   : > { %v2923_v10 = vadd.f32 %v2911_v47, %v2703_v61  ;;  %5685 = vmatpush1.bf16.msra.mxu1 %v5615_v43  ;;  %5702 = vmatprep.mubr.bf16.mxu1 %v7064_v7  ;;  %v5806_v48 = vpop.permute.xlu0 %5805  ;;  %v5808_v19 = vpop.permute.xlu1 %5807  ;;  %v5818_v61 = vsel %vm5817_vm14, %v5802_v40, %v5804_v41 }
 0x213   : > { %v2875_v49 = vpop.f32.mrf.mxu0  ;;  %v6849_v50 = vpop.f32.mrf.mxu1  ;;  %6923 = vmatprep.subr.bf16.mxu1 %v7073_v36  ;;  %v5819_v53 = vsel %vm5817_vm14, %v5804_v41, %v5806_v48  ;;  %v5829_v9 = vsel %vm352_vm1, %v5818_v61, 0 }
 0x215   : > { %v2914_v20 = vpop.f32.mrf.mxu1  ;;  %v3008_v54 = vpop.f32.mrf.mxu0  ;;  %6701 = vmatmul.mubr.msk.bf16.vlgmr.msra.gmra.mxu0 %vm348_vm2, %v6699_v18 }
 0x216   : > { %v3137_v55 = vadd.f32 %v3008_v54, %v2917_v12  ;;  %5726 = vmatpush1.bf16.msra.mxu0 %v5621_v51  ;;  %5743 = vmatprep.mubr.bf16.mxu0 %v7064_v7  ;;  %v5810_v56 = vpop.permute.xlu0 %5809  ;;  %v5812_v57 = vpop.permute.xlu1 %5811  ;;  %v5820_v12 = vsel %vm5817_vm14, %v5806_v48, %v5808_v19 }
 0x217   : > { %v6850_v22 = vpop.f32.mrf.mxu1  ;;  %v3010_v58 = vpop.f32.mrf.mxu0  ;;  %6708 = vmatprep.subr.msk.bf16.mxu0 %vm352_vm1, %v5819_v53  ;;  %v5821_v62 = vsel %vm5817_vm14, %v5808_v19, %v5810_v56  ;;  %v5835_v13 = vsel %vm352_vm1, %v5820_v12, 0 }
 0x218   : > { %v3138_v60 = vadd.f32 %v3010_v58, %v2918_v26 }
 0x219   : > { %v3012_v63 = vpop.f32.mrf.mxu0  ;;  %v3049_v0 = vpop.f32.mrf.mxu1  ;;  %6703 = vmatmul.mubr.msk.bf16.vlgmr.msra.gmra.mxu1 %vm348_vm2, %v6699_v18 }
 0x21a   : > { %v3139_v1 = vadd.f32 %v3049_v0, %v2919_v29  ;;  %6924 = vmatpush3.bf16.msra.mxu1 %v5627_v59  ;;  %6925 = vmatprep.mubr.msk.bf16.mxu1 %vm7074_vm3, %v7073_v36  ;;  %v5814_v2 = vpop.permute.xlu0 %5813  ;;  %v5816_v4 = vpop.permute.xlu1 %5815  ;;  %v5822_v29 = vsel %vm5817_vm14, %v5810_v56, %v5812_v57 }
 0x21b   : > { %v3013_v6 = vpop.f32.mrf.mxu0  ;;  %v3051_v8 = vpop.f32.mrf.mxu1  ;;  %6710 = vmatprep.subr.msk.bf16.mxu1 %vm352_vm1, %v5821_v62  ;;  %v5823_v15 = vsel %vm5817_vm14, %v5812_v57, %v5814_v2  ;;  %v5841_v16 = vsel %vm352_vm1, %v5822_v29, 0  ;;  %v5824_v38 = vsel %vm5817_vm14, %v5814_v2, %v5816_v4  ;;  %v6715_v4 = vld [vmem:[%s7266_s13 + $0x34] sm:$0x3] }
 0x21c   : > { %v3140_v11 = vadd.f32 %v3051_v8, %v2920_v34  ;;  %v5847_v45 = vsel %vm352_vm1, %v5824_v38, 0 }
 0x21d   : > { %v3053_v21 = vpop.f32.mrf.mxu1  ;;  %v3090_v23 = vpop.f32.mrf.mxu0  ;;  %6705 = vmatmul.mubr.msk.bf16.vlgmr.msra.gmra.mxu0 %vm348_vm2, %v6699_v18 }
 0x21e   : > { %v3141_v24 = vadd.f32 %v3090_v23, %v2921_v39  ;;  %5864 = vmatpush1.bf16.msra.mxu0 %v5829_v9  ;;  %5881 = vmatprep.mubr.bf16.mxu0 %v7064_v7  ;;  %v6022_v25 = vpop.permute.xlu0 %6021  ;;  %v6024_v26 = vpop.permute.xlu1 %6023 }
 0x21f   : > { %v3054_v27 = vpop.f32.mrf.mxu1  ;;  %v3092_v5 = vpop.f32.mrf.mxu0  ;;  %6712 = vmatprep.subr.msk.bf16.mxu0 %vm352_vm1, %v5823_v15  ;;  %v6038_v47 = vsel %vm6037_vm15, %v6022_v25, %v6024_v26 }
 0x220   : > { %v3142_v28 = vadd.f32 %v3092_v5, %v2922_v44  ;;  %v6049_v53 = vsel %vm352_vm1, %v6038_v47, 0 }
 0x221   : > { %v3094_v30 = vpop.f32.mrf.mxu0  ;;  %v3131_v31 = vpop.f32.mrf.mxu1  ;;  %6926 = vmatmul.mubr.msk.bf16.vlgmr.msra.gmra.mxu1 %vm348_vm2, %v6699_v18 }
 0x222   : > { %v3143_v14 = vadd.f32 %v3131_v31, %v2923_v10  ;;  %5905 = vmatpush1.bf16.msra.mxu1 %v5835_v13  ;;  %5922 = vmatprep.mubr.bf16.mxu1 %v7064_v7  ;;  %v6026_v33 = vpop.permute.xlu0 %6025  ;;  %v6028_v34 = vpop.permute.xlu1 %6027 }
 0x223   : > { %v3095_v35 = vpop.f32.mrf.mxu0  ;;  %v6855_v37 = vpop.f32.mrf.mxu1  ;;  %6929 = vmatprep.subr.bf16.mxu1 %v7073_v36  ;;  %v6039_v39 = vsel %vm6037_vm15, %v6024_v26, %v6026_v33  ;;  %v6040_v54 = vsel %vm6037_vm15, %v6026_v33, %v6028_v34 }
 0x225   : > { %v3134_v40 = vpop.f32.mrf.mxu1  ;;  %v3228_v41 = vpop.f32.mrf.mxu0  ;;  %6709 = vmatmul.mubr.msk.bf16.vlgmr.msra.gmra.mxu0 %vm348_vm2, %v6707_v32 }
 0x226   : > { %v3357_v17 = vadd.f32 %v3228_v41, %v3137_v55  ;;  %5946 = vmatpush1.bf16.msra.mxu0 %v5841_v16  ;;  %5963 = vmatprep.mubr.bf16.mxu0 %v7064_v7  ;;  %v6030_v42 = vpop.permute.xlu0 %6029  ;;  %v6032_v18 = vpop.permute.xlu1 %6031 }
 0x227   : > { %v6856_v43 = vpop.f32.mrf.mxu1  ;;  %v3230_v44 = vpop.f32.mrf.mxu0  ;;  %6716 = vmatprep.subr.msk.bf16.mxu0 %vm352_vm1, %v6039_v39  ;;  %v6041_v10 = vsel %vm6037_vm15, %v6028_v34, %v6030_v42  ;;  %v6042_v62 = vsel %vm6037_vm15, %v6030_v42, %v6032_v18 }
 0x228   : > { %v3358_v46 = vadd.f32 %v3230_v44, %v3138_v60  ;;  %v6055_v60 = vsel %vm352_vm1, %v6040_v54, 0  ;;  %v6061_v9 = vsel %vm352_vm1, %v6042_v62, 0 }
 0x229   : > { %v3232_v48 = vpop.f32.mrf.mxu0  ;;  %v3269_v19 = vpop.f32.mrf.mxu1  ;;  %6711 = vmatmul.mubr.msk.bf16.vlgmr.msra.gmra.mxu1 %vm348_vm2, %v6707_v32 }
 0x22a   : > { %v3359_v49 = vadd.f32 %v3269_v19, %v3139_v1  ;;  %6930 = vmatpush3.bf16.msra.mxu1 %v5847_v45  ;;  %6931 = vmatprep.mubr.msk.bf16.mxu1 %vm7074_vm3, %v7073_v36  ;;  %v6034_v50 = vpop.permute.xlu0 %6033  ;;  %v6036_v63 = vpop.permute.xlu1 %6035 }
 0x22b   : > { %v3233_v51 = vpop.f32.mrf.mxu0  ;;  %v3271_v52 = vpop.f32.mrf.mxu1  ;;  %6718 = vmatprep.subr.msk.bf16.mxu1 %vm352_vm1, %v6041_v10  ;;  %v6043_v55 = vsel %vm6037_vm15, %v6032_v18, %v6034_v50 }
 0x22c   : > { %v3360_v20 = vadd.f32 %v3271_v52, %v3140_v11  ;;  %v6044_v11 = vsel %vm6037_vm15, %v6034_v50, %v6036_v63 }
 0x22d   : > { %v3273_v56 = vpop.f32.mrf.mxu1  ;;  %v3310_v57 = vpop.f32.mrf.mxu0  ;;  %6713 = vmatmul.mubr.msk.bf16.vlgmr.msra.gmra.mxu0 %vm348_vm2, %v6707_v32  ;;  %v6067_v25 = vsel %vm352_vm1, %v6044_v11, 0 }
 0x22e   : > { %v3361_v22 = vadd.f32 %v3310_v57, %v3141_v24  ;;  %6084 = vmatpush1.bf16.msra.mxu0 %v6049_v53  ;;  %6101 = vmatprep.mubr.bf16.mxu0 %v7064_v7 }
 0x22f   : > { %v3274_v58 = vpop.f32.mrf.mxu1  ;;  %v3312_v59 = vpop.f32.mrf.mxu0  ;;  %6720 = vmatprep.subr.msk.bf16.mxu0 %vm352_vm1, %v6043_v55  ;;  %vm6283_vm1 = vcmask 1043456  }
 0x230   : > { %v3362_v61 = vadd.f32 %v3312_v59, %v3142_v28 }
 0x231   : > { %v3314_v0 = vpop.f32.mrf.mxu0  ;;  %v3351_v1 = vpop.f32.mrf.mxu1  ;;  %6932 = vmatmul.mubr.msk.bf16.vlgmr.msra.gmra.mxu1 %vm348_vm2, %v6707_v32 }
 0x232   : > { %v3363_v2 = vadd.f32 %v3351_v1, %v3143_v14  ;;  %6125 = vmatpush1.bf16.msra.mxu1 %v6055_v60  ;;  %6142 = vmatprep.mubr.bf16.mxu1 %v7064_v7 }
 0x233   : > { %v3315_v6 = vpop.f32.mrf.mxu0  ;;  %v6861_v8 = vpop.f32.mrf.mxu1  ;;  %6935 = vmatprep.subr.bf16.mxu1 %v7073_v36 }
 0x235   : > { %v3354_v12 = vpop.f32.mrf.mxu1  ;;  %v3448_v15 = vpop.f32.mrf.mxu0  ;;  %6717 = vmatmul.mubr.msk.bf16.vlgmr.msra.gmra.mxu0 %vm348_vm2, %v6715_v4 }
 0x236   : > { %v3577_v21 = vadd.f32 %v3448_v15, %v3357_v17  ;;  %6166 = vmatpush1.bf16.msra.mxu0 %v6061_v9  ;;  %6183 = vmatprep.mubr.bf16.mxu0 %v7064_v7 }
 0x237   : > { %v6862_v23 = vpop.f32.mrf.mxu1  ;;  %v3450_v24 = vpop.f32.mrf.mxu0 }
 0x238   : > { %v3578_v26 = vadd.f32 %v3450_v24, %v3358_v46 }
 0x239   : > { %v3452_v27 = vpop.f32.mrf.mxu0  ;;  %v3489_v5 = vpop.f32.mrf.mxu1  ;;  %6719 = vmatmul.mubr.msk.bf16.vlgmr.msra.gmra.mxu1 %vm348_vm2, %v6715_v4 }
 0x23a   : > { %v3579_v13 = vadd.f32 %v3489_v5, %v3359_v49  ;;  %6936 = vmatpush3.bf16.msra.mxu1 %v6067_v25  ;;  %6937 = vmatprep.mubr.msk.bf16.mxu1 %vm7074_vm3, %v7073_v36 }
 0x23b   : > { %v3453_v28 = vpop.f32.mrf.mxu0  ;;  %v3491_v29 = vpop.f32.mrf.mxu1 }
 0x23c   : > { %v3580_v30 = vadd.f32 %v3491_v29, %v3360_v20 }
 0x23d   : > { %v3493_v31 = vpop.f32.mrf.mxu1  ;;  %v3530_v14 = vpop.f32.mrf.mxu0  ;;  %6721 = vmatmul.mubr.msk.bf16.vlgmr.msra.gmra.mxu0 %vm348_vm2, %v6715_v4 }
 0x23e   : > { %v3581_v7 = vadd.f32 %v3530_v14, %v3361_v22 }
 0x23f   : > { %v3494_v32 = vpop.f32.mrf.mxu1  ;;  %v3532_v33 = vpop.f32.mrf.mxu0 }
 0x240   : > { %v3582_v34 = vadd.f32 %v3532_v33, %v3362_v61 }
 0x241   : > { %v3534_v35 = vpop.f32.mrf.mxu0  ;;  %v3571_v37 = vpop.f32.mrf.mxu1  ;;  %6938 = vmatmul.mubr.msk.bf16.vlgmr.msra.gmra.mxu1 %vm348_vm2, %v6715_v4 }
 0x242   : > { %v3583_v16 = vadd.f32 %v3571_v37, %v3363_v2 }
 0x243   : > { %v3535_v38 = vpop.f32.mrf.mxu0  ;;  %v6867_v39 = vpop.f32.mrf.mxu1 }
 0x245   : > { %v3574_v40 = vpop.f32.mrf.mxu1  ;;  %v3668_v36 = vpop.f32.mrf.mxu0 }
 0x246   : > { %v3797_v41 = vadd.f32 %v3668_v36, %v3577_v21 }
 0x247   : > { %v6868_v17 = vpop.f32.mrf.mxu1  ;;  %v3670_v42 = vpop.f32.mrf.mxu0 }
 0x248   : > { %v3798_v43 = vadd.f32 %v3670_v42, %v3578_v26 }
 0x249   : > { %v3672_v44 = vpop.f32.mrf.mxu0  ;;  %v3709_v45 = vpop.f32.mrf.mxu1 }
 0x24a   : > { %v3799_v46 = vadd.f32 %v3709_v45, %v3579_v13 }
 0x24b   : > { %v3673_v47 = vpop.f32.mrf.mxu0  ;;  %v3711_v10 = vpop.f32.mrf.mxu1 }
 0x24c   : > { %v3800_v18 = vadd.f32 %v3711_v10, %v3580_v30 }
 0x24d   : > { %v3713_v48 = vpop.f32.mrf.mxu1  ;;  %v3750_v19 = vpop.f32.mrf.mxu0 }
 0x24e   : > { %v3801_v49 = vadd.f32 %v3750_v19, %v3581_v7 }
 0x24f   : > { %v3714_v50 = vpop.f32.mrf.mxu1  ;;  %v3752_v51 = vpop.f32.mrf.mxu0 }
 0x250   : > { %v3802_v52 = vadd.f32 %v3752_v51, %v3582_v34 }
 0x251   : > { %v3754_v53 = vpop.f32.mrf.mxu0  ;;  %v3791_v20 = vpop.f32.mrf.mxu1 }
 0x252   : > { %v3803_v54 = vadd.f32 %v3791_v20, %v3583_v16 }
 0x253   : > { %v3755_v55 = vpop.f32.mrf.mxu0  ;;  %v6873_v56 = vpop.f32.mrf.mxu1 }
 0x255   : > { %v3794_v57 = vpop.f32.mrf.mxu1  ;;  %v3888_v22 = vpop.f32.mrf.mxu0 }
 0x256   : > { %v4017_v58 = vadd.f32 %v3888_v22, %v3797_v41 }
 0x257   : > { %v6874_v59 = vpop.f32.mrf.mxu1  ;;  %v3890_v60 = vpop.f32.mrf.mxu0 }
 0x258   : > { %v4018_v61 = vadd.f32 %v3890_v60, %v3798_v43 }
 0x259   : > { %v3892_v62 = vpop.f32.mrf.mxu0  ;;  %v3929_v63 = vpop.f32.mrf.mxu1 }
 0x25a   : > { %v4019_v0 = vadd.f32 %v3929_v63, %v3799_v46 }
 0x25b   : > { %v3893_v1 = vpop.f32.mrf.mxu0  ;;  %v3931_v2 = vpop.f32.mrf.mxu1 }
 0x25c   : > { %v4020_v4 = vadd.f32 %v3931_v2, %v3800_v18 }
 0x25d   : > { %v3933_v6 = vpop.f32.mrf.mxu1  ;;  %v3970_v8 = vpop.f32.mrf.mxu0 }
 0x25e   : > { %v4021_v9 = vadd.f32 %v3970_v8, %v3801_v49 }
 0x25f   : > { %v3934_v11 = vpop.f32.mrf.mxu1  ;;  %v3972_v12 = vpop.f32.mrf.mxu0 }
 0x260   : > { %v4022_v15 = vadd.f32 %v3972_v12, %v3802_v52 }
 0x261   : > { %v3974_v21 = vpop.f32.mrf.mxu0  ;;  %v4011_v23 = vpop.f32.mrf.mxu1 }
 0x262   : > { %v4023_v24 = vadd.f32 %v4011_v23, %v3803_v54 }
 0x263   : > { %v3975_v25 = vpop.f32.mrf.mxu0  ;;  %v6879_v26 = vpop.f32.mrf.mxu1 }
 0x265   : > { %v4014_v27 = vpop.f32.mrf.mxu1  ;;  %v4108_v5 = vpop.f32.mrf.mxu0 }
 0x266   : > { %v4237_v13 = vadd.f32 %v4108_v5, %v4017_v58 }
 0x267   : > { %v6880_v28 = vpop.f32.mrf.mxu1  ;;  %v4110_v29 = vpop.f32.mrf.mxu0 }
 0x268   : > { %v4238_v30 = vadd.f32 %v4110_v29, %v4018_v61 }
 0x269   : > { %v4112_v31 = vpop.f32.mrf.mxu0  ;;  %v4149_v14 = vpop.f32.mrf.mxu1 }
 0x26a   : > { %v4239_v7 = vadd.f32 %v4149_v14, %v4019_v0 }
 0x26b   : > { %v4113_v32 = vpop.f32.mrf.mxu0  ;;  %v4151_v33 = vpop.f32.mrf.mxu1 }
 0x26c   : > { %v4240_v34 = vadd.f32 %v4151_v33, %v4020_v4 }
 0x26d   : > { %v4153_v35 = vpop.f32.mrf.mxu1  ;;  %v4190_v37 = vpop.f32.mrf.mxu0 }
 0x26e   : > { %v4241_v16 = vadd.f32 %v4190_v37, %v4021_v9 }
 0x26f   : > { %v4154_v38 = vpop.f32.mrf.mxu1  ;;  %v4192_v39 = vpop.f32.mrf.mxu0 }
 0x270   : > { %v4242_v40 = vadd.f32 %v4192_v39, %v4022_v15 }
 0x271   : > { %v4194_v36 = vpop.f32.mrf.mxu0  ;;  %v4231_v41 = vpop.f32.mrf.mxu1 }
 0x272   : > { %v4243_v17 = vadd.f32 %v4231_v41, %v4023_v24 }
 0x273   : > { %v4195_v42 = vpop.f32.mrf.mxu0  ;;  %v6885_v43 = vpop.f32.mrf.mxu1 }
 0x275   : > { %v4234_v44 = vpop.f32.mrf.mxu1  ;;  %v4343_v45 = vpop.f32.mrf.mxu0 }
 0x276   : > { %v4472_v46 = vadd.f32 %v4343_v45, %v4237_v13 }
 0x277   : > { %v6886_v47 = vpop.f32.mrf.mxu1  ;;  %v4345_v10 = vpop.f32.mrf.mxu0 }
 0x278   : > { %v4473_v18 = vadd.f32 %v4345_v10, %v4238_v30 }
 0x279   : > { %v4347_v48 = vpop.f32.mrf.mxu0  ;;  %v4384_v19 = vpop.f32.mrf.mxu1 }
 0x27a   : > { %v4474_v49 = vadd.f32 %v4384_v19, %v4239_v7 }
 0x27b   : > { %v4348_v50 = vpop.f32.mrf.mxu0  ;;  %v4386_v51 = vpop.f32.mrf.mxu1 }
 0x27c   : > { %v4475_v52 = vadd.f32 %v4386_v51, %v4240_v34 }
 0x27d   : > { %v4388_v53 = vpop.f32.mrf.mxu1  ;;  %v4425_v20 = vpop.f32.mrf.mxu0 }
 0x27e   : > { %v4476_v54 = vadd.f32 %v4425_v20, %v4241_v16 }
 0x27f   : > { %v4389_v55 = vpop.f32.mrf.mxu1  ;;  %v4427_v56 = vpop.f32.mrf.mxu0 }
 0x280   : > { %v4477_v57 = vadd.f32 %v4427_v56, %v4242_v40 }
 0x281   : > { %v4429_v22 = vpop.f32.mrf.mxu0  ;;  %v4466_v58 = vpop.f32.mrf.mxu1 }
 0x282   : > { %v4478_v59 = vadd.f32 %v4466_v58, %v4243_v17 }
 0x283   : > { %v4430_v60 = vpop.f32.mrf.mxu0  ;;  %v6891_v61 = vpop.f32.mrf.mxu1 }
 0x285   : > { %v4469_v62 = vpop.f32.mrf.mxu1  ;;  %v4563_v63 = vpop.f32.mrf.mxu0 }
 0x286   : > { %v4692_v0 = vadd.f32 %v4563_v63, %v4472_v46 }
 0x287   : > { %v6892_v1 = vpop.f32.mrf.mxu1  ;;  %v4565_v2 = vpop.f32.mrf.mxu0 }
 0x288   : > { %v4693_v4 = vadd.f32 %v4565_v2, %v4473_v18 }
 0x289   : > { %v4567_v6 = vpop.f32.mrf.mxu0  ;;  %v4604_v8 = vpop.f32.mrf.mxu1 }
 0x28a   : > { %v4694_v9 = vadd.f32 %v4604_v8, %v4474_v49 }
 0x28b   : > { %v4568_v11 = vpop.f32.mrf.mxu0  ;;  %v4606_v12 = vpop.f32.mrf.mxu1 }
 0x28c   : > { %v4695_v15 = vadd.f32 %v4606_v12, %v4475_v52 }
 0x28d   : > { %v4608_v21 = vpop.f32.mrf.mxu1  ;;  %v4645_v23 = vpop.f32.mrf.mxu0 }
 0x28e   : > { %v4696_v24 = vadd.f32 %v4645_v23, %v4476_v54 }
 0x28f   : > { %v4609_v25 = vpop.f32.mrf.mxu1  ;;  %v4647_v26 = vpop.f32.mrf.mxu0 }
 0x290   : > { %v4697_v27 = vadd.f32 %v4647_v26, %v4477_v57 }
 0x291   : > { %v4649_v5 = vpop.f32.mrf.mxu0  ;;  %v4686_v13 = vpop.f32.mrf.mxu1 }
 0x292   : > { %v4698_v28 = vadd.f32 %v4686_v13, %v4478_v59 }
 0x293   : > { %v4650_v29 = vpop.f32.mrf.mxu0  ;;  %v6897_v30 = vpop.f32.mrf.mxu1 }
 0x295   : > { %v4689_v31 = vpop.f32.mrf.mxu1  ;;  %v4783_v14 = vpop.f32.mrf.mxu0 }
 0x296   : > { %v4912_v7 = vadd.f32 %v4783_v14, %v4692_v0 }
 0x297   : > { %v6898_v32 = vpop.f32.mrf.mxu1  ;;  %v4785_v33 = vpop.f32.mrf.mxu0 }
 0x298   : > { %v4913_v34 = vadd.f32 %v4785_v33, %v4693_v4 }
 0x299   : > { %v4787_v35 = vpop.f32.mrf.mxu0  ;;  %v4824_v37 = vpop.f32.mrf.mxu1 }
 0x29a   : > { %v4914_v16 = vadd.f32 %v4824_v37, %v4694_v9 }
 0x29b   : > { %v4788_v38 = vpop.f32.mrf.mxu0  ;;  %v4826_v39 = vpop.f32.mrf.mxu1 }
 0x29c   : > { %v4915_v40 = vadd.f32 %v4826_v39, %v4695_v15 }
 0x29d   : > { %v4828_v36 = vpop.f32.mrf.mxu1  ;;  %v4865_v41 = vpop.f32.mrf.mxu0 }
 0x29e   : > { %v4916_v17 = vadd.f32 %v4865_v41, %v4696_v24 }
 0x29f   : > { %v4829_v42 = vpop.f32.mrf.mxu1  ;;  %v4867_v43 = vpop.f32.mrf.mxu0 }
 0x2a0   : > { %v4917_v44 = vadd.f32 %v4867_v43, %v4697_v27 }
 0x2a1   : > { %v4869_v45 = vpop.f32.mrf.mxu0  ;;  %v4906_v46 = vpop.f32.mrf.mxu1 }
 0x2a2   : > { %v4918_v47 = vadd.f32 %v4906_v46, %v4698_v28 }
 0x2a3   : > { %v4870_v10 = vpop.f32.mrf.mxu0  ;;  %v6903_v18 = vpop.f32.mrf.mxu1 }
 0x2a5   : > { %v4909_v48 = vpop.f32.mrf.mxu1  ;;  %v5003_v19 = vpop.f32.mrf.mxu0 }
 0x2a6   : > { %v8399_v49 = vadd.f32 %v5003_v19, %v4912_v7 }
 0x2a7   : > { %v6904_v50 = vpop.f32.mrf.mxu1  ;;  %v5005_v51 = vpop.f32.mrf.mxu0 }
 0x2a8   : > { %v8401_v52 = vadd.f32 %v5005_v51, %v4913_v34 }
 0x2a9   : > { %v5007_v53 = vpop.f32.mrf.mxu0  ;;  %v5044_v20 = vpop.f32.mrf.mxu1 }
 0x2aa   : > { %v8403_v54 = vadd.f32 %v5044_v20, %v4914_v16 }
 0x2ab   : > { %v5008_v55 = vpop.f32.mrf.mxu0  ;;  %v5046_v56 = vpop.f32.mrf.mxu1 }
 0x2ac   : > { %v8405_v57 = vadd.f32 %v5046_v56, %v4915_v40 }
 0x2ad   : > { %v5048_v22 = vpop.f32.mrf.mxu1  ;;  %v5085_v58 = vpop.f32.mrf.mxu0 }
 0x2ae   : > { %v8407_v59 = vadd.f32 %v5085_v58, %v4916_v17 }
 0x2af   : > { %v5049_v60 = vpop.f32.mrf.mxu1  ;;  %v5087_v61 = vpop.f32.mrf.mxu0 }
 0x2b0   : > { %v8409_v62 = vadd.f32 %v5087_v61, %v4917_v44 }
 0x2b1   : > { %v5089_v63 = vpop.f32.mrf.mxu0  ;;  %v5126_v0 = vpop.f32.mrf.mxu1 }
 0x2b2   : > { %v8411_v1 = vadd.f32 %v5126_v0, %v4918_v47 }
 0x2b3   : > { %v5090_v2 = vpop.f32.mrf.mxu0  ;;  %v6909_v4 = vpop.f32.mrf.mxu1 }
 0x2b5   : > { %v5129_v6 = vpop.f32.mrf.mxu1  ;;  %v5223_v8 = vpop.f32.mrf.mxu0 }
 0x2b7   : > { %v6910_v9 = vpop.f32.mrf.mxu1  ;;  %v5225_v11 = vpop.f32.mrf.mxu0 }
 0x2b9   : > { %v5227_v12 = vpop.f32.mrf.mxu0  ;;  %v8413_v15 = vpop.f32.mrf.mxu1 }
 0x2ba   : > { %v5352_v12 = vadd.f32 %v5223_v8, %v8399_v49  ;;  %v5354_v49 = vadd.f32 %v8413_v15, %v8403_v54 }
 0x2bb   : > { %v5228_v21 = vpop.f32.mrf.mxu0  ;;  %v8415_v23 = vpop.f32.mrf.mxu1 }
 0x2bd   : > { %v5268_v24 = vpop.f32.mrf.mxu1  ;;  %v8417_v25 = vpop.f32.mrf.mxu0 }
 0x2be   : > { %v5356_v54 = vadd.f32 %v8417_v25, %v8407_v59 }
 0x2bf   : > { %v5269_v26 = vpop.f32.mrf.mxu1  ;;  %v8419_v27 = vpop.f32.mrf.mxu0 }
 0x2c0   : > { %v6243_v26 = vsub.s32 0, %v7152_v3 }
 0x2c1   : > { %v5309_v5 = vpop.f32.mrf.mxu0  ;;  %v8421_v13 = vpop.f32.mrf.mxu1 }
 0x2c2   : > { %v5353_v5 = vadd.f32 %v5225_v11, %v8401_v52  ;;  %v6255_v52 = vsub.s32 3, %v7152_v3 }
 0x2c3   : > { %v5310_v28 = vpop.f32.mrf.mxu0  ;;  %v6915_v29 = vpop.f32.mrf.mxu1 }
 0x2c4   : > { %v8445_v29 = vld [vmem:[%s8552_s3] sm:$0xff] }
 0x2c5   : > { %v5349_v30 = vpop.f32.mrf.mxu1  ;;  %v5443_v31 = vpop.f32.mrf.mxu0 }
 0x2c6   : > { %v5572_v28 = vadd.f32 %v5443_v31, %v5352_v12 }
 0x2c7   : > { %v6916_v14 = vpop.f32.mrf.mxu1  ;;  %v5445_v7 = vpop.f32.mrf.mxu0 }
 0x2c8   : > { %v5573_v8 = vadd.f32 %v5445_v7, %v5353_v5 }
 0x2c9   : > { %v5447_v32 = vpop.f32.mrf.mxu0  ;;  %v5484_v33 = vpop.f32.mrf.mxu1 }
 0x2ca   : > { %v6247_v32 = vsub.s32 1, %v7152_v3 }
 0x2cb   : > { %v5448_v34 = vpop.f32.mrf.mxu0  ;;  %v8423_v35 = vpop.f32.mrf.mxu1 }
 0x2cc   : > { %v6251_v34 = vsub.s32 2, %v7152_v3 }
 0x2cd   : > { %v5488_v37 = vpop.f32.mrf.mxu1  ;;  %v8425_v16 = vpop.f32.mrf.mxu0 }
 0x2cf   : > { %v5489_v38 = vpop.f32.mrf.mxu1  ;;  %v8427_v39 = vpop.f32.mrf.mxu0 }
 0x2d0   : > { %v6244_v38 = vrot.slane %v8445_v29, %v6243_v26 }
 0x2d1   : > { %v5529_v40 = vpop.f32.mrf.mxu0  ;;  %v8429_v36 = vpop.f32.mrf.mxu1 }
 0x2d2   : > { %v6259_v40 = vsub.s32 4, %v7152_v3 }
 0x2d3   : > { %v5530_v41 = vpop.f32.mrf.mxu0  ;;  %v6921_v17 = vpop.f32.mrf.mxu1 }
 0x2d4   : > { %v5574_v41 = vadd.f32 %v5484_v33, %v5354_v49  ;;  %v6256_v33 = vrot.slane %v8445_v29, %v6255_v52 }
 0x2d5   : > { %v5569_v42 = vpop.f32.mrf.mxu1  ;;  %v5663_v43 = vpop.f32.mrf.mxu0 }
 0x2d6   : > { %v5792_v37 = vadd.f32 %v5663_v43, %v5572_v28  ;;  %v6248_v43 = vrot.slane %v8445_v29, %v6247_v32 }
 0x2d7   : > { %v6922_v44 = vpop.f32.mrf.mxu1  ;;  %v5665_v45 = vpop.f32.mrf.mxu0 }
 0x2d8   : > { %v5793_v17 = vadd.f32 %v5665_v45, %v5573_v8  ;;  %v6263_v44 = vsub.s32 5, %v7152_v3  ;;  %v5357_v45 = vadd.f32 %v8419_v27, %v8409_v62 }
 0x2d9   : > { %v5667_v46 = vpop.f32.mrf.mxu0  ;;  %v5704_v47 = vpop.f32.mrf.mxu1 }
 0x2da   : > { %v5355_v46 = vadd.f32 %v8415_v23, %v8405_v57  ;;  %v5576_v23 = vadd.f32 %v8425_v16, %v5356_v54  ;;  %v5577_v62 = vadd.f32 %v8427_v39, %v5357_v45 }
 0x2db   : > { %v5668_v10 = vpop.f32.mrf.mxu0  ;;  %v8431_v18 = vpop.f32.mrf.mxu1 }
 0x2dc   : > { %v6252_v10 = vrot.slane %v8445_v29, %v6251_v34  ;;  %v5575_v57 = vadd.f32 %v8423_v35, %v5355_v46 }
 0x2dd   : > { %v5708_v48 = vpop.f32.mrf.mxu1  ;;  %v8433_v19 = vpop.f32.mrf.mxu0 }
 0x2de   : > { %v5794_v48 = vadd.f32 %v5704_v47, %v5574_v41  ;;  %v5795_v27 = vadd.f32 %v8431_v18, %v5575_v57  ;;  %v5796_v35 = vadd.f32 %v8433_v19, %v5576_v23 }
 0x2df   : > { %v5709_v50 = vpop.f32.mrf.mxu1  ;;  %v8435_v51 = vpop.f32.mrf.mxu0 }
 0x2e1   : > { %v5749_v53 = vpop.f32.mrf.mxu0  ;;  %v8437_v20 = vpop.f32.mrf.mxu1 }
 0x2e3   : > { %v5750_v55 = vpop.f32.mrf.mxu0  ;;  %v6927_v56 = vpop.f32.mrf.mxu1 }
 0x2e4   : > { %v6260_v55 = vrot.slane %v8445_v29, %v6259_v40 }
 0x2e5   : > { %v5789_v22 = vpop.f32.mrf.mxu1  ;;  %v5883_v58 = vpop.f32.mrf.mxu0 }
 0x2e6   : > { %v6012_v42 = vadd.f32 %v5883_v58, %v5792_v37  ;;  %v6264_v58 = vrot.slane %v8445_v29, %v6263_v44 }
 0x2e7   : > { %v6928_v60 = vpop.f32.mrf.mxu1  ;;  %v5885_v61 = vpop.f32.mrf.mxu0 }
 0x2e8   : > { %v6013_v50 = vadd.f32 %v5885_v61, %v5793_v17  ;;  %v5358_v60 = vadd.f32 %v8421_v13, %v8411_v1  ;;  %v5797_v1 = vadd.f32 %v8435_v51, %v5577_v62 }
 0x2e9   : > { %v5887_v63 = vpop.f32.mrf.mxu0  ;;  %v5924_v0 = vpop.f32.mrf.mxu1 }
 0x2ea   : > { %v6014_v56 = vadd.f32 %v5924_v0, %v5794_v48  ;;  %v5578_v12 = vadd.f32 %v8429_v36, %v5358_v60 }
 0x2eb   : > { %v5888_v2 = vpop.f32.mrf.mxu0  ;;  %v5926_v4 = vpop.f32.mrf.mxu1 }
 0x2ec   : > { %v6015_v13 = vadd.f32 %v5926_v4, %v5795_v27  ;;  %v5798_v37 = vadd.f32 %v8437_v20, %v5578_v12 }
 0x2ed   : > { %v5928_v6 = vpop.f32.mrf.mxu1  ;;  %v5965_v9 = vpop.f32.mrf.mxu0 }
 0x2ee   : > { %v6267_v6 = vsub.s32 6, %v7152_v3  ;;  %v6016_v39 = vadd.f32 %v5965_v9, %v5796_v35 }
 0x2ef   : > { %v5929_v21 = vpop.f32.mrf.mxu1  ;;  %v5967_v24 = vpop.f32.mrf.mxu0 }
 0x2f1   : > { %v5969_v30 = vpop.f32.mrf.mxu0  ;;  %v8447_v14 = vpop.f32.mrf.mxu1 }
 0x2f2   : > { %v6017_v30 = vadd.f32 %v5967_v24, %v5797_v1  ;;  %v6018_v44 = vadd.f32 %v8447_v14, %v5798_v37 }
 0x2f3   : > { %v5970_v11 = vpop.f32.mrf.mxu0  ;;  %v6933_v31 = vpop.f32.mrf.mxu1 }
 0x2f5   : > { %v6009_v15 = vpop.f32.mrf.mxu1  ;;  %v6103_v7 = vpop.f32.mrf.mxu0 }
 0x2f6   : > { %v8463_v53 = vadd.f32 %v6103_v7, %v6012_v42  ;;  %v6268_v42 = vrot.slane %v8445_v29, %v6267_v6 }
 0x2f7   : > { %v6934_v59 = vpop.f32.mrf.mxu1  ;;  %v6105_v25 = vpop.f32.mrf.mxu0 }
 0x2f8   : > { %v6276_v22 = vmul.f32 %v6244_v38, %v8463_v53  ;;  %v8472_v47 = vadd.f32 %v6105_v25, %v6013_v50 }
 0x2f9   : > { %v6107_v16 = vpop.f32.mrf.mxu0  ;;  %v6144_v61 = vpop.f32.mrf.mxu1 }
 0x2fa   : > { %v6299_v63 = vmul.f32 %v6276_v22, %v8463_v53  ;;  %v6277_v0 = vmul.f32 %v6248_v43, %v8472_v47  ;;  %v8482_v2 = vadd.f32 %v6144_v61, %v6014_v56  ;;  %v6284_v19 = vsel %vm6283_vm1, %v6276_v22, 0.0 }
 0x2fb   : > { %v6108_v21 = vpop.f32.mrf.mxu0  ;;  %v6146_v18 = vpop.f32.mrf.mxu1 }
 0x2fc   : > { %v6285_v26 = vsel %vm6283_vm1, %v6277_v0, 0.0  ;;  %v6300_v5 = vmul.f32 %v6277_v0, %v8472_v47  ;;  %v6278_v28 = vmul.f32 %v6252_v10, %v8482_v2  ;;  %v6306_v32 = vsel %vm6283_vm1, %v6299_v63, 0.0 }
 0x2fd   : > { %v6286_v3 = vadd.f32 %v6285_v26, %v6284_v19  ;;  %v8492_v34 = vadd.f32 %v6146_v18, %v6015_v13  ;;  %v6148_v36 = vpop.f32.mrf.mxu1  ;;  %v6185_v51 = vpop.f32.mrf.mxu0 }
 0x2fe   : > { %v6307_v4 = vsel %vm6283_vm1, %v6300_v5, 0.0  ;;  %v6287_v9 = vsel %vm6283_vm1, %v6278_v28, 0.0  ;;  %v6301_v49 = vmul.f32 %v6278_v28, %v8482_v2  ;;  %v8497_v8 = vadd.f32 %v6185_v51, %v6016_v39  ;;  %v6326_v28 = vld [vmem:[%s258_s25] sm:$0xf] }
 0x2ff   : > { %v6308_v52 = vadd.f32 %v6307_v4, %v6306_v32  ;;  %v6288_v11 = vadd.f32 %v6287_v9, %v6286_v3  ;;  %v6279_v24 = vmul.f32 %v6256_v33, %v8492_v34  ;;  %v6149_v31 = vpop.f32.mrf.mxu1  ;;  %v6187_v38 = vpop.f32.mrf.mxu0  ;;  %v7093_v5 = vmov 1  }
 0x300   : > { %v6309_v40 = vsel %vm6283_vm1, %v6301_v49, 0.0  ;;  %v6280_v41 = vmul.f32 %v6260_v55, %v8497_v8  ;;  %v8503_v17 = vadd.f32 %v6187_v38, %v6017_v30  ;;  %7019 = vset.pattern.permute.xlu0 %v7093_v5 }
 0x301   : > { %v6310_v46 = vadd.f32 %v6309_v40, %v6308_v52  ;;  %v6289_v54 = vsel %vm6283_vm1, %v6279_v24, 0.0  ;;  %v6302_v20 = vmul.f32 %v6279_v24, %v8492_v34  ;;  %v6189_v15 = vpop.f32.mrf.mxu0  ;;  %v6226_v7 = vpop.f32.mrf.mxu1 }
 0x302   : > { %v6290_v43 = vadd.f32 %v6289_v54, %v6288_v11  ;;  %v6291_v10 = vsel %vm6283_vm1, %v6280_v41, 0.0  ;;  %v6303_v48 = vmul.f32 %v6280_v41, %v8497_v8  ;;  %v6281_v50 = vmul.f32 %v6264_v58, %v8503_v17 }
 0x303   : > { %v6311_v33 = vsel %vm6283_vm1, %v6302_v20, 0.0  ;;  %v6238_v45 = vadd.f32 %v6226_v7, %v6018_v44  ;;  %v6190_v29 = vpop.f32.mrf.mxu0  ;;  %v6939_v57 = vpop.f32.mrf.mxu1 }
 0x304   : > { %v6312_v14 = vadd.f32 %v6311_v33, %v6310_v46  ;;  %v6313_v23 = vsel %vm6283_vm1, %v6303_v48, 0.0  ;;  %v6304_v59 = vmul.f32 %v6281_v50, %v8503_v17  ;;  %v6292_v25 = vadd.f32 %v6291_v10, %v6290_v43 }
 0x305   : > { %v6282_v55 = vmul.f32 %v6268_v42, %v6238_v45  ;;  %v6229_v56 = vpop.f32.mrf.mxu1  ;;  %v6293_v22 = vsel %vm6283_vm1, %v6281_v50, 0.0 }
 0x306   : > { %v6294_v60 = vadd.f32 %v6293_v22, %v6292_v25  ;;  %v6314_v62 = vadd.f32 %v6313_v23, %v6312_v14  ;;  %v6315_v27 = vsel %vm6283_vm1, %v6304_v59, 0.0 }
 0x307   : > { %v6305_v58 = vmul.f32 %v6282_v55, %v6238_v45  ;;  %v6940_v35 = vpop.f32.mrf.mxu1  ;;  %v6295_v16 = vsel %vm6283_vm1, %v6282_v55, 0.0 }
 0x308   : > { %v6296_v61 = vadd.f32 %v6295_v16, %v6294_v60  ;;  %v6316_v63 = vadd.f32 %v6315_v27, %v6314_v62 }
 0x309   : > { %v6317_v0 = vsel %vm6283_vm1, %v6305_v58, 0.0 }
 0x30a   : > { %6297 = vadd.xlane.f32.xlu0 %v6296_v61  ;;  %v6318_v6 = vadd.f32 %v6317_v0, %v6316_v63 }
 0x30c   : > { %6319 = vadd.xlane.f32.xlu1 %v6318_v6 }
 0x393   : > { %v6298_v12 = vpop.xlane.xlu0 %6297 }
 0x394   : > { %v6321_v1 = vmul.f32 0.001953125, %v6298_v12 }
 0x395   : > { %v6320_v13 = vpop.xlane.xlu1 %6319 }
 0x396   : > { %v6323_v39 = vmul.f32 %v6321_v1, %v6321_v1  ;;  %v6322_v21 = vmul.f32 0.001953125, %v6320_v13 }
 0x398   : > { %v6324_v18 = vsub.f32 %v6322_v21, %v6323_v39 }
 0x39a   : > { %v6325_v19 = vmax.f32 %v6324_v18, 0.0 }
 0x39c   : > { %v6327_v26 = vadd.f32 1e-05, %v6325_v19 }
 0x39e   : > { %7021 = vrsqrt.f32 %v6327_v26 }
 0x3ab   : > { %v7022_v30 = vpop.eup %7021 }
 0x3ac   : > { %v6329_v32 = vmul.f32 %v7022_v30, %v6326_v28 }
 0x3ae   : > { %6338 = vperm.xlu1 %7018, %v6329_v32   ;;  %v6330_v3 = vmul.f32 %v6329_v32, %v6321_v1 }
 0x3b0   : > { %6332 = vrot.lane.b32.xlu0 %v6330_v3, %s7094_s26 }
 0x422   : > { %v6333_v36 = vpop.permute.xlu0 %6332 }
 0x423   : > { %v6335_v51 = vsub.f32 %v6326_v28, %v6333_v36 }
 0x425   : > { %6350 = vperm.xlu0 %7019, %v6335_v51  }
 0x429   : > { %v6339_v4 = vpop.permute.xlu1 %6338 }
 0x42a   : > { %v6341_v9 = vmul.f32 %v6339_v4, %v8463_v53  ;;  %v6342_v49 = vmul.f32 %v6339_v4, %v8472_v47  ;;  %v6343_v37 = vmul.f32 %v6339_v4, %v8482_v2  ;;  %v6344_v52 = vmul.f32 %v6339_v4, %v8492_v34 }
 0x42b   : > { %v6345_v11 = vmul.f32 %v6339_v4, %v8497_v8  ;;  %v6346_v24 = vmul.f32 %v6339_v4, %v8503_v17  ;;  %v6347_v31 = vmul.f32 %v6339_v4, %v6238_v45 }
 0x4a0   : > { %v6351_v38 = vpop.permute.xlu0 %6350 }
 0x4a1   : > { %v6353_v40 = vadd.f32 %v6351_v38, %v6341_v9  ;;  %v6354_v41 = vadd.f32 %v6351_v38, %v6342_v49  ;;  %v6355_v42 = vadd.f32 %v6351_v38, %v6343_v37  ;;  %v6356_v44 = vadd.f32 %v6351_v38, %v6344_v52 }
 0x4a2   : > { %v6357_v46 = vadd.f32 %v6351_v38, %v6345_v11  ;;  %v6358_v54 = vadd.f32 %v6351_v38, %v6346_v24  ;;  %v6359_v53 = vadd.f32 %v6351_v38, %v6347_v31 }
 0x4a3   : > { %v6360_v47 = vmax.f32 %v6353_v40, 0.0  ;;  %v6361_v2 = vmax.f32 %v6354_v41, 0.0  ;;  %v6362_v34 = vmax.f32 %v6355_v42, 0.0  ;;  %v6363_v8 = vmax.f32 %v6356_v44, 0.0 }
 0x4a4   : > { %v6364_v20 = vmax.f32 %v6357_v46, 0.0  ;;  %v6365_v17 = vmax.f32 %v6358_v54, 0.0  ;;  %v6366_v15 = vmax.f32 %v6359_v53, 0.0 }
 0x4a5   : > { %v6373_v7 = vcombine.low %v6360_v47, %v6361_v2  ;;  %v6374_v43 = vcombine.low %v6362_v34, %v6363_v8 }
 0x4a6   : > { %v6375_v10 = vcombine.low %v6364_v20, %v6365_v17  ;;  %6382 = vst [vmem:[%s267_s27 + $0x18] sm:$0xf] %v6366_v15 }
 0x4a7   : > { %6379 = vst [vmem:[%s267_s27] sm:$0xff] %v6373_v7  ;;  %6380 = vst [vmem:[%s267_s27 + $0x8] sm:$0xff] %v6374_v43 }
 0x4a8   : > { %6381 = vst [vmem:[%s267_s27 + $0x10] sm:$0xff] %v6375_v10 }
 0x4a9 PF: > { %s14_s19 = sadd.s32 1, %s7061_s19   ;;  %s8554_s15 = smov %s7053_s17 }
 0x4aa   : > { %p11_p7 = scmp.ge.s32.totalorder %s14_s19, 6   ;;  %s8555_s16 = smov %s7057_s18 }
 0x4ab   : > { %s8556_s17 = smov %s8559_s20  ;;  %s8557_s18 = smov %s8563_s21 }
 0x4ac   :  { %13 = sbr.rel (!%p11_p7) target bundleno = 3 (0x3), region = 98 }

</bundles_post_ra>
